<compile_context>
chip_gen: v7x
topology: tpu7x:2x2x1
jax: 0.10.0
libtpu: 0.0.40
codegen_flags: <defaults>
</compile_context>

<pallas_src>
import functools

import jax
import jax.numpy as jnp
from jax import lax
from jax.experimental import pallas as pl
from jax.experimental.pallas import tpu as pltpu


# ----------------------------------------------------------------------------
# Fused kernel: all layers + linear head, single grid step.
# ----------------------------------------------------------------------------
def _fused_gru_kernel(num_layers, x_ref, h0_ref, *refs):
    # refs layout (in order):
    #   per layer l: wih (3,Din,H), whh (3,H,H), bi (3,1,H), bhn (1,H)
    #   wout (1,H), bout (1,1)
    #   outputs: y_ref (Bp,S), hT_ref (L,Bp,H)
    #   scratch: gi_r, gi_z, gi_n, act  (each (S,Bp,H) f32)
    n_w = 4 * num_layers
    w_refs = refs[:n_w]
    wout_ref = refs[n_w]
    bout_ref = refs[n_w + 1]
    y_ref = refs[n_w + 2]
    hT_ref = refs[n_w + 3]
    gi_r_ref, gi_z_ref, gi_n_ref, act_ref = refs[n_w + 4:]

    S, Bp, H = act_ref.shape
    unroll = S if S <= 16 else 8          # full unroll only for short sequences

    for l in range(num_layers):
        wih_ref = w_refs[4 * l]           # (3, Din, H)
        whh_ref = w_refs[4 * l + 1]       # (3, H, H)
        bi_ref = w_refs[4 * l + 2]        # (3, 1, H)  (b_hr/b_hz folded in)
        bhn_ref = w_refs[4 * l + 3]       # (1, H)

        # Batched input projection (no serial dependence): one
        # (S*Bp, Din) @ (Din, H) MXU matmul per gate, biases folded in.
        if l == 0:
            d_in = x_ref.shape[2]
            flat_in = x_ref[...].reshape(S * Bp, d_in)
        else:
            flat_in = act_ref[...].reshape(S * Bp, H)
        gi_r_ref[...] = (
            jnp.dot(flat_in, wih_ref[0], preferred_element_type=jnp.float32)
            + bi_ref[0]).reshape(S, Bp, H)
        gi_z_ref[...] = (
            jnp.dot(flat_in, wih_ref[1], preferred_element_type=jnp.float32)
            + bi_ref[1]).reshape(S, Bp, H)
        gi_n_ref[...] = (
            jnp.dot(flat_in, wih_ref[2], preferred_element_type=jnp.float32)
            + bi_ref[2]).reshape(S, Bp, H)

        # Hoisted per-layer loads / broadcasts (kept off the serial path).
        whh_r = whh_ref[0]
        whh_z = whh_ref[1]
        whh_n = whh_ref[2]
        bhn = jnp.broadcast_to(bhn_ref[...], (Bp, H))

        def step(t, h_prev):
            # h_prev is the vreg-resident loop carry (no VMEM round trip).
            gh_r = jnp.dot(h_prev, whh_r, preferred_element_type=jnp.float32)
            gh_z = jnp.dot(h_prev, whh_z, preferred_element_type=jnp.float32)
            gh_n = jnp.dot(h_prev, whh_n,
                           preferred_element_type=jnp.float32) + bhn
            r = jax.nn.sigmoid(gi_r_ref[t] + gh_r)        # leading-axis index
            z = jax.nn.sigmoid(gi_z_ref[t] + gh_z)
            n = jnp.tanh(gi_n_ref[t] + r * gh_n)
            h_new = (1.0 - z) * n + z * h_prev
            act_ref[t] = h_new                            # single store / step
            return h_new

        h_last = lax.fori_loop(0, S, step, h0_ref[l], unroll=unroll)
        hT_ref[l] = h_last

    # Linear(H, 1) head: VPU multiply + lane reduce over H, then one
    # (Bp, S) store (S on lanes) instead of a width-1 masked store.
    w_out = wout_ref[...]                                        # (1, H)
    y_sb = jnp.sum(act_ref[...] * w_out, axis=-1) + bout_ref[...]  # (S, Bp)
    y_ref[...] = y_sb.T                                          # (Bp, S)


# ----------------------------------------------------------------------------
# One-time weight preparation (outside the per-call path).
# ----------------------------------------------------------------------------
def prepare_params(params):
    """Transpose, split per gate, and fold biases once."""
    layers = []
    for (w_ih, w_hh, b_ih, b_hh) in params["gru"]:
        H = w_hh.shape[1]
        wih_t = jnp.transpose(w_ih)                    # (Din, 3H)
        whh_t = jnp.transpose(w_hh)                    # (H, 3H)
        wih = jnp.stack([wih_t[:, 0:H], wih_t[:, H:2 * H], wih_t[:, 2 * H:3 * H]])
        whh = jnp.stack([whh_t[:, 0:H], whh_t[:, H:2 * H], whh_t[:, 2 * H:3 * H]])
        bi = jnp.stack([
            (b_ih[0:H] + b_hh[0:H]).reshape(1, H),             # r: b_ir + b_hr
            (b_ih[H:2 * H] + b_hh[H:2 * H]).reshape(1, H),     # z: b_iz + b_hz
            b_ih[2 * H:3 * H].reshape(1, H),                   # n (input side)
        ])
        bhn = b_hh[2 * H:3 * H].reshape(1, H)                  # n (hidden side)
        layers.append((wih, whh, bi, bhn))
    return {
        "layers": layers,
        "out_w": params["out_w"].reshape(1, -1),
        "out_b": params["out_b"].reshape(1, 1),
    }


# ----------------------------------------------------------------------------
# Wrapper: pad batch to a sublane group, build specs, single pallas_call.
# ----------------------------------------------------------------------------
def gru_layer_forward(x, h, prepared):
    """x: (S, B, D), h: (L, B, H) -> (out (S, B, 1), h_state (L, B, H))."""
    S, B, D = x.shape
    layers = prepared["layers"]
    L = len(layers)
    H = layers[0][1].shape[-1]
    Bp = ((B + 7) // 8) * 8                     # pad batch to full sublanes

    x_p = jnp.pad(x, ((0, 0), (0, Bp - B), (0, 0)))
    h_p = jnp.pad(h, ((0, 0), (0, Bp - B), (0, 0)))

    args = [x_p, h_p]
    in_specs = [
        pl.BlockSpec((S, Bp, D), lambda i: (0, 0, 0)),
        pl.BlockSpec((L, Bp, H), lambda i: (0, 0, 0)),
    ]
    for (wih, whh, bi, bhn) in layers:
        d_in = wih.shape[1]
        args += [wih, whh, bi, bhn]
        in_specs += [
            pl.BlockSpec((3, d_in, H), lambda i: (0, 0, 0)),
            pl.BlockSpec((3, H, H), lambda i: (0, 0, 0)),
            pl.BlockSpec((3, 1, H), lambda i: (0, 0, 0)),
            pl.BlockSpec((1, H), lambda i: (0, 0)),
        ]
    args += [prepared["out_w"], prepared["out_b"]]
    in_specs += [
        pl.BlockSpec((1, H), lambda i: (0, 0)),
        pl.BlockSpec((1, 1), lambda i: (0, 0)),
    ]

    scratch_shapes = [
        pltpu.VMEM((S, Bp, H), jnp.float32),    # gi_r
        pltpu.VMEM((S, Bp, H), jnp.float32),    # gi_z
        pltpu.VMEM((S, Bp, H), jnp.float32),    # gi_n
        pltpu.VMEM((S, Bp, H), jnp.float32),    # activations (layer in/out)
    ]

    # Explicit VMEM budget: scratch + (double-buffered) inputs/outputs + slack.
    vmem_bytes = 4 * (S * Bp * H * 4)
    for a in args:
        vmem_bytes += 2 * a.size * a.dtype.itemsize
    vmem_bytes += 2 * (Bp * S + L * Bp * H) * 4
    vmem_limit = min(int(vmem_bytes) + (4 << 20), 64 << 20)

    grid_spec = pltpu.PrefetchScalarGridSpec(
        num_scalar_prefetch=0,
        grid=(1,),
        in_specs=in_specs,
        out_specs=[
            pl.BlockSpec((Bp, S), lambda i: (0, 0)),
            pl.BlockSpec((L, Bp, H), lambda i: (0, 0, 0)),
        ],
        scratch_shapes=scratch_shapes,
    )

    yT, hT = pl.pallas_call(
        functools.partial(_fused_gru_kernel, L),
        out_shape=(
            jax.ShapeDtypeStruct((Bp, S), jnp.float32),
            jax.ShapeDtypeStruct((L, Bp, H), jnp.float32),
        ),
        grid_spec=grid_spec,
        compiler_params=pltpu.CompilerParams(
            dimension_semantics=("arbitrary",),
            vmem_limit_bytes=vmem_limit),
    )(*args)

    out = jnp.transpose(yT[:B, :])[:, :, None]      # (S, B, 1)
    h_state = hT[:, :B, :]                          # (L, B, H)
    return out, h_state


# ----------------------------------------------------------------------------
# Pure-JAX reference (for correctness check).
# ----------------------------------------------------------------------------
def gru_layer_forward_ref(x, h, params):
    num_layers = len(params["gru"])
    layer_in = x
    h_finals = []
    for layer in range(num_layers):
        w_ih, w_hh, b_ih, b_hh = params["gru"][layer]
        H = w_hh.shape[1]
        h_t = h[layer]
        ys = []
        for t in range(x.shape[0]):
            gi = layer_in[t] @ w_ih.T + b_ih
            gh = h_t @ w_hh.T + b_hh
            r = jax.nn.sigmoid(gi[:, :H] + gh[:, :H])
            z = jax.nn.sigmoid(gi[:, H:2 * H] + gh[:, H:2 * H])
            n = jnp.tanh(gi[:, 2 * H:] + r * gh[:, 2 * H:])
            h_t = (1.0 - z) * n + z * h_t
            ys.append(h_t)
        layer_in = jnp.stack(ys, axis=0)
        h_finals.append(h_t)
    out = layer_in @ params["out_w"].T + params["out_b"]
    return out, jnp.stack(h_finals, axis=0)


# ----------------------------------------------------------------------------
# Deterministic parameter init (PyTorch-style uniform(-1/sqrt(H), 1/sqrt(H))).
# ----------------------------------------------------------------------------
def init_params(key, input_dim, hidden_size, num_layers):
    k = 1.0 / jnp.sqrt(hidden_size)
    params = {"gru": []}
    for layer in range(num_layers):
        in_dim = input_dim if layer == 0 else hidden_size
        key, k1, k2, k3, k4 = jax.random.split(key, 5)
        w_ih = jax.random.uniform(k1, (3 * hidden_size, in_dim), jnp.float32, -k, k)
        w_hh = jax.random.uniform(k2, (3 * hidden_size, hidden_size), jnp.float32, -k, k)
        b_ih = jax.random.uniform(k3, (3 * hidden_size,), jnp.float32, -k, k)
        b_hh = jax.random.uniform(k4, (3 * hidden_size,), jnp.float32, -k, k)
        params["gru"].append((w_ih, w_hh, b_ih, b_hh))
    key, k5, k6 = jax.random.split(key, 3)
    kl = 1.0 / jnp.sqrt(hidden_size)
    params["out_w"] = jax.random.uniform(k5, (1, hidden_size), jnp.float32, -kl, kl)
    params["out_b"] = jax.random.uniform(k6, (1,), jnp.float32, -kl, kl)
    return params


if __name__ == "__main__":
    input_dim, hidden_size, num_layers = 4, 32, 2
    seq_len, batch = 8, 2

    root = jax.random.PRNGKey(0)
    kx, kh, kp = jax.random.split(root, 3)
    x = jax.random.normal(kx, (seq_len, batch, input_dim), jnp.float32)
    h = jax.random.normal(kh, (num_layers, batch, hidden_size), jnp.float32)
    params = init_params(kp, input_dim, hidden_size, num_layers)
    prepared = prepare_params(params)        # one-time, outside the call path

    fwd = jax.jit(gru_layer_forward)
    out, h_state = fwd(x, h, prepared)
    out = jax.block_until_ready(out)
    h_state = jax.block_until_ready(h_state)

    # correctness check against pure-JAX reference
    out_ref, h_ref = gru_layer_forward_ref(x, h, params)
    assert out.shape == (seq_len, batch, 1)
    assert h_state.shape == (num_layers, batch, hidden_size)
    assert jnp.allclose(out, out_ref, rtol=1e-4, atol=1e-5)
    assert jnp.allclose(h_state, h_ref, rtol=1e-4, atol=1e-5)

    print("KERNEL_OK")
</pallas_src>

<mosaic_0001>
module attributes {stable_mosaic.version = 11 : i64} {
  func.func @_fused_gru_kernel(%arg0: i32, %arg1: memref<8x8x4xf32, #tpu.memory_space<vmem>>, %arg2: memref<2x8x32xf32, #tpu.memory_space<vmem>>, %arg3: memref<3x4x32xf32, #tpu.memory_space<vmem>>, %arg4: memref<3x32x32xf32, #tpu.memory_space<vmem>>, %arg5: memref<3x1x32xf32, #tpu.memory_space<vmem>>, %arg6: memref<1x32xf32, #tpu.memory_space<vmem>>, %arg7: memref<3x32x32xf32, #tpu.memory_space<vmem>>, %arg8: memref<3x32x32xf32, #tpu.memory_space<vmem>>, %arg9: memref<3x1x32xf32, #tpu.memory_space<vmem>>, %arg10: memref<1x32xf32, #tpu.memory_space<vmem>>, %arg11: memref<1x32xf32, #tpu.memory_space<vmem>>, %arg12: memref<1x1xf32, #tpu.memory_space<vmem>>, %arg13: memref<8x8xf32, #tpu.memory_space<vmem>>, %arg14: memref<2x8x32xf32, #tpu.memory_space<vmem>>, %arg15: memref<8x8x32xf32, #tpu.memory_space<vmem>>, %arg16: memref<8x8x32xf32, #tpu.memory_space<vmem>>, %arg17: memref<8x8x32xf32, #tpu.memory_space<vmem>>, %arg18: memref<8x8x32xf32, #tpu.memory_space<vmem>>) attributes {dimension_semantics = [#tpu.dimension_semantics<arbitrary>], iteration_bounds = array<i64: 1>, scalar_prefetch = 0 : i64, scratch_operands = 4 : i64, tpu.core_type = #tpu.core_type<tc>, window_params = [{pipeline_mode = #tpu.pipeline_mode<synchronous>, transform_indices = @transform_0, window_bounds = array<i64: 8, 8, 4>}, {pipeline_mode = #tpu.pipeline_mode<synchronous>, transform_indices = @transform_1, window_bounds = array<i64: 2, 8, 32>}, {pipeline_mode = #tpu.pipeline_mode<synchronous>, transform_indices = @transform_2, window_bounds = array<i64: 3, 4, 32>}, {pipeline_mode = #tpu.pipeline_mode<synchronous>, transform_indices = @transform_3, window_bounds = array<i64: 3, 32, 32>}, {pipeline_mode = #tpu.pipeline_mode<synchronous>, transform_indices = @transform_4, window_bounds = array<i64: 3, 1, 32>}, {pipeline_mode = #tpu.pipeline_mode<synchronous>, transform_indices = @transform_5, window_bounds = array<i64: 1, 32>}, {pipeline_mode = #tpu.pipeline_mode<synchronous>, transform_indices = @transform_6, window_bounds = array<i64: 3, 32, 32>}, {pipeline_mode = #tpu.pipeline_mode<synchronous>, transform_indices = @transform_7, window_bounds = array<i64: 3, 32, 32>}, {pipeline_mode = #tpu.pipeline_mode<synchronous>, transform_indices = @transform_8, window_bounds = array<i64: 3, 1, 32>}, {pipeline_mode = #tpu.pipeline_mode<synchronous>, transform_indices = @transform_9, window_bounds = array<i64: 1, 32>}, {pipeline_mode = #tpu.pipeline_mode<synchronous>, transform_indices = @transform_10, window_bounds = array<i64: 1, 32>}, {pipeline_mode = #tpu.pipeline_mode<synchronous>, transform_indices = @transform_11, window_bounds = array<i64: 1, 1>}, {pipeline_mode = #tpu.pipeline_mode<synchronous>, transform_indices = @transform_12, window_bounds = array<i64: 8, 8>}, {pipeline_mode = #tpu.pipeline_mode<synchronous>, transform_indices = @transform_13, window_bounds = array<i64: 2, 8, 32>}]} {
    %c0 = arith.constant 0 : index
    %c0_0 = arith.constant 0 : index
    %c0_1 = arith.constant 0 : index
    %0 = vector.load %arg1[%c0, %c0_0, %c0_1] : memref<8x8x4xf32, #tpu.memory_space<vmem>>, vector<8x8x4xf32>
    %1 = vector.shape_cast %0 : vector<8x8x4xf32> to vector<64x4xf32>
    %c0_2 = arith.constant 0 : index
    %c0_3 = arith.constant 0 : index
    %c0_4 = arith.constant 0 : index
    %2 = vector.load %arg3[%c0_2, %c0_3, %c0_4] : memref<3x4x32xf32, #tpu.memory_space<vmem>>, vector<1x4x32xf32>
    %3 = vector.shape_cast %2 : vector<1x4x32xf32> to vector<4x32xf32>
    %cst = arith.constant dense<0.000000e+00> : vector<64x32xf32>
    %4 = tpu.matmul %1, %3, %cst {dimension_numbers = #tpu.dot_dimension_numbers<[1], [0], [0], [1], [0, 0, 1, 1], [], []>} : vector<64x4xf32>, vector<4x32xf32>, vector<64x32xf32> -> vector<64x32xf32>
    %c0_5 = arith.constant 0 : index
    %c0_6 = arith.constant 0 : index
    %c0_7 = arith.constant 0 : index
    %5 = vector.load %arg5[%c0_5, %c0_6, %c0_7] : memref<3x1x32xf32, #tpu.memory_space<vmem>>, vector<1x1x32xf32>
    %6 = vector.shape_cast %5 : vector<1x1x32xf32> to vector<1x32xf32>
    %7 = vector.broadcast %6 : vector<1x32xf32> to vector<64x32xf32>
    %8 = arith.addf %4, %7 : vector<64x32xf32>
    %9 = vector.shape_cast %8 : vector<64x32xf32> to vector<8x8x32xf32>
    %c0_8 = arith.constant 0 : index
    %c0_9 = arith.constant 0 : index
    %c0_10 = arith.constant 0 : index
    %10 = vector.load %arg15[%c0_8, %c0_9, %c0_10] : memref<8x8x32xf32, #tpu.memory_space<vmem>>, vector<8x8x32xf32>
    tpu.vector_store %arg15[%c0_8, %c0_9, %c0_10], %9 {strides = array<i32>} : memref<8x8x32xf32, #tpu.memory_space<vmem>>, vector<8x8x32xf32>,
    %c1 = arith.constant 1 : index
    %c0_11 = arith.constant 0 : index
    %c0_12 = arith.constant 0 : index
    %11 = vector.load %arg3[%c1, %c0_11, %c0_12] : memref<3x4x32xf32, #tpu.memory_space<vmem>>, vector<1x4x32xf32>
    %12 = vector.shape_cast %11 : vector<1x4x32xf32> to vector<4x32xf32>
    %cst_13 = arith.constant dense<0.000000e+00> : vector<64x32xf32>
    %13 = tpu.matmul %1, %12, %cst_13 {dimension_numbers = #tpu.dot_dimension_numbers<[1], [0], [0], [1], [0, 0, 1, 1], [], []>} : vector<64x4xf32>, vector<4x32xf32>, vector<64x32xf32> -> vector<64x32xf32>
    %c1_14 = arith.constant 1 : index
    %c0_15 = arith.constant 0 : index
    %c0_16 = arith.constant 0 : index
    %14 = vector.load %arg5[%c1_14, %c0_15, %c0_16] : memref<3x1x32xf32, #tpu.memory_space<vmem>>, vector<1x1x32xf32>
    %15 = vector.shape_cast %14 : vector<1x1x32xf32> to vector<1x32xf32>
    %16 = vector.broadcast %15 : vector<1x32xf32> to vector<64x32xf32>
    %17 = arith.addf %13, %16 : vector<64x32xf32>
    %18 = vector.shape_cast %17 : vector<64x32xf32> to vector<8x8x32xf32>
    %c0_17 = arith.constant 0 : index
    %c0_18 = arith.constant 0 : index
    %c0_19 = arith.constant 0 : index
    %19 = vector.load %arg16[%c0_17, %c0_18, %c0_19] : memref<8x8x32xf32, #tpu.memory_space<vmem>>, vector<8x8x32xf32>
    tpu.vector_store %arg16[%c0_17, %c0_18, %c0_19], %18 {strides = array<i32>} : memref<8x8x32xf32, #tpu.memory_space<vmem>>, vector<8x8x32xf32>,
    %c2 = arith.constant 2 : index
    %c0_20 = arith.constant 0 : index
    %c0_21 = arith.constant 0 : index
    %20 = vector.load %arg3[%c2, %c0_20, %c0_21] : memref<3x4x32xf32, #tpu.memory_space<vmem>>, vector<1x4x32xf32>
    %21 = vector.shape_cast %20 : vector<1x4x32xf32> to vector<4x32xf32>
    %cst_22 = arith.constant dense<0.000000e+00> : vector<64x32xf32>
    %22 = tpu.matmul %1, %21, %cst_22 {dimension_numbers = #tpu.dot_dimension_numbers<[1], [0], [0], [1], [0, 0, 1, 1], [], []>} : vector<64x4xf32>, vector<4x32xf32>, vector<64x32xf32> -> vector<64x32xf32>
    %c2_23 = arith.constant 2 : index
    %c0_24 = arith.constant 0 : index
    %c0_25 = arith.constant 0 : index
    %23 = vector.load %arg5[%c2_23, %c0_24, %c0_25] : memref<3x1x32xf32, #tpu.memory_space<vmem>>, vector<1x1x32xf32>
    %24 = vector.shape_cast %23 : vector<1x1x32xf32> to vector<1x32xf32>
    %25 = vector.broadcast %24 : vector<1x32xf32> to vector<64x32xf32>
    %26 = arith.addf %22, %25 : vector<64x32xf32>
    %27 = vector.shape_cast %26 : vector<64x32xf32> to vector<8x8x32xf32>
    %c0_26 = arith.constant 0 : index
    %c0_27 = arith.constant 0 : index
    %c0_28 = arith.constant 0 : index
    %28 = vector.load %arg17[%c0_26, %c0_27, %c0_28] : memref<8x8x32xf32, #tpu.memory_space<vmem>>, vector<8x8x32xf32>
    tpu.vector_store %arg17[%c0_26, %c0_27, %c0_28], %27 {strides = array<i32>} : memref<8x8x32xf32, #tpu.memory_space<vmem>>, vector<8x8x32xf32>,
    %c0_29 = arith.constant 0 : index
    %c0_30 = arith.constant 0 : index
    %c0_31 = arith.constant 0 : index
    %29 = vector.load %arg4[%c0_29, %c0_30, %c0_31] : memref<3x32x32xf32, #tpu.memory_space<vmem>>, vector<1x32x32xf32>
    %30 = vector.shape_cast %29 : vector<1x32x32xf32> to vector<32x32xf32>
    %c1_32 = arith.constant 1 : index
    %c0_33 = arith.constant 0 : index
    %c0_34 = arith.constant 0 : index
    %31 = vector.load %arg4[%c1_32, %c0_33, %c0_34] : memref<3x32x32xf32, #tpu.memory_space<vmem>>, vector<1x32x32xf32>
    %32 = vector.shape_cast %31 : vector<1x32x32xf32> to vector<32x32xf32>
    %c2_35 = arith.constant 2 : index
    %c0_36 = arith.constant 0 : index
    %c0_37 = arith.constant 0 : index
    %33 = vector.load %arg4[%c2_35, %c0_36, %c0_37] : memref<3x32x32xf32, #tpu.memory_space<vmem>>, vector<1x32x32xf32>
    %34 = vector.shape_cast %33 : vector<1x32x32xf32> to vector<32x32xf32>
    %c0_38 = arith.constant 0 : index
    %c0_39 = arith.constant 0 : index
    %35 = vector.load %arg6[%c0_38, %c0_39] : memref<1x32xf32, #tpu.memory_space<vmem>>, vector<1x32xf32>
    %36 = vector.shape_cast %35 : vector<1x32xf32> to vector<1x32xf32>
    %37 = vector.broadcast %36 : vector<1x32xf32> to vector<8x32xf32>
    %c0_40 = arith.constant 0 : index
    %c0_41 = arith.constant 0 : index
    %c0_42 = arith.constant 0 : index
    %38 = vector.load %arg2[%c0_40, %c0_41, %c0_42] : memref<2x8x32xf32, #tpu.memory_space<vmem>>, vector<1x8x32xf32>
    %39 = vector.shape_cast %38 : vector<1x8x32xf32> to vector<8x32xf32>
    %c0_i32 = arith.constant 0 : i32
    %cst_43 = arith.constant dense<0.000000e+00> : vector<8x32xf32>
    %40 = tpu.matmul %39, %30, %cst_43 {dimension_numbers = #tpu.dot_dimension_numbers<[1], [0], [0], [1], [0, 0, 1, 1], [], []>} : vector<8x32xf32>, vector<32x32xf32>, vector<8x32xf32> -> vector<8x32xf32>
    %cst_44 = arith.constant dense<0.000000e+00> : vector<8x32xf32>
    %41 = tpu.matmul %39, %32, %cst_44 {dimension_numbers = #tpu.dot_dimension_numbers<[1], [0], [0], [1], [0, 0, 1, 1], [], []>} : vector<8x32xf32>, vector<32x32xf32>, vector<8x32xf32> -> vector<8x32xf32>
    %cst_45 = arith.constant dense<0.000000e+00> : vector<8x32xf32>
    %42 = tpu.matmul %39, %34, %cst_45 {dimension_numbers = #tpu.dot_dimension_numbers<[1], [0], [0], [1], [0, 0, 1, 1], [], []>} : vector<8x32xf32>, vector<32x32xf32>, vector<8x32xf32> -> vector<8x32xf32>
    %43 = arith.addf %42, %37 : vector<8x32xf32>
    %44 = arith.index_cast %c0_i32 : i32 to index
    %c0_46 = arith.constant 0 : index
    %c0_47 = arith.constant 0 : index
    %45 = vector.load %arg15[%44, %c0_46, %c0_47] : memref<8x8x32xf32, #tpu.memory_space<vmem>>, vector<1x8x32xf32>
    %46 = vector.shape_cast %45 : vector<1x8x32xf32> to vector<8x32xf32>
    %47 = arith.addf %46, %40 : vector<8x32xf32>
    %48 = arith.negf %47 : vector<8x32xf32>
    %49 = math.exp %48 : vector<8x32xf32>
    %cst_48 = arith.constant 1.000000e+00 : f32
    %50 = vector.broadcast %cst_48 : f32 to vector<8x32xf32>
    %51 = arith.addf %50, %49 : vector<8x32xf32>
    %52 = arith.divf %50, %51 : vector<8x32xf32>
    %53 = arith.index_cast %c0_i32 : i32 to index
    %c0_49 = arith.constant 0 : index
    %c0_50 = arith.constant 0 : index
    %54 = vector.load %arg16[%53, %c0_49, %c0_50] : memref<8x8x32xf32, #tpu.memory_space<vmem>>, vector<1x8x32xf32>
    %55 = vector.shape_cast %54 : vector<1x8x32xf32> to vector<8x32xf32>
    %56 = arith.addf %55, %41 : vector<8x32xf32>
    %57 = arith.negf %56 : vector<8x32xf32>
    %58 = math.exp %57 : vector<8x32xf32>
    %cst_51 = arith.constant 1.000000e+00 : f32
    %59 = vector.broadcast %cst_51 : f32 to vector<8x32xf32>
    %60 = arith.addf %59, %58 : vector<8x32xf32>
    %61 = arith.divf %59, %60 : vector<8x32xf32>
    %62 = arith.index_cast %c0_i32 : i32 to index
    %c0_52 = arith.constant 0 : index
    %c0_53 = arith.constant 0 : index
    %63 = vector.load %arg17[%62, %c0_52, %c0_53] : memref<8x8x32xf32, #tpu.memory_space<vmem>>, vector<1x8x32xf32>
    %64 = vector.shape_cast %63 : vector<1x8x32xf32> to vector<8x32xf32>
    %65 = arith.mulf %52, %43 : vector<8x32xf32>
    %66 = arith.addf %64, %65 : vector<8x32xf32>
    %67 = math.tanh %66 : vector<8x32xf32>
    %cst_54 = arith.constant 1.000000e+00 : f32
    %68 = vector.broadcast %cst_54 : f32 to vector<8x32xf32>
    %69 = arith.subf %68, %61 : vector<8x32xf32>
    %70 = arith.mulf %69, %67 : vector<8x32xf32>
    %71 = arith.mulf %61, %39 : vector<8x32xf32>
    %72 = arith.addf %70, %71 : vector<8x32xf32>
    %73 = arith.index_cast %c0_i32 : i32 to index
    %c0_55 = arith.constant 0 : index
    %c0_56 = arith.constant 0 : index
    %74 = vector.load %arg18[%73, %c0_55, %c0_56] : memref<8x8x32xf32, #tpu.memory_space<vmem>>, vector<1x8x32xf32>
    %75 = vector.shape_cast %74 : vector<1x8x32xf32> to vector<8x32xf32>
    %76 = vector.shape_cast %72 : vector<8x32xf32> to vector<1x8x32xf32>
    tpu.vector_store %arg18[%73, %c0_55, %c0_56], %76 {strides = array<i32>} : memref<8x8x32xf32, #tpu.memory_space<vmem>>, vector<1x8x32xf32>,
    %c1_i32 = arith.constant 1 : i32
    %cst_57 = arith.constant dense<0.000000e+00> : vector<8x32xf32>
    %77 = tpu.matmul %72, %30, %cst_57 {dimension_numbers = #tpu.dot_dimension_numbers<[1], [0], [0], [1], [0, 0, 1, 1], [], []>} : vector<8x32xf32>, vector<32x32xf32>, vector<8x32xf32> -> vector<8x32xf32>
    %cst_58 = arith.constant dense<0.000000e+00> : vector<8x32xf32>
    %78 = tpu.matmul %72, %32, %cst_58 {dimension_numbers = #tpu.dot_dimension_numbers<[1], [0], [0], [1], [0, 0, 1, 1], [], []>} : vector<8x32xf32>, vector<32x32xf32>, vector<8x32xf32> -> vector<8x32xf32>
    %cst_59 = arith.constant dense<0.000000e+00> : vector<8x32xf32>
    %79 = tpu.matmul %72, %34, %cst_59 {dimension_numbers = #tpu.dot_dimension_numbers<[1], [0], [0], [1], [0, 0, 1, 1], [], []>} : vector<8x32xf32>, vector<32x32xf32>, vector<8x32xf32> -> vector<8x32xf32>
    %80 = arith.addf %79, %37 : vector<8x32xf32>
    %81 = arith.index_cast %c1_i32 : i32 to index
    %c0_60 = arith.constant 0 : index
    %c0_61 = arith.constant 0 : index
    %82 = vector.load %arg15[%81, %c0_60, %c0_61] : memref<8x8x32xf32, #tpu.memory_space<vmem>>, vector<1x8x32xf32>
    %83 = vector.shape_cast %82 : vector<1x8x32xf32> to vector<8x32xf32>
    %84 = arith.addf %83, %77 : vector<8x32xf32>
    %85 = arith.negf %84 : vector<8x32xf32>
    %86 = math.exp %85 : vector<8x32xf32>
    %cst_62 = arith.constant 1.000000e+00 : f32
    %87 = vector.broadcast %cst_62 : f32 to vector<8x32xf32>
    %88 = arith.addf %87, %86 : vector<8x32xf32>
    %89 = arith.divf %87, %88 : vector<8x32xf32>
    %90 = arith.index_cast %c1_i32 : i32 to index
    %c0_63 = arith.constant 0 : index
    %c0_64 = arith.constant 0 : index
    %91 = vector.load %arg16[%90, %c0_63, %c0_64] : memref<8x8x32xf32, #tpu.memory_space<vmem>>, vector<1x8x32xf32>
    %92 = vector.shape_cast %91 : vector<1x8x32xf32> to vector<8x32xf32>
    %93 = arith.addf %92, %78 : vector<8x32xf32>
    %94 = arith.negf %93 : vector<8x32xf32>
    %95 = math.exp %94 : vector<8x32xf32>
    %cst_65 = arith.constant 1.000000e+00 : f32
    %96 = vector.broadcast %cst_65 : f32 to vector<8x32xf32>
    %97 = arith.addf %96, %95 : vector<8x32xf32>
    %98 = arith.divf %96, %97 : vector<8x32xf32>
    %99 = arith.index_cast %c1_i32 : i32 to index
    %c0_66 = arith.constant 0 : index
    %c0_67 = arith.constant 0 : index
    %100 = vector.load %arg17[%99, %c0_66, %c0_67] : memref<8x8x32xf32, #tpu.memory_space<vmem>>, vector<1x8x32xf32>
    %101 = vector.shape_cast %100 : vector<1x8x32xf32> to vector<8x32xf32>
    %102 = arith.mulf %89, %80 : vector<8x32xf32>
    %103 = arith.addf %101, %102 : vector<8x32xf32>
    %104 = math.tanh %103 : vector<8x32xf32>
    %cst_68 = arith.constant 1.000000e+00 : f32
    %105 = vector.broadcast %cst_68 : f32 to vector<8x32xf32>
    %106 = arith.subf %105, %98 : vector<8x32xf32>
    %107 = arith.mulf %106, %104 : vector<8x32xf32>
    %108 = arith.mulf %98, %72 : vector<8x32xf32>
    %109 = arith.addf %107, %108 : vector<8x32xf32>
    %110 = arith.index_cast %c1_i32 : i32 to index
    %c0_69 = arith.constant 0 : index
    %c0_70 = arith.constant 0 : index
    %111 = vector.load %arg18[%110, %c0_69, %c0_70] : memref<8x8x32xf32, #tpu.memory_space<vmem>>, vector<1x8x32xf32>
    %112 = vector.shape_cast %111 : vector<1x8x32xf32> to vector<8x32xf32>
    %113 = vector.shape_cast %109 : vector<8x32xf32> to vector<1x8x32xf32>
    tpu.vector_store %arg18[%110, %c0_69, %c0_70], %113 {strides = array<i32>} : memref<8x8x32xf32, #tpu.memory_space<vmem>>, vector<1x8x32xf32>,
    %c2_i32 = arith.constant 2 : i32
    %cst_71 = arith.constant dense<0.000000e+00> : vector<8x32xf32>
    %114 = tpu.matmul %109, %30, %cst_71 {dimension_numbers = #tpu.dot_dimension_numbers<[1], [0], [0], [1], [0, 0, 1, 1], [], []>} : vector<8x32xf32>, vector<32x32xf32>, vector<8x32xf32> -> vector<8x32xf32>
    %cst_72 = arith.constant dense<0.000000e+00> : vector<8x32xf32>
    %115 = tpu.matmul %109, %32, %cst_72 {dimension_numbers = #tpu.dot_dimension_numbers<[1], [0], [0], [1], [0, 0, 1, 1], [], []>} : vector<8x32xf32>, vector<32x32xf32>, vector<8x32xf32> -> vector<8x32xf32>
    %cst_73 = arith.constant dense<0.000000e+00> : vector<8x32xf32>
    %116 = tpu.matmul %109, %34, %cst_73 {dimension_numbers = #tpu.dot_dimension_numbers<[1], [0], [0], [1], [0, 0, 1, 1], [], []>} : vector<8x32xf32>, vector<32x32xf32>, vector<8x32xf32> -> vector<8x32xf32>
    %117 = arith.addf %116, %37 : vector<8x32xf32>
    %118 = arith.index_cast %c2_i32 : i32 to index
    %c0_74 = arith.constant 0 : index
    %c0_75 = arith.constant 0 : index
    %119 = vector.load %arg15[%118, %c0_74, %c0_75] : memref<8x8x32xf32, #tpu.memory_space<vmem>>, vector<1x8x32xf32>
    %120 = vector.shape_cast %119 : vector<1x8x32xf32> to vector<8x32xf32>
    %121 = arith.addf %120, %114 : vector<8x32xf32>
    %122 = arith.negf %121 : vector<8x32xf32>
    %123 = math.exp %122 : vector<8x32xf32>
    %cst_76 = arith.constant 1.000000e+00 : f32
    %124 = vector.broadcast %cst_76 : f32 to vector<8x32xf32>
    %125 = arith.addf %124, %123 : vector<8x32xf32>
    %126 = arith.divf %124, %125 : vector<8x32xf32>
    %127 = arith.index_cast %c2_i32 : i32 to index
    %c0_77 = arith.constant 0 : index
    %c0_78 = arith.constant 0 : index
    %128 = vector.load %arg16[%127, %c0_77, %c0_78] : memref<8x8x32xf32, #tpu.memory_space<vmem>>, vector<1x8x32xf32>
    %129 = vector.shape_cast %128 : vector<1x8x32xf32> to vector<8x32xf32>
    %130 = arith.addf %129, %115 : vector<8x32xf32>
    %131 = arith.negf %130 : vector<8x32xf32>
    %132 = math.exp %131 : vector<8x32xf32>
    %cst_79 = arith.constant 1.000000e+00 : f32
    %133 = vector.broadcast %cst_79 : f32 to vector<8x32xf32>
    %134 = arith.addf %133, %132 : vector<8x32xf32>
    %135 = arith.divf %133, %134 : vector<8x32xf32>
    %136 = arith.index_cast %c2_i32 : i32 to index
    %c0_80 = arith.constant 0 : index
    %c0_81 = arith.constant 0 : index
    %137 = vector.load %arg17[%136, %c0_80, %c0_81] : memref<8x8x32xf32, #tpu.memory_space<vmem>>, vector<1x8x32xf32>
    %138 = vector.shape_cast %137 : vector<1x8x32xf32> to vector<8x32xf32>
    %139 = arith.mulf %126, %117 : vector<8x32xf32>
    %140 = arith.addf %138, %139 : vector<8x32xf32>
    %141 = math.tanh %140 : vector<8x32xf32>
    %cst_82 = arith.constant 1.000000e+00 : f32
    %142 = vector.broadcast %cst_82 : f32 to vector<8x32xf32>
    %143 = arith.subf %142, %135 : vector<8x32xf32>
    %144 = arith.mulf %143, %141 : vector<8x32xf32>
    %145 = arith.mulf %135, %109 : vector<8x32xf32>
    %146 = arith.addf %144, %145 : vector<8x32xf32>
    %147 = arith.index_cast %c2_i32 : i32 to index
    %c0_83 = arith.constant 0 : index
    %c0_84 = arith.constant 0 : index
    %148 = vector.load %arg18[%147, %c0_83, %c0_84] : memref<8x8x32xf32, #tpu.memory_space<vmem>>, vector<1x8x32xf32>
    %149 = vector.shape_cast %148 : vector<1x8x32xf32> to vector<8x32xf32>
    %150 = vector.shape_cast %146 : vector<8x32xf32> to vector<1x8x32xf32>
    tpu.vector_store %arg18[%147, %c0_83, %c0_84], %150 {strides = array<i32>} : memref<8x8x32xf32, #tpu.memory_space<vmem>>, vector<1x8x32xf32>,
    %c3_i32 = arith.constant 3 : i32
    %cst_85 = arith.constant dense<0.000000e+00> : vector<8x32xf32>
    %151 = tpu.matmul %146, %30, %cst_85 {dimension_numbers = #tpu.dot_dimension_numbers<[1], [0], [0], [1], [0, 0, 1, 1], [], []>} : vector<8x32xf32>, vector<32x32xf32>, vector<8x32xf32> -> vector<8x32xf32>
    %cst_86 = arith.constant dense<0.000000e+00> : vector<8x32xf32>
    %152 = tpu.matmul %146, %32, %cst_86 {dimension_numbers = #tpu.dot_dimension_numbers<[1], [0], [0], [1], [0, 0, 1, 1], [], []>} : vector<8x32xf32>, vector<32x32xf32>, vector<8x32xf32> -> vector<8x32xf32>
    %cst_87 = arith.constant dense<0.000000e+00> : vector<8x32xf32>
    %153 = tpu.matmul %146, %34, %cst_87 {dimension_numbers = #tpu.dot_dimension_numbers<[1], [0], [0], [1], [0, 0, 1, 1], [], []>} : vector<8x32xf32>, vector<32x32xf32>, vector<8x32xf32> -> vector<8x32xf32>
    %154 = arith.addf %153, %37 : vector<8x32xf32>
    %155 = arith.index_cast %c3_i32 : i32 to index
    %c0_88 = arith.constant 0 : index
    %c0_89 = arith.constant 0 : index
    %156 = vector.load %arg15[%155, %c0_88, %c0_89] : memref<8x8x32xf32, #tpu.memory_space<vmem>>, vector<1x8x32xf32>
    %157 = vector.shape_cast %156 : vector<1x8x32xf32> to vector<8x32xf32>
    %158 = arith.addf %157, %151 : vector<8x32xf32>
    %159 = arith.negf %158 : vector<8x32xf32>
    %160 = math.exp %159 : vector<8x32xf32>
    %cst_90 = arith.constant 1.000000e+00 : f32
    %161 = vector.broadcast %cst_90 : f32 to vector<8x32xf32>
    %162 = arith.addf %161, %160 : vector<8x32xf32>
    %163 = arith.divf %161, %162 : vector<8x32xf32>
    %164 = arith.index_cast %c3_i32 : i32 to index
    %c0_91 = arith.constant 0 : index
    %c0_92 = arith.constant 0 : index
    %165 = vector.load %arg16[%164, %c0_91, %c0_92] : memref<8x8x32xf32, #tpu.memory_space<vmem>>, vector<1x8x32xf32>
    %166 = vector.shape_cast %165 : vector<1x8x32xf32> to vector<8x32xf32>
    %167 = arith.addf %166, %152 : vector<8x32xf32>
    %168 = arith.negf %167 : vector<8x32xf32>
    %169 = math.exp %168 : vector<8x32xf32>
    %cst_93 = arith.constant 1.000000e+00 : f32
    %170 = vector.broadcast %cst_93 : f32 to vector<8x32xf32>
    %171 = arith.addf %170, %169 : vector<8x32xf32>
    %172 = arith.divf %170, %171 : vector<8x32xf32>
    %173 = arith.index_cast %c3_i32 : i32 to index
    %c0_94 = arith.constant 0 : index
    %c0_95 = arith.constant 0 : index
    %174 = vector.load %arg17[%173, %c0_94, %c0_95] : memref<8x8x32xf32, #tpu.memory_space<vmem>>, vector<1x8x32xf32>
    %175 = vector.shape_cast %174 : vector<1x8x32xf32> to vector<8x32xf32>
    %176 = arith.mulf %163, %154 : vector<8x32xf32>
    %177 = arith.addf %175, %176 : vector<8x32xf32>
    %178 = math.tanh %177 : vector<8x32xf32>
    %cst_96 = arith.constant 1.000000e+00 : f32
    %179 = vector.broadcast %cst_96 : f32 to vector<8x32xf32>
    %180 = arith.subf %179, %172 : vector<8x32xf32>
    %181 = arith.mulf %180, %178 : vector<8x32xf32>
    %182 = arith.mulf %172, %146 : vector<8x32xf32>
    %183 = arith.addf %181, %182 : vector<8x32xf32>
    %184 = arith.index_cast %c3_i32 : i32 to index
    %c0_97 = arith.constant 0 : index
    %c0_98 = arith.constant 0 : index
    %185 = vector.load %arg18[%184, %c0_97, %c0_98] : memref<8x8x32xf32, #tpu.memory_space<vmem>>, vector<1x8x32xf32>
    %186 = vector.shape_cast %185 : vector<1x8x32xf32> to vector<8x32xf32>
    %187 = vector.shape_cast %183 : vector<8x32xf32> to vector<1x8x32xf32>
    tpu.vector_store %arg18[%184, %c0_97, %c0_98], %187 {strides = array<i32>} : memref<8x8x32xf32, #tpu.memory_space<vmem>>, vector<1x8x32xf32>,
    %c4_i32 = arith.constant 4 : i32
    %cst_99 = arith.constant dense<0.000000e+00> : vector<8x32xf32>
    %188 = tpu.matmul %183, %30, %cst_99 {dimension_numbers = #tpu.dot_dimension_numbers<[1], [0], [0], [1], [0, 0, 1, 1], [], []>} : vector<8x32xf32>, vector<32x32xf32>, vector<8x32xf32> -> vector<8x32xf32>
    %cst_100 = arith.constant dense<0.000000e+00> : vector<8x32xf32>
    %189 = tpu.matmul %183, %32, %cst_100 {dimension_numbers = #tpu.dot_dimension_numbers<[1], [0], [0], [1], [0, 0, 1, 1], [], []>} : vector<8x32xf32>, vector<32x32xf32>, vector<8x32xf32> -> vector<8x32xf32>
    %cst_101 = arith.constant dense<0.000000e+00> : vector<8x32xf32>
    %190 = tpu.matmul %183, %34, %cst_101 {dimension_numbers = #tpu.dot_dimension_numbers<[1], [0], [0], [1], [0, 0, 1, 1], [], []>} : vector<8x32xf32>, vector<32x32xf32>, vector<8x32xf32> -> vector<8x32xf32>
    %191 = arith.addf %190, %37 : vector<8x32xf32>
    %192 = arith.index_cast %c4_i32 : i32 to index
    %c0_102 = arith.constant 0 : index
    %c0_103 = arith.constant 0 : index
    %193 = vector.load %arg15[%192, %c0_102, %c0_103] : memref<8x8x32xf32, #tpu.memory_space<vmem>>, vector<1x8x32xf32>
    %194 = vector.shape_cast %193 : vector<1x8x32xf32> to vector<8x32xf32>
    %195 = arith.addf %194, %188 : vector<8x32xf32>
    %196 = arith.negf %195 : vector<8x32xf32>
    %197 = math.exp %196 : vector<8x32xf32>
    %cst_104 = arith.constant 1.000000e+00 : f32
    %198 = vector.broadcast %cst_104 : f32 to vector<8x32xf32>
    %199 = arith.addf %198, %197 : vector<8x32xf32>
    %200 = arith.divf %198, %199 : vector<8x32xf32>
    %201 = arith.index_cast %c4_i32 : i32 to index
    %c0_105 = arith.constant 0 : index
    %c0_106 = arith.constant 0 : index
    %202 = vector.load %arg16[%201, %c0_105, %c0_106] : memref<8x8x32xf32, #tpu.memory_space<vmem>>, vector<1x8x32xf32>
    %203 = vector.shape_cast %202 : vector<1x8x32xf32> to vector<8x32xf32>
    %204 = arith.addf %203, %189 : vector<8x32xf32>
    %205 = arith.negf %204 : vector<8x32xf32>
    %206 = math.exp %205 : vector<8x32xf32>
    %cst_107 = arith.constant 1.000000e+00 : f32
    %207 = vector.broadcast %cst_107 : f32 to vector<8x32xf32>
    %208 = arith.addf %207, %206 : vector<8x32xf32>
    %209 = arith.divf %207, %208 : vector<8x32xf32>
    %210 = arith.index_cast %c4_i32 : i32 to index
    %c0_108 = arith.constant 0 : index
    %c0_109 = arith.constant 0 : index
    %211 = vector.load %arg17[%210, %c0_108, %c0_109] : memref<8x8x32xf32, #tpu.memory_space<vmem>>, vector<1x8x32xf32>
    %212 = vector.shape_cast %211 : vector<1x8x32xf32> to vector<8x32xf32>
    %213 = arith.mulf %200, %191 : vector<8x32xf32>
    %214 = arith.addf %212, %213 : vector<8x32xf32>
    %215 = math.tanh %214 : vector<8x32xf32>
    %cst_110 = arith.constant 1.000000e+00 : f32
    %216 = vector.broadcast %cst_110 : f32 to vector<8x32xf32>
    %217 = arith.subf %216, %209 : vector<8x32xf32>
    %218 = arith.mulf %217, %215 : vector<8x32xf32>
    %219 = arith.mulf %209, %183 : vector<8x32xf32>
    %220 = arith.addf %218, %219 : vector<8x32xf32>
    %221 = arith.index_cast %c4_i32 : i32 to index
    %c0_111 = arith.constant 0 : index
    %c0_112 = arith.constant 0 : index
    %222 = vector.load %arg18[%221, %c0_111, %c0_112] : memref<8x8x32xf32, #tpu.memory_space<vmem>>, vector<1x8x32xf32>
    %223 = vector.shape_cast %222 : vector<1x8x32xf32> to vector<8x32xf32>
    %224 = vector.shape_cast %220 : vector<8x32xf32> to vector<1x8x32xf32>
    tpu.vector_store %arg18[%221, %c0_111, %c0_112], %224 {strides = array<i32>} : memref<8x8x32xf32, #tpu.memory_space<vmem>>, vector<1x8x32xf32>,
    %c5_i32 = arith.constant 5 : i32
    %cst_113 = arith.constant dense<0.000000e+00> : vector<8x32xf32>
    %225 = tpu.matmul %220, %30, %cst_113 {dimension_numbers = #tpu.dot_dimension_numbers<[1], [0], [0], [1], [0, 0, 1, 1], [], []>} : vector<8x32xf32>, vector<32x32xf32>, vector<8x32xf32> -> vector<8x32xf32>
    %cst_114 = arith.constant dense<0.000000e+00> : vector<8x32xf32>
    %226 = tpu.matmul %220, %32, %cst_114 {dimension_numbers = #tpu.dot_dimension_numbers<[1], [0], [0], [1], [0, 0, 1, 1], [], []>} : vector<8x32xf32>, vector<32x32xf32>, vector<8x32xf32> -> vector<8x32xf32>
    %cst_115 = arith.constant dense<0.000000e+00> : vector<8x32xf32>
    %227 = tpu.matmul %220, %34, %cst_115 {dimension_numbers = #tpu.dot_dimension_numbers<[1], [0], [0], [1], [0, 0, 1, 1], [], []>} : vector<8x32xf32>, vector<32x32xf32>, vector<8x32xf32> -> vector<8x32xf32>
    %228 = arith.addf %227, %37 : vector<8x32xf32>
    %229 = arith.index_cast %c5_i32 : i32 to index
    %c0_116 = arith.constant 0 : index
    %c0_117 = arith.constant 0 : index
    %230 = vector.load %arg15[%229, %c0_116, %c0_117] : memref<8x8x32xf32, #tpu.memory_space<vmem>>, vector<1x8x32xf32>
    %231 = vector.shape_cast %230 : vector<1x8x32xf32> to vector<8x32xf32>
    %232 = arith.addf %231, %225 : vector<8x32xf32>
    %233 = arith.negf %232 : vector<8x32xf32>
    %234 = math.exp %233 : vector<8x32xf32>
    %cst_118 = arith.constant 1.000000e+00 : f32
    %235 = vector.broadcast %cst_118 : f32 to vector<8x32xf32>
    %236 = arith.addf %235, %234 : vector<8x32xf32>
    %237 = arith.divf %235, %236 : vector<8x32xf32>
    %238 = arith.index_cast %c5_i32 : i32 to index
    %c0_119 = arith.constant 0 : index
    %c0_120 = arith.constant 0 : index
    %239 = vector.load %arg16[%238, %c0_119, %c0_120] : memref<8x8x32xf32, #tpu.memory_space<vmem>>, vector<1x8x32xf32>
    %240 = vector.shape_cast %239 : vector<1x8x32xf32> to vector<8x32xf32>
    %241 = arith.addf %240, %226 : vector<8x32xf32>
    %242 = arith.negf %241 : vector<8x32xf32>
    %243 = math.exp %242 : vector<8x32xf32>
    %cst_121 = arith.constant 1.000000e+00 : f32
    %244 = vector.broadcast %cst_121 : f32 to vector<8x32xf32>
    %245 = arith.addf %244, %243 : vector<8x32xf32>
    %246 = arith.divf %244, %245 : vector<8x32xf32>
    %247 = arith.index_cast %c5_i32 : i32 to index
    %c0_122 = arith.constant 0 : index
    %c0_123 = arith.constant 0 : index
    %248 = vector.load %arg17[%247, %c0_122, %c0_123] : memref<8x8x32xf32, #tpu.memory_space<vmem>>, vector<1x8x32xf32>
    %249 = vector.shape_cast %248 : vector<1x8x32xf32> to vector<8x32xf32>
    %250 = arith.mulf %237, %228 : vector<8x32xf32>
    %251 = arith.addf %249, %250 : vector<8x32xf32>
    %252 = math.tanh %251 : vector<8x32xf32>
    %cst_124 = arith.constant 1.000000e+00 : f32
    %253 = vector.broadcast %cst_124 : f32 to vector<8x32xf32>
    %254 = arith.subf %253, %246 : vector<8x32xf32>
    %255 = arith.mulf %254, %252 : vector<8x32xf32>
    %256 = arith.mulf %246, %220 : vector<8x32xf32>
    %257 = arith.addf %255, %256 : vector<8x32xf32>
    %258 = arith.index_cast %c5_i32 : i32 to index
    %c0_125 = arith.constant 0 : index
    %c0_126 = arith.constant 0 : index
    %259 = vector.load %arg18[%258, %c0_125, %c0_126] : memref<8x8x32xf32, #tpu.memory_space<vmem>>, vector<1x8x32xf32>
    %260 = vector.shape_cast %259 : vector<1x8x32xf32> to vector<8x32xf32>
    %261 = vector.shape_cast %257 : vector<8x32xf32> to vector<1x8x32xf32>
    tpu.vector_store %arg18[%258, %c0_125, %c0_126], %261 {strides = array<i32>} : memref<8x8x32xf32, #tpu.memory_space<vmem>>, vector<1x8x32xf32>,
    %c6_i32 = arith.constant 6 : i32
    %cst_127 = arith.constant dense<0.000000e+00> : vector<8x32xf32>
    %262 = tpu.matmul %257, %30, %cst_127 {dimension_numbers = #tpu.dot_dimension_numbers<[1], [0], [0], [1], [0, 0, 1, 1], [], []>} : vector<8x32xf32>, vector<32x32xf32>, vector<8x32xf32> -> vector<8x32xf32>
    %cst_128 = arith.constant dense<0.000000e+00> : vector<8x32xf32>
    %263 = tpu.matmul %257, %32, %cst_128 {dimension_numbers = #tpu.dot_dimension_numbers<[1], [0], [0], [1], [0, 0, 1, 1], [], []>} : vector<8x32xf32>, vector<32x32xf32>, vector<8x32xf32> -> vector<8x32xf32>
    %cst_129 = arith.constant dense<0.000000e+00> : vector<8x32xf32>
    %264 = tpu.matmul %257, %34, %cst_129 {dimension_numbers = #tpu.dot_dimension_numbers<[1], [0], [0], [1], [0, 0, 1, 1], [], []>} : vector<8x32xf32>, vector<32x32xf32>, vector<8x32xf32> -> vector<8x32xf32>
    %265 = arith.addf %264, %37 : vector<8x32xf32>
    %266 = arith.index_cast %c6_i32 : i32 to index
    %c0_130 = arith.constant 0 : index
    %c0_131 = arith.constant 0 : index
    %267 = vector.load %arg15[%266, %c0_130, %c0_131] : memref<8x8x32xf32, #tpu.memory_space<vmem>>, vector<1x8x32xf32>
    %268 = vector.shape_cast %267 : vector<1x8x32xf32> to vector<8x32xf32>
    %269 = arith.addf %268, %262 : vector<8x32xf32>
    %270 = arith.negf %269 : vector<8x32xf32>
    %271 = math.exp %270 : vector<8x32xf32>
    %cst_132 = arith.constant 1.000000e+00 : f32
    %272 = vector.broadcast %cst_132 : f32 to vector<8x32xf32>
    %273 = arith.addf %272, %271 : vector<8x32xf32>
    %274 = arith.divf %272, %273 : vector<8x32xf32>
    %275 = arith.index_cast %c6_i32 : i32 to index
    %c0_133 = arith.constant 0 : index
    %c0_134 = arith.constant 0 : index
    %276 = vector.load %arg16[%275, %c0_133, %c0_134] : memref<8x8x32xf32, #tpu.memory_space<vmem>>, vector<1x8x32xf32>
    %277 = vector.shape_cast %276 : vector<1x8x32xf32> to vector<8x32xf32>
    %278 = arith.addf %277, %263 : vector<8x32xf32>
    %279 = arith.negf %278 : vector<8x32xf32>
    %280 = math.exp %279 : vector<8x32xf32>
    %cst_135 = arith.constant 1.000000e+00 : f32
    %281 = vector.broadcast %cst_135 : f32 to vector<8x32xf32>
    %282 = arith.addf %281, %280 : vector<8x32xf32>
    %283 = arith.divf %281, %282 : vector<8x32xf32>
    %284 = arith.index_cast %c6_i32 : i32 to index
    %c0_136 = arith.constant 0 : index
    %c0_137 = arith.constant 0 : index
    %285 = vector.load %arg17[%284, %c0_136, %c0_137] : memref<8x8x32xf32, #tpu.memory_space<vmem>>, vector<1x8x32xf32>
    %286 = vector.shape_cast %285 : vector<1x8x32xf32> to vector<8x32xf32>
    %287 = arith.mulf %274, %265 : vector<8x32xf32>
    %288 = arith.addf %286, %287 : vector<8x32xf32>
    %289 = math.tanh %288 : vector<8x32xf32>
    %cst_138 = arith.constant 1.000000e+00 : f32
    %290 = vector.broadcast %cst_138 : f32 to vector<8x32xf32>
    %291 = arith.subf %290, %283 : vector<8x32xf32>
    %292 = arith.mulf %291, %289 : vector<8x32xf32>
    %293 = arith.mulf %283, %257 : vector<8x32xf32>
    %294 = arith.addf %292, %293 : vector<8x32xf32>
    %295 = arith.index_cast %c6_i32 : i32 to index
    %c0_139 = arith.constant 0 : index
    %c0_140 = arith.constant 0 : index
    %296 = vector.load %arg18[%295, %c0_139, %c0_140] : memref<8x8x32xf32, #tpu.memory_space<vmem>>, vector<1x8x32xf32>
    %297 = vector.shape_cast %296 : vector<1x8x32xf32> to vector<8x32xf32>
    %298 = vector.shape_cast %294 : vector<8x32xf32> to vector<1x8x32xf32>
    tpu.vector_store %arg18[%295, %c0_139, %c0_140], %298 {strides = array<i32>} : memref<8x8x32xf32, #tpu.memory_space<vmem>>, vector<1x8x32xf32>,
    %c7_i32 = arith.constant 7 : i32
    %cst_141 = arith.constant dense<0.000000e+00> : vector<8x32xf32>
    %299 = tpu.matmul %294, %30, %cst_141 {dimension_numbers = #tpu.dot_dimension_numbers<[1], [0], [0], [1], [0, 0, 1, 1], [], []>} : vector<8x32xf32>, vector<32x32xf32>, vector<8x32xf32> -> vector<8x32xf32>
    %cst_142 = arith.constant dense<0.000000e+00> : vector<8x32xf32>
    %300 = tpu.matmul %294, %32, %cst_142 {dimension_numbers = #tpu.dot_dimension_numbers<[1], [0], [0], [1], [0, 0, 1, 1], [], []>} : vector<8x32xf32>, vector<32x32xf32>, vector<8x32xf32> -> vector<8x32xf32>
    %cst_143 = arith.constant dense<0.000000e+00> : vector<8x32xf32>
    %301 = tpu.matmul %294, %34, %cst_143 {dimension_numbers = #tpu.dot_dimension_numbers<[1], [0], [0], [1], [0, 0, 1, 1], [], []>} : vector<8x32xf32>, vector<32x32xf32>, vector<8x32xf32> -> vector<8x32xf32>
    %302 = arith.addf %301, %37 : vector<8x32xf32>
    %303 = arith.index_cast %c7_i32 : i32 to index
    %c0_144 = arith.constant 0 : index
    %c0_145 = arith.constant 0 : index
    %304 = vector.load %arg15[%303, %c0_144, %c0_145] : memref<8x8x32xf32, #tpu.memory_space<vmem>>, vector<1x8x32xf32>
    %305 = vector.shape_cast %304 : vector<1x8x32xf32> to vector<8x32xf32>
    %306 = arith.addf %305, %299 : vector<8x32xf32>
    %307 = arith.negf %306 : vector<8x32xf32>
    %308 = math.exp %307 : vector<8x32xf32>
    %cst_146 = arith.constant 1.000000e+00 : f32
    %309 = vector.broadcast %cst_146 : f32 to vector<8x32xf32>
    %310 = arith.addf %309, %308 : vector<8x32xf32>
    %311 = arith.divf %309, %310 : vector<8x32xf32>
    %312 = arith.index_cast %c7_i32 : i32 to index
    %c0_147 = arith.constant 0 : index
    %c0_148 = arith.constant 0 : index
    %313 = vector.load %arg16[%312, %c0_147, %c0_148] : memref<8x8x32xf32, #tpu.memory_space<vmem>>, vector<1x8x32xf32>
    %314 = vector.shape_cast %313 : vector<1x8x32xf32> to vector<8x32xf32>
    %315 = arith.addf %314, %300 : vector<8x32xf32>
    %316 = arith.negf %315 : vector<8x32xf32>
    %317 = math.exp %316 : vector<8x32xf32>
    %cst_149 = arith.constant 1.000000e+00 : f32
    %318 = vector.broadcast %cst_149 : f32 to vector<8x32xf32>
    %319 = arith.addf %318, %317 : vector<8x32xf32>
    %320 = arith.divf %318, %319 : vector<8x32xf32>
    %321 = arith.index_cast %c7_i32 : i32 to index
    %c0_150 = arith.constant 0 : index
    %c0_151 = arith.constant 0 : index
    %322 = vector.load %arg17[%321, %c0_150, %c0_151] : memref<8x8x32xf32, #tpu.memory_space<vmem>>, vector<1x8x32xf32>
    %323 = vector.shape_cast %322 : vector<1x8x32xf32> to vector<8x32xf32>
    %324 = arith.mulf %311, %302 : vector<8x32xf32>
    %325 = arith.addf %323, %324 : vector<8x32xf32>
    %326 = math.tanh %325 : vector<8x32xf32>
    %cst_152 = arith.constant 1.000000e+00 : f32
    %327 = vector.broadcast %cst_152 : f32 to vector<8x32xf32>
    %328 = arith.subf %327, %320 : vector<8x32xf32>
    %329 = arith.mulf %328, %326 : vector<8x32xf32>
    %330 = arith.mulf %320, %294 : vector<8x32xf32>
    %331 = arith.addf %329, %330 : vector<8x32xf32>
    %332 = arith.index_cast %c7_i32 : i32 to index
    %c0_153 = arith.constant 0 : index
    %c0_154 = arith.constant 0 : index
    %333 = vector.load %arg18[%332, %c0_153, %c0_154] : memref<8x8x32xf32, #tpu.memory_space<vmem>>, vector<1x8x32xf32>
    %334 = vector.shape_cast %333 : vector<1x8x32xf32> to vector<8x32xf32>
    %335 = vector.shape_cast %331 : vector<8x32xf32> to vector<1x8x32xf32>
    tpu.vector_store %arg18[%332, %c0_153, %c0_154], %335 {strides = array<i32>} : memref<8x8x32xf32, #tpu.memory_space<vmem>>, vector<1x8x32xf32>,
    %c8_i32 = arith.constant 8 : i32
    %c0_155 = arith.constant 0 : index
    %c0_156 = arith.constant 0 : index
    %c0_157 = arith.constant 0 : index
    %336 = vector.load %arg14[%c0_155, %c0_156, %c0_157] : memref<2x8x32xf32, #tpu.memory_space<vmem>>, vector<1x8x32xf32>
    %337 = vector.shape_cast %336 : vector<1x8x32xf32> to vector<8x32xf32>
    %338 = vector.shape_cast %331 : vector<8x32xf32> to vector<1x8x32xf32>
    tpu.vector_store %arg14[%c0_155, %c0_156, %c0_157], %338 {strides = array<i32>} : memref<2x8x32xf32, #tpu.memory_space<vmem>>, vector<1x8x32xf32>,
    %c0_158 = arith.constant 0 : index
    %c0_159 = arith.constant 0 : index
    %c0_160 = arith.constant 0 : index
    %339 = vector.load %arg18[%c0_158, %c0_159, %c0_160] : memref<8x8x32xf32, #tpu.memory_space<vmem>>, vector<8x8x32xf32>
    %340 = vector.shape_cast %339 : vector<8x8x32xf32> to vector<64x32xf32>
    %c0_161 = arith.constant 0 : index
    %c0_162 = arith.constant 0 : index
    %c0_163 = arith.constant 0 : index
    %341 = vector.load %arg7[%c0_161, %c0_162, %c0_163] : memref<3x32x32xf32, #tpu.memory_space<vmem>>, vector<1x32x32xf32>
    %342 = vector.shape_cast %341 : vector<1x32x32xf32> to vector<32x32xf32>
    %cst_164 = arith.constant dense<0.000000e+00> : vector<64x32xf32>
    %343 = tpu.matmul %340, %342, %cst_164 {dimension_numbers = #tpu.dot_dimension_numbers<[1], [0], [0], [1], [0, 0, 1, 1], [], []>} : vector<64x32xf32>, vector<32x32xf32>, vector<64x32xf32> -> vector<64x32xf32>
    %c0_165 = arith.constant 0 : index
    %c0_166 = arith.constant 0 : index
    %c0_167 = arith.constant 0 : index
    %344 = vector.load %arg9[%c0_165, %c0_166, %c0_167] : memref<3x1x32xf32, #tpu.memory_space<vmem>>, vector<1x1x32xf32>
    %345 = vector.shape_cast %344 : vector<1x1x32xf32> to vector<1x32xf32>
    %346 = vector.broadcast %345 : vector<1x32xf32> to vector<64x32xf32>
    %347 = arith.addf %343, %346 : vector<64x32xf32>
    %348 = vector.shape_cast %347 : vector<64x32xf32> to vector<8x8x32xf32>
    %c0_168 = arith.constant 0 : index
    %c0_169 = arith.constant 0 : index
    %c0_170 = arith.constant 0 : index
    %349 = vector.load %arg15[%c0_168, %c0_169, %c0_170] : memref<8x8x32xf32, #tpu.memory_space<vmem>>, vector<8x8x32xf32>
    tpu.vector_store %arg15[%c0_168, %c0_169, %c0_170], %348 {strides = array<i32>} : memref<8x8x32xf32, #tpu.memory_space<vmem>>, vector<8x8x32xf32>,
    %c1_171 = arith.constant 1 : index
    %c0_172 = arith.constant 0 : index
    %c0_173 = arith.constant 0 : index
    %350 = vector.load %arg7[%c1_171, %c0_172, %c0_173] : memref<3x32x32xf32, #tpu.memory_space<vmem>>, vector<1x32x32xf32>
    %351 = vector.shape_cast %350 : vector<1x32x32xf32> to vector<32x32xf32>
    %cst_174 = arith.constant dense<0.000000e+00> : vector<64x32xf32>
    %352 = tpu.matmul %340, %351, %cst_174 {dimension_numbers = #tpu.dot_dimension_numbers<[1], [0], [0], [1], [0, 0, 1, 1], [], []>} : vector<64x32xf32>, vector<32x32xf32>, vector<64x32xf32> -> vector<64x32xf32>
    %c1_175 = arith.constant 1 : index
    %c0_176 = arith.constant 0 : index
    %c0_177 = arith.constant 0 : index
    %353 = vector.load %arg9[%c1_175, %c0_176, %c0_177] : memref<3x1x32xf32, #tpu.memory_space<vmem>>, vector<1x1x32xf32>
    %354 = vector.shape_cast %353 : vector<1x1x32xf32> to vector<1x32xf32>
    %355 = vector.broadcast %354 : vector<1x32xf32> to vector<64x32xf32>
    %356 = arith.addf %352, %355 : vector<64x32xf32>
    %357 = vector.shape_cast %356 : vector<64x32xf32> to vector<8x8x32xf32>
    %c0_178 = arith.constant 0 : index
    %c0_179 = arith.constant 0 : index
    %c0_180 = arith.constant 0 : index
    %358 = vector.load %arg16[%c0_178, %c0_179, %c0_180] : memref<8x8x32xf32, #tpu.memory_space<vmem>>, vector<8x8x32xf32>
    tpu.vector_store %arg16[%c0_178, %c0_179, %c0_180], %357 {strides = array<i32>} : memref<8x8x32xf32, #tpu.memory_space<vmem>>, vector<8x8x32xf32>,
    %c2_181 = arith.constant 2 : index
    %c0_182 = arith.constant 0 : index
    %c0_183 = arith.constant 0 : index
    %359 = vector.load %arg7[%c2_181, %c0_182, %c0_183] : memref<3x32x32xf32, #tpu.memory_space<vmem>>, vector<1x32x32xf32>
    %360 = vector.shape_cast %359 : vector<1x32x32xf32> to vector<32x32xf32>
    %cst_184 = arith.constant dense<0.000000e+00> : vector<64x32xf32>
    %361 = tpu.matmul %340, %360, %cst_184 {dimension_numbers = #tpu.dot_dimension_numbers<[1], [0], [0], [1], [0, 0, 1, 1], [], []>} : vector<64x32xf32>, vector<32x32xf32>, vector<64x32xf32> -> vector<64x32xf32>
    %c2_185 = arith.constant 2 : index
    %c0_186 = arith.constant 0 : index
    %c0_187 = arith.constant 0 : index
    %362 = vector.load %arg9[%c2_185, %c0_186, %c0_187] : memref<3x1x32xf32, #tpu.memory_space<vmem>>, vector<1x1x32xf32>
    %363 = vector.shape_cast %362 : vector<1x1x32xf32> to vector<1x32xf32>
    %364 = vector.broadcast %363 : vector<1x32xf32> to vector<64x32xf32>
    %365 = arith.addf %361, %364 : vector<64x32xf32>
    %366 = vector.shape_cast %365 : vector<64x32xf32> to vector<8x8x32xf32>
    %c0_188 = arith.constant 0 : index
    %c0_189 = arith.constant 0 : index
    %c0_190 = arith.constant 0 : index
    %367 = vector.load %arg17[%c0_188, %c0_189, %c0_190] : memref<8x8x32xf32, #tpu.memory_space<vmem>>, vector<8x8x32xf32>
    tpu.vector_store %arg17[%c0_188, %c0_189, %c0_190], %366 {strides = array<i32>} : memref<8x8x32xf32, #tpu.memory_space<vmem>>, vector<8x8x32xf32>,
    %c0_191 = arith.constant 0 : index
    %c0_192 = arith.constant 0 : index
    %c0_193 = arith.constant 0 : index
    %368 = vector.load %arg8[%c0_191, %c0_192, %c0_193] : memref<3x32x32xf32, #tpu.memory_space<vmem>>, vector<1x32x32xf32>
    %369 = vector.shape_cast %368 : vector<1x32x32xf32> to vector<32x32xf32>
    %c1_194 = arith.constant 1 : index
    %c0_195 = arith.constant 0 : index
    %c0_196 = arith.constant 0 : index
    %370 = vector.load %arg8[%c1_194, %c0_195, %c0_196] : memref<3x32x32xf32, #tpu.memory_space<vmem>>, vector<1x32x32xf32>
    %371 = vector.shape_cast %370 : vector<1x32x32xf32> to vector<32x32xf32>
    %c2_197 = arith.constant 2 : index
    %c0_198 = arith.constant 0 : index
    %c0_199 = arith.constant 0 : index
    %372 = vector.load %arg8[%c2_197, %c0_198, %c0_199] : memref<3x32x32xf32, #tpu.memory_space<vmem>>, vector<1x32x32xf32>
    %373 = vector.shape_cast %372 : vector<1x32x32xf32> to vector<32x32xf32>
    %c0_200 = arith.constant 0 : index
    %c0_201 = arith.constant 0 : index
    %374 = vector.load %arg10[%c0_200, %c0_201] : memref<1x32xf32, #tpu.memory_space<vmem>>, vector<1x32xf32>
    %375 = vector.shape_cast %374 : vector<1x32xf32> to vector<1x32xf32>
    %376 = vector.broadcast %375 : vector<1x32xf32> to vector<8x32xf32>
    %c1_202 = arith.constant 1 : index
    %c0_203 = arith.constant 0 : index
    %c0_204 = arith.constant 0 : index
    %377 = vector.load %arg2[%c1_202, %c0_203, %c0_204] : memref<2x8x32xf32, #tpu.memory_space<vmem>>, vector<1x8x32xf32>
    %378 = vector.shape_cast %377 : vector<1x8x32xf32> to vector<8x32xf32>
    %c0_i32_205 = arith.constant 0 : i32
    %cst_206 = arith.constant dense<0.000000e+00> : vector<8x32xf32>
    %379 = tpu.matmul %378, %369, %cst_206 {dimension_numbers = #tpu.dot_dimension_numbers<[1], [0], [0], [1], [0, 0, 1, 1], [], []>} : vector<8x32xf32>, vector<32x32xf32>, vector<8x32xf32> -> vector<8x32xf32>
    %cst_207 = arith.constant dense<0.000000e+00> : vector<8x32xf32>
    %380 = tpu.matmul %378, %371, %cst_207 {dimension_numbers = #tpu.dot_dimension_numbers<[1], [0], [0], [1], [0, 0, 1, 1], [], []>} : vector<8x32xf32>, vector<32x32xf32>, vector<8x32xf32> -> vector<8x32xf32>
    %cst_208 = arith.constant dense<0.000000e+00> : vector<8x32xf32>
    %381 = tpu.matmul %378, %373, %cst_208 {dimension_numbers = #tpu.dot_dimension_numbers<[1], [0], [0], [1], [0, 0, 1, 1], [], []>} : vector<8x32xf32>, vector<32x32xf32>, vector<8x32xf32> -> vector<8x32xf32>
    %382 = arith.addf %381, %376 : vector<8x32xf32>
    %383 = arith.index_cast %c0_i32_205 : i32 to index
    %c0_209 = arith.constant 0 : index
    %c0_210 = arith.constant 0 : index
    %384 = vector.load %arg15[%383, %c0_209, %c0_210] : memref<8x8x32xf32, #tpu.memory_space<vmem>>, vector<1x8x32xf32>
    %385 = vector.shape_cast %384 : vector<1x8x32xf32> to vector<8x32xf32>
    %386 = arith.addf %385, %379 : vector<8x32xf32>
    %387 = arith.negf %386 : vector<8x32xf32>
    %388 = math.exp %387 : vector<8x32xf32>
    %cst_211 = arith.constant 1.000000e+00 : f32
    %389 = vector.broadcast %cst_211 : f32 to vector<8x32xf32>
    %390 = arith.addf %389, %388 : vector<8x32xf32>
    %391 = arith.divf %389, %390 : vector<8x32xf32>
    %392 = arith.index_cast %c0_i32_205 : i32 to index
    %c0_212 = arith.constant 0 : index
    %c0_213 = arith.constant 0 : index
    %393 = vector.load %arg16[%392, %c0_212, %c0_213] : memref<8x8x32xf32, #tpu.memory_space<vmem>>, vector<1x8x32xf32>
    %394 = vector.shape_cast %393 : vector<1x8x32xf32> to vector<8x32xf32>
    %395 = arith.addf %394, %380 : vector<8x32xf32>
    %396 = arith.negf %395 : vector<8x32xf32>
    %397 = math.exp %396 : vector<8x32xf32>
    %cst_214 = arith.constant 1.000000e+00 : f32
    %398 = vector.broadcast %cst_214 : f32 to vector<8x32xf32>
    %399 = arith.addf %398, %397 : vector<8x32xf32>
    %400 = arith.divf %398, %399 : vector<8x32xf32>
    %401 = arith.index_cast %c0_i32_205 : i32 to index
    %c0_215 = arith.constant 0 : index
    %c0_216 = arith.constant 0 : index
    %402 = vector.load %arg17[%401, %c0_215, %c0_216] : memref<8x8x32xf32, #tpu.memory_space<vmem>>, vector<1x8x32xf32>
    %403 = vector.shape_cast %402 : vector<1x8x32xf32> to vector<8x32xf32>
    %404 = arith.mulf %391, %382 : vector<8x32xf32>
    %405 = arith.addf %403, %404 : vector<8x32xf32>
    %406 = math.tanh %405 : vector<8x32xf32>
    %cst_217 = arith.constant 1.000000e+00 : f32
    %407 = vector.broadcast %cst_217 : f32 to vector<8x32xf32>
    %408 = arith.subf %407, %400 : vector<8x32xf32>
    %409 = arith.mulf %408, %406 : vector<8x32xf32>
    %410 = arith.mulf %400, %378 : vector<8x32xf32>
    %411 = arith.addf %409, %410 : vector<8x32xf32>
    %412 = arith.index_cast %c0_i32_205 : i32 to index
    %c0_218 = arith.constant 0 : index
    %c0_219 = arith.constant 0 : index
    %413 = vector.load %arg18[%412, %c0_218, %c0_219] : memref<8x8x32xf32, #tpu.memory_space<vmem>>, vector<1x8x32xf32>
    %414 = vector.shape_cast %413 : vector<1x8x32xf32> to vector<8x32xf32>
    %415 = vector.shape_cast %411 : vector<8x32xf32> to vector<1x8x32xf32>
    tpu.vector_store %arg18[%412, %c0_218, %c0_219], %415 {strides = array<i32>} : memref<8x8x32xf32, #tpu.memory_space<vmem>>, vector<1x8x32xf32>,
    %c1_i32_220 = arith.constant 1 : i32
    %cst_221 = arith.constant dense<0.000000e+00> : vector<8x32xf32>
    %416 = tpu.matmul %411, %369, %cst_221 {dimension_numbers = #tpu.dot_dimension_numbers<[1], [0], [0], [1], [0, 0, 1, 1], [], []>} : vector<8x32xf32>, vector<32x32xf32>, vector<8x32xf32> -> vector<8x32xf32>
    %cst_222 = arith.constant dense<0.000000e+00> : vector<8x32xf32>
    %417 = tpu.matmul %411, %371, %cst_222 {dimension_numbers = #tpu.dot_dimension_numbers<[1], [0], [0], [1], [0, 0, 1, 1], [], []>} : vector<8x32xf32>, vector<32x32xf32>, vector<8x32xf32> -> vector<8x32xf32>
    %cst_223 = arith.constant dense<0.000000e+00> : vector<8x32xf32>
    %418 = tpu.matmul %411, %373, %cst_223 {dimension_numbers = #tpu.dot_dimension_numbers<[1], [0], [0], [1], [0, 0, 1, 1], [], []>} : vector<8x32xf32>, vector<32x32xf32>, vector<8x32xf32> -> vector<8x32xf32>
    %419 = arith.addf %418, %376 : vector<8x32xf32>
    %420 = arith.index_cast %c1_i32_220 : i32 to index
    %c0_224 = arith.constant 0 : index
    %c0_225 = arith.constant 0 : index
    %421 = vector.load %arg15[%420, %c0_224, %c0_225] : memref<8x8x32xf32, #tpu.memory_space<vmem>>, vector<1x8x32xf32>
    %422 = vector.shape_cast %421 : vector<1x8x32xf32> to vector<8x32xf32>
    %423 = arith.addf %422, %416 : vector<8x32xf32>
    %424 = arith.negf %423 : vector<8x32xf32>
    %425 = math.exp %424 : vector<8x32xf32>
    %cst_226 = arith.constant 1.000000e+00 : f32
    %426 = vector.broadcast %cst_226 : f32 to vector<8x32xf32>
    %427 = arith.addf %426, %425 : vector<8x32xf32>
    %428 = arith.divf %426, %427 : vector<8x32xf32>
    %429 = arith.index_cast %c1_i32_220 : i32 to index
    %c0_227 = arith.constant 0 : index
    %c0_228 = arith.constant 0 : index
    %430 = vector.load %arg16[%429, %c0_227, %c0_228] : memref<8x8x32xf32, #tpu.memory_space<vmem>>, vector<1x8x32xf32>
    %431 = vector.shape_cast %430 : vector<1x8x32xf32> to vector<8x32xf32>
    %432 = arith.addf %431, %417 : vector<8x32xf32>
    %433 = arith.negf %432 : vector<8x32xf32>
    %434 = math.exp %433 : vector<8x32xf32>
    %cst_229 = arith.constant 1.000000e+00 : f32
    %435 = vector.broadcast %cst_229 : f32 to vector<8x32xf32>
    %436 = arith.addf %435, %434 : vector<8x32xf32>
    %437 = arith.divf %435, %436 : vector<8x32xf32>
    %438 = arith.index_cast %c1_i32_220 : i32 to index
    %c0_230 = arith.constant 0 : index
    %c0_231 = arith.constant 0 : index
    %439 = vector.load %arg17[%438, %c0_230, %c0_231] : memref<8x8x32xf32, #tpu.memory_space<vmem>>, vector<1x8x32xf32>
    %440 = vector.shape_cast %439 : vector<1x8x32xf32> to vector<8x32xf32>
    %441 = arith.mulf %428, %419 : vector<8x32xf32>
    %442 = arith.addf %440, %441 : vector<8x32xf32>
    %443 = math.tanh %442 : vector<8x32xf32>
    %cst_232 = arith.constant 1.000000e+00 : f32
    %444 = vector.broadcast %cst_232 : f32 to vector<8x32xf32>
    %445 = arith.subf %444, %437 : vector<8x32xf32>
    %446 = arith.mulf %445, %443 : vector<8x32xf32>
    %447 = arith.mulf %437, %411 : vector<8x32xf32>
    %448 = arith.addf %446, %447 : vector<8x32xf32>
    %449 = arith.index_cast %c1_i32_220 : i32 to index
    %c0_233 = arith.constant 0 : index
    %c0_234 = arith.constant 0 : index
    %450 = vector.load %arg18[%449, %c0_233, %c0_234] : memref<8x8x32xf32, #tpu.memory_space<vmem>>, vector<1x8x32xf32>
    %451 = vector.shape_cast %450 : vector<1x8x32xf32> to vector<8x32xf32>
    %452 = vector.shape_cast %448 : vector<8x32xf32> to vector<1x8x32xf32>
    tpu.vector_store %arg18[%449, %c0_233, %c0_234], %452 {strides = array<i32>} : memref<8x8x32xf32, #tpu.memory_space<vmem>>, vector<1x8x32xf32>,
    %c2_i32_235 = arith.constant 2 : i32
    %cst_236 = arith.constant dense<0.000000e+00> : vector<8x32xf32>
    %453 = tpu.matmul %448, %369, %cst_236 {dimension_numbers = #tpu.dot_dimension_numbers<[1], [0], [0], [1], [0, 0, 1, 1], [], []>} : vector<8x32xf32>, vector<32x32xf32>, vector<8x32xf32> -> vector<8x32xf32>
    %cst_237 = arith.constant dense<0.000000e+00> : vector<8x32xf32>
    %454 = tpu.matmul %448, %371, %cst_237 {dimension_numbers = #tpu.dot_dimension_numbers<[1], [0], [0], [1], [0, 0, 1, 1], [], []>} : vector<8x32xf32>, vector<32x32xf32>, vector<8x32xf32> -> vector<8x32xf32>
    %cst_238 = arith.constant dense<0.000000e+00> : vector<8x32xf32>
    %455 = tpu.matmul %448, %373, %cst_238 {dimension_numbers = #tpu.dot_dimension_numbers<[1], [0], [0], [1], [0, 0, 1, 1], [], []>} : vector<8x32xf32>, vector<32x32xf32>, vector<8x32xf32> -> vector<8x32xf32>
    %456 = arith.addf %455, %376 : vector<8x32xf32>
    %457 = arith.index_cast %c2_i32_235 : i32 to index
    %c0_239 = arith.constant 0 : index
    %c0_240 = arith.constant 0 : index
    %458 = vector.load %arg15[%457, %c0_239, %c0_240] : memref<8x8x32xf32, #tpu.memory_space<vmem>>, vector<1x8x32xf32>
    %459 = vector.shape_cast %458 : vector<1x8x32xf32> to vector<8x32xf32>
    %460 = arith.addf %459, %453 : vector<8x32xf32>
    %461 = arith.negf %460 : vector<8x32xf32>
    %462 = math.exp %461 : vector<8x32xf32>
    %cst_241 = arith.constant 1.000000e+00 : f32
    %463 = vector.broadcast %cst_241 : f32 to vector<8x32xf32>
    %464 = arith.addf %463, %462 : vector<8x32xf32>
    %465 = arith.divf %463, %464 : vector<8x32xf32>
    %466 = arith.index_cast %c2_i32_235 : i32 to index
    %c0_242 = arith.constant 0 : index
    %c0_243 = arith.constant 0 : index
    %467 = vector.load %arg16[%466, %c0_242, %c0_243] : memref<8x8x32xf32, #tpu.memory_space<vmem>>, vector<1x8x32xf32>
    %468 = vector.shape_cast %467 : vector<1x8x32xf32> to vector<8x32xf32>
    %469 = arith.addf %468, %454 : vector<8x32xf32>
    %470 = arith.negf %469 : vector<8x32xf32>
    %471 = math.exp %470 : vector<8x32xf32>
    %cst_244 = arith.constant 1.000000e+00 : f32
    %472 = vector.broadcast %cst_244 : f32 to vector<8x32xf32>
    %473 = arith.addf %472, %471 : vector<8x32xf32>
    %474 = arith.divf %472, %473 : vector<8x32xf32>
    %475 = arith.index_cast %c2_i32_235 : i32 to index
    %c0_245 = arith.constant 0 : index
    %c0_246 = arith.constant 0 : index
    %476 = vector.load %arg17[%475, %c0_245, %c0_246] : memref<8x8x32xf32, #tpu.memory_space<vmem>>, vector<1x8x32xf32>
    %477 = vector.shape_cast %476 : vector<1x8x32xf32> to vector<8x32xf32>
    %478 = arith.mulf %465, %456 : vector<8x32xf32>
    %479 = arith.addf %477, %478 : vector<8x32xf32>
    %480 = math.tanh %479 : vector<8x32xf32>
    %cst_247 = arith.constant 1.000000e+00 : f32
    %481 = vector.broadcast %cst_247 : f32 to vector<8x32xf32>
    %482 = arith.subf %481, %474 : vector<8x32xf32>
    %483 = arith.mulf %482, %480 : vector<8x32xf32>
    %484 = arith.mulf %474, %448 : vector<8x32xf32>
    %485 = arith.addf %483, %484 : vector<8x32xf32>
    %486 = arith.index_cast %c2_i32_235 : i32 to index
    %c0_248 = arith.constant 0 : index
    %c0_249 = arith.constant 0 : index
    %487 = vector.load %arg18[%486, %c0_248, %c0_249] : memref<8x8x32xf32, #tpu.memory_space<vmem>>, vector<1x8x32xf32>
    %488 = vector.shape_cast %487 : vector<1x8x32xf32> to vector<8x32xf32>
    %489 = vector.shape_cast %485 : vector<8x32xf32> to vector<1x8x32xf32>
    tpu.vector_store %arg18[%486, %c0_248, %c0_249], %489 {strides = array<i32>} : memref<8x8x32xf32, #tpu.memory_space<vmem>>, vector<1x8x32xf32>,
    %c3_i32_250 = arith.constant 3 : i32
    %cst_251 = arith.constant dense<0.000000e+00> : vector<8x32xf32>
    %490 = tpu.matmul %485, %369, %cst_251 {dimension_numbers = #tpu.dot_dimension_numbers<[1], [0], [0], [1], [0, 0, 1, 1], [], []>} : vector<8x32xf32>, vector<32x32xf32>, vector<8x32xf32> -> vector<8x32xf32>
    %cst_252 = arith.constant dense<0.000000e+00> : vector<8x32xf32>
    %491 = tpu.matmul %485, %371, %cst_252 {dimension_numbers = #tpu.dot_dimension_numbers<[1], [0], [0], [1], [0, 0, 1, 1], [], []>} : vector<8x32xf32>, vector<32x32xf32>, vector<8x32xf32> -> vector<8x32xf32>
    %cst_253 = arith.constant dense<0.000000e+00> : vector<8x32xf32>
    %492 = tpu.matmul %485, %373, %cst_253 {dimension_numbers = #tpu.dot_dimension_numbers<[1], [0], [0], [1], [0, 0, 1, 1], [], []>} : vector<8x32xf32>, vector<32x32xf32>, vector<8x32xf32> -> vector<8x32xf32>
    %493 = arith.addf %492, %376 : vector<8x32xf32>
    %494 = arith.index_cast %c3_i32_250 : i32 to index
    %c0_254 = arith.constant 0 : index
    %c0_255 = arith.constant 0 : index
    %495 = vector.load %arg15[%494, %c0_254, %c0_255] : memref<8x8x32xf32, #tpu.memory_space<vmem>>, vector<1x8x32xf32>
    %496 = vector.shape_cast %495 : vector<1x8x32xf32> to vector<8x32xf32>
    %497 = arith.addf %496, %490 : vector<8x32xf32>
    %498 = arith.negf %497 : vector<8x32xf32>
    %499 = math.exp %498 : vector<8x32xf32>
    %cst_256 = arith.constant 1.000000e+00 : f32
    %500 = vector.broadcast %cst_256 : f32 to vector<8x32xf32>
    %501 = arith.addf %500, %499 : vector<8x32xf32>
    %502 = arith.divf %500, %501 : vector<8x32xf32>
    %503 = arith.index_cast %c3_i32_250 : i32 to index
    %c0_257 = arith.constant 0 : index
    %c0_258 = arith.constant 0 : index
    %504 = vector.load %arg16[%503, %c0_257, %c0_258] : memref<8x8x32xf32, #tpu.memory_space<vmem>>, vector<1x8x32xf32>
    %505 = vector.shape_cast %504 : vector<1x8x32xf32> to vector<8x32xf32>
    %506 = arith.addf %505, %491 : vector<8x32xf32>
    %507 = arith.negf %506 : vector<8x32xf32>
    %508 = math.exp %507 : vector<8x32xf32>
    %cst_259 = arith.constant 1.000000e+00 : f32
    %509 = vector.broadcast %cst_259 : f32 to vector<8x32xf32>
    %510 = arith.addf %509, %508 : vector<8x32xf32>
    %511 = arith.divf %509, %510 : vector<8x32xf32>
    %512 = arith.index_cast %c3_i32_250 : i32 to index
    %c0_260 = arith.constant 0 : index
    %c0_261 = arith.constant 0 : index
    %513 = vector.load %arg17[%512, %c0_260, %c0_261] : memref<8x8x32xf32, #tpu.memory_space<vmem>>, vector<1x8x32xf32>
    %514 = vector.shape_cast %513 : vector<1x8x32xf32> to vector<8x32xf32>
    %515 = arith.mulf %502, %493 : vector<8x32xf32>
    %516 = arith.addf %514, %515 : vector<8x32xf32>
    %517 = math.tanh %516 : vector<8x32xf32>
    %cst_262 = arith.constant 1.000000e+00 : f32
    %518 = vector.broadcast %cst_262 : f32 to vector<8x32xf32>
    %519 = arith.subf %518, %511 : vector<8x32xf32>
    %520 = arith.mulf %519, %517 : vector<8x32xf32>
    %521 = arith.mulf %511, %485 : vector<8x32xf32>
    %522 = arith.addf %520, %521 : vector<8x32xf32>
    %523 = arith.index_cast %c3_i32_250 : i32 to index
    %c0_263 = arith.constant 0 : index
    %c0_264 = arith.constant 0 : index
    %524 = vector.load %arg18[%523, %c0_263, %c0_264] : memref<8x8x32xf32, #tpu.memory_space<vmem>>, vector<1x8x32xf32>
    %525 = vector.shape_cast %524 : vector<1x8x32xf32> to vector<8x32xf32>
    %526 = vector.shape_cast %522 : vector<8x32xf32> to vector<1x8x32xf32>
    tpu.vector_store %arg18[%523, %c0_263, %c0_264], %526 {strides = array<i32>} : memref<8x8x32xf32, #tpu.memory_space<vmem>>, vector<1x8x32xf32>,
    %c4_i32_265 = arith.constant 4 : i32
    %cst_266 = arith.constant dense<0.000000e+00> : vector<8x32xf32>
    %527 = tpu.matmul %522, %369, %cst_266 {dimension_numbers = #tpu.dot_dimension_numbers<[1], [0], [0], [1], [0, 0, 1, 1], [], []>} : vector<8x32xf32>, vector<32x32xf32>, vector<8x32xf32> -> vector<8x32xf32>
    %cst_267 = arith.constant dense<0.000000e+00> : vector<8x32xf32>
    %528 = tpu.matmul %522, %371, %cst_267 {dimension_numbers = #tpu.dot_dimension_numbers<[1], [0], [0], [1], [0, 0, 1, 1], [], []>} : vector<8x32xf32>, vector<32x32xf32>, vector<8x32xf32> -> vector<8x32xf32>
    %cst_268 = arith.constant dense<0.000000e+00> : vector<8x32xf32>
    %529 = tpu.matmul %522, %373, %cst_268 {dimension_numbers = #tpu.dot_dimension_numbers<[1], [0], [0], [1], [0, 0, 1, 1], [], []>} : vector<8x32xf32>, vector<32x32xf32>, vector<8x32xf32> -> vector<8x32xf32>
    %530 = arith.addf %529, %376 : vector<8x32xf32>
    %531 = arith.index_cast %c4_i32_265 : i32 to index
    %c0_269 = arith.constant 0 : index
    %c0_270 = arith.constant 0 : index
    %532 = vector.load %arg15[%531, %c0_269, %c0_270] : memref<8x8x32xf32, #tpu.memory_space<vmem>>, vector<1x8x32xf32>
    %533 = vector.shape_cast %532 : vector<1x8x32xf32> to vector<8x32xf32>
    %534 = arith.addf %533, %527 : vector<8x32xf32>
    %535 = arith.negf %534 : vector<8x32xf32>
    %536 = math.exp %535 : vector<8x32xf32>
    %cst_271 = arith.constant 1.000000e+00 : f32
    %537 = vector.broadcast %cst_271 : f32 to vector<8x32xf32>
    %538 = arith.addf %537, %536 : vector<8x32xf32>
    %539 = arith.divf %537, %538 : vector<8x32xf32>
    %540 = arith.index_cast %c4_i32_265 : i32 to index
    %c0_272 = arith.constant 0 : index
    %c0_273 = arith.constant 0 : index
    %541 = vector.load %arg16[%540, %c0_272, %c0_273] : memref<8x8x32xf32, #tpu.memory_space<vmem>>, vector<1x8x32xf32>
    %542 = vector.shape_cast %541 : vector<1x8x32xf32> to vector<8x32xf32>
    %543 = arith.addf %542, %528 : vector<8x32xf32>
    %544 = arith.negf %543 : vector<8x32xf32>
    %545 = math.exp %544 : vector<8x32xf32>
    %cst_274 = arith.constant 1.000000e+00 : f32
    %546 = vector.broadcast %cst_274 : f32 to vector<8x32xf32>
    %547 = arith.addf %546, %545 : vector<8x32xf32>
    %548 = arith.divf %546, %547 : vector<8x32xf32>
    %549 = arith.index_cast %c4_i32_265 : i32 to index
    %c0_275 = arith.constant 0 : index
    %c0_276 = arith.constant 0 : index
    %550 = vector.load %arg17[%549, %c0_275, %c0_276] : memref<8x8x32xf32, #tpu.memory_space<vmem>>, vector<1x8x32xf32>
    %551 = vector.shape_cast %550 : vector<1x8x32xf32> to vector<8x32xf32>
    %552 = arith.mulf %539, %530 : vector<8x32xf32>
    %553 = arith.addf %551, %552 : vector<8x32xf32>
    %554 = math.tanh %553 : vector<8x32xf32>
    %cst_277 = arith.constant 1.000000e+00 : f32
    %555 = vector.broadcast %cst_277 : f32 to vector<8x32xf32>
    %556 = arith.subf %555, %548 : vector<8x32xf32>
    %557 = arith.mulf %556, %554 : vector<8x32xf32>
    %558 = arith.mulf %548, %522 : vector<8x32xf32>
    %559 = arith.addf %557, %558 : vector<8x32xf32>
    %560 = arith.index_cast %c4_i32_265 : i32 to index
    %c0_278 = arith.constant 0 : index
    %c0_279 = arith.constant 0 : index
    %561 = vector.load %arg18[%560, %c0_278, %c0_279] : memref<8x8x32xf32, #tpu.memory_space<vmem>>, vector<1x8x32xf32>
    %562 = vector.shape_cast %561 : vector<1x8x32xf32> to vector<8x32xf32>
    %563 = vector.shape_cast %559 : vector<8x32xf32> to vector<1x8x32xf32>
    tpu.vector_store %arg18[%560, %c0_278, %c0_279], %563 {strides = array<i32>} : memref<8x8x32xf32, #tpu.memory_space<vmem>>, vector<1x8x32xf32>,
    %c5_i32_280 = arith.constant 5 : i32
    %cst_281 = arith.constant dense<0.000000e+00> : vector<8x32xf32>
    %564 = tpu.matmul %559, %369, %cst_281 {dimension_numbers = #tpu.dot_dimension_numbers<[1], [0], [0], [1], [0, 0, 1, 1], [], []>} : vector<8x32xf32>, vector<32x32xf32>, vector<8x32xf32> -> vector<8x32xf32>
    %cst_282 = arith.constant dense<0.000000e+00> : vector<8x32xf32>
    %565 = tpu.matmul %559, %371, %cst_282 {dimension_numbers = #tpu.dot_dimension_numbers<[1], [0], [0], [1], [0, 0, 1, 1], [], []>} : vector<8x32xf32>, vector<32x32xf32>, vector<8x32xf32> -> vector<8x32xf32>
    %cst_283 = arith.constant dense<0.000000e+00> : vector<8x32xf32>
    %566 = tpu.matmul %559, %373, %cst_283 {dimension_numbers = #tpu.dot_dimension_numbers<[1], [0], [0], [1], [0, 0, 1, 1], [], []>} : vector<8x32xf32>, vector<32x32xf32>, vector<8x32xf32> -> vector<8x32xf32>
    %567 = arith.addf %566, %376 : vector<8x32xf32>
    %568 = arith.index_cast %c5_i32_280 : i32 to index
    %c0_284 = arith.constant 0 : index
    %c0_285 = arith.constant 0 : index
    %569 = vector.load %arg15[%568, %c0_284, %c0_285] : memref<8x8x32xf32, #tpu.memory_space<vmem>>, vector<1x8x32xf32>
    %570 = vector.shape_cast %569 : vector<1x8x32xf32> to vector<8x32xf32>
    %571 = arith.addf %570, %564 : vector<8x32xf32>
    %572 = arith.negf %571 : vector<8x32xf32>
    %573 = math.exp %572 : vector<8x32xf32>
    %cst_286 = arith.constant 1.000000e+00 : f32
    %574 = vector.broadcast %cst_286 : f32 to vector<8x32xf32>
    %575 = arith.addf %574, %573 : vector<8x32xf32>
    %576 = arith.divf %574, %575 : vector<8x32xf32>
    %577 = arith.index_cast %c5_i32_280 : i32 to index
    %c0_287 = arith.constant 0 : index
    %c0_288 = arith.constant 0 : index
    %578 = vector.load %arg16[%577, %c0_287, %c0_288] : memref<8x8x32xf32, #tpu.memory_space<vmem>>, vector<1x8x32xf32>
    %579 = vector.shape_cast %578 : vector<1x8x32xf32> to vector<8x32xf32>
    %580 = arith.addf %579, %565 : vector<8x32xf32>
    %581 = arith.negf %580 : vector<8x32xf32>
    %582 = math.exp %581 : vector<8x32xf32>
    %cst_289 = arith.constant 1.000000e+00 : f32
    %583 = vector.broadcast %cst_289 : f32 to vector<8x32xf32>
    %584 = arith.addf %583, %582 : vector<8x32xf32>
    %585 = arith.divf %583, %584 : vector<8x32xf32>
    %586 = arith.index_cast %c5_i32_280 : i32 to index
    %c0_290 = arith.constant 0 : index
    %c0_291 = arith.constant 0 : index
    %587 = vector.load %arg17[%586, %c0_290, %c0_291] : memref<8x8x32xf32, #tpu.memory_space<vmem>>, vector<1x8x32xf32>
    %588 = vector.shape_cast %587 : vector<1x8x32xf32> to vector<8x32xf32>
    %589 = arith.mulf %576, %567 : vector<8x32xf32>
    %590 = arith.addf %588, %589 : vector<8x32xf32>
    %591 = math.tanh %590 : vector<8x32xf32>
    %cst_292 = arith.constant 1.000000e+00 : f32
    %592 = vector.broadcast %cst_292 : f32 to vector<8x32xf32>
    %593 = arith.subf %592, %585 : vector<8x32xf32>
    %594 = arith.mulf %593, %591 : vector<8x32xf32>
    %595 = arith.mulf %585, %559 : vector<8x32xf32>
    %596 = arith.addf %594, %595 : vector<8x32xf32>
    %597 = arith.index_cast %c5_i32_280 : i32 to index
    %c0_293 = arith.constant 0 : index
    %c0_294 = arith.constant 0 : index
    %598 = vector.load %arg18[%597, %c0_293, %c0_294] : memref<8x8x32xf32, #tpu.memory_space<vmem>>, vector<1x8x32xf32>
    %599 = vector.shape_cast %598 : vector<1x8x32xf32> to vector<8x32xf32>
    %600 = vector.shape_cast %596 : vector<8x32xf32> to vector<1x8x32xf32>
    tpu.vector_store %arg18[%597, %c0_293, %c0_294], %600 {strides = array<i32>} : memref<8x8x32xf32, #tpu.memory_space<vmem>>, vector<1x8x32xf32>,
    %c6_i32_295 = arith.constant 6 : i32
    %cst_296 = arith.constant dense<0.000000e+00> : vector<8x32xf32>
    %601 = tpu.matmul %596, %369, %cst_296 {dimension_numbers = #tpu.dot_dimension_numbers<[1], [0], [0], [1], [0, 0, 1, 1], [], []>} : vector<8x32xf32>, vector<32x32xf32>, vector<8x32xf32> -> vector<8x32xf32>
    %cst_297 = arith.constant dense<0.000000e+00> : vector<8x32xf32>
    %602 = tpu.matmul %596, %371, %cst_297 {dimension_numbers = #tpu.dot_dimension_numbers<[1], [0], [0], [1], [0, 0, 1, 1], [], []>} : vector<8x32xf32>, vector<32x32xf32>, vector<8x32xf32> -> vector<8x32xf32>
    %cst_298 = arith.constant dense<0.000000e+00> : vector<8x32xf32>
    %603 = tpu.matmul %596, %373, %cst_298 {dimension_numbers = #tpu.dot_dimension_numbers<[1], [0], [0], [1], [0, 0, 1, 1], [], []>} : vector<8x32xf32>, vector<32x32xf32>, vector<8x32xf32> -> vector<8x32xf32>
    %604 = arith.addf %603, %376 : vector<8x32xf32>
    %605 = arith.index_cast %c6_i32_295 : i32 to index
    %c0_299 = arith.constant 0 : index
    %c0_300 = arith.constant 0 : index
    %606 = vector.load %arg15[%605, %c0_299, %c0_300] : memref<8x8x32xf32, #tpu.memory_space<vmem>>, vector<1x8x32xf32>
    %607 = vector.shape_cast %606 : vector<1x8x32xf32> to vector<8x32xf32>
    %608 = arith.addf %607, %601 : vector<8x32xf32>
    %609 = arith.negf %608 : vector<8x32xf32>
    %610 = math.exp %609 : vector<8x32xf32>
    %cst_301 = arith.constant 1.000000e+00 : f32
    %611 = vector.broadcast %cst_301 : f32 to vector<8x32xf32>
    %612 = arith.addf %611, %610 : vector<8x32xf32>
    %613 = arith.divf %611, %612 : vector<8x32xf32>
    %614 = arith.index_cast %c6_i32_295 : i32 to index
    %c0_302 = arith.constant 0 : index
    %c0_303 = arith.constant 0 : index
    %615 = vector.load %arg16[%614, %c0_302, %c0_303] : memref<8x8x32xf32, #tpu.memory_space<vmem>>, vector<1x8x32xf32>
    %616 = vector.shape_cast %615 : vector<1x8x32xf32> to vector<8x32xf32>
    %617 = arith.addf %616, %602 : vector<8x32xf32>
    %618 = arith.negf %617 : vector<8x32xf32>
    %619 = math.exp %618 : vector<8x32xf32>
    %cst_304 = arith.constant 1.000000e+00 : f32
    %620 = vector.broadcast %cst_304 : f32 to vector<8x32xf32>
    %621 = arith.addf %620, %619 : vector<8x32xf32>
    %622 = arith.divf %620, %621 : vector<8x32xf32>
    %623 = arith.index_cast %c6_i32_295 : i32 to index
    %c0_305 = arith.constant 0 : index
    %c0_306 = arith.constant 0 : index
    %624 = vector.load %arg17[%623, %c0_305, %c0_306] : memref<8x8x32xf32, #tpu.memory_space<vmem>>, vector<1x8x32xf32>
    %625 = vector.shape_cast %624 : vector<1x8x32xf32> to vector<8x32xf32>
    %626 = arith.mulf %613, %604 : vector<8x32xf32>
    %627 = arith.addf %625, %626 : vector<8x32xf32>
    %628 = math.tanh %627 : vector<8x32xf32>
    %cst_307 = arith.constant 1.000000e+00 : f32
    %629 = vector.broadcast %cst_307 : f32 to vector<8x32xf32>
    %630 = arith.subf %629, %622 : vector<8x32xf32>
    %631 = arith.mulf %630, %628 : vector<8x32xf32>
    %632 = arith.mulf %622, %596 : vector<8x32xf32>
    %633 = arith.addf %631, %632 : vector<8x32xf32>
    %634 = arith.index_cast %c6_i32_295 : i32 to index
    %c0_308 = arith.constant 0 : index
    %c0_309 = arith.constant 0 : index
    %635 = vector.load %arg18[%634, %c0_308, %c0_309] : memref<8x8x32xf32, #tpu.memory_space<vmem>>, vector<1x8x32xf32>
    %636 = vector.shape_cast %635 : vector<1x8x32xf32> to vector<8x32xf32>
    %637 = vector.shape_cast %633 : vector<8x32xf32> to vector<1x8x32xf32>
    tpu.vector_store %arg18[%634, %c0_308, %c0_309], %637 {strides = array<i32>} : memref<8x8x32xf32, #tpu.memory_space<vmem>>, vector<1x8x32xf32>,
    %c7_i32_310 = arith.constant 7 : i32
    %cst_311 = arith.constant dense<0.000000e+00> : vector<8x32xf32>
    %638 = tpu.matmul %633, %369, %cst_311 {dimension_numbers = #tpu.dot_dimension_numbers<[1], [0], [0], [1], [0, 0, 1, 1], [], []>} : vector<8x32xf32>, vector<32x32xf32>, vector<8x32xf32> -> vector<8x32xf32>
    %cst_312 = arith.constant dense<0.000000e+00> : vector<8x32xf32>
    %639 = tpu.matmul %633, %371, %cst_312 {dimension_numbers = #tpu.dot_dimension_numbers<[1], [0], [0], [1], [0, 0, 1, 1], [], []>} : vector<8x32xf32>, vector<32x32xf32>, vector<8x32xf32> -> vector<8x32xf32>
    %cst_313 = arith.constant dense<0.000000e+00> : vector<8x32xf32>
    %640 = tpu.matmul %633, %373, %cst_313 {dimension_numbers = #tpu.dot_dimension_numbers<[1], [0], [0], [1], [0, 0, 1, 1], [], []>} : vector<8x32xf32>, vector<32x32xf32>, vector<8x32xf32> -> vector<8x32xf32>
    %641 = arith.addf %640, %376 : vector<8x32xf32>
    %642 = arith.index_cast %c7_i32_310 : i32 to index
    %c0_314 = arith.constant 0 : index
    %c0_315 = arith.constant 0 : index
    %643 = vector.load %arg15[%642, %c0_314, %c0_315] : memref<8x8x32xf32, #tpu.memory_space<vmem>>, vector<1x8x32xf32>
    %644 = vector.shape_cast %643 : vector<1x8x32xf32> to vector<8x32xf32>
    %645 = arith.addf %644, %638 : vector<8x32xf32>
    %646 = arith.negf %645 : vector<8x32xf32>
    %647 = math.exp %646 : vector<8x32xf32>
    %cst_316 = arith.constant 1.000000e+00 : f32
    %648 = vector.broadcast %cst_316 : f32 to vector<8x32xf32>
    %649 = arith.addf %648, %647 : vector<8x32xf32>
    %650 = arith.divf %648, %649 : vector<8x32xf32>
    %651 = arith.index_cast %c7_i32_310 : i32 to index
    %c0_317 = arith.constant 0 : index
    %c0_318 = arith.constant 0 : index
    %652 = vector.load %arg16[%651, %c0_317, %c0_318] : memref<8x8x32xf32, #tpu.memory_space<vmem>>, vector<1x8x32xf32>
    %653 = vector.shape_cast %652 : vector<1x8x32xf32> to vector<8x32xf32>
    %654 = arith.addf %653, %639 : vector<8x32xf32>
    %655 = arith.negf %654 : vector<8x32xf32>
    %656 = math.exp %655 : vector<8x32xf32>
    %cst_319 = arith.constant 1.000000e+00 : f32
    %657 = vector.broadcast %cst_319 : f32 to vector<8x32xf32>
    %658 = arith.addf %657, %656 : vector<8x32xf32>
    %659 = arith.divf %657, %658 : vector<8x32xf32>
    %660 = arith.index_cast %c7_i32_310 : i32 to index
    %c0_320 = arith.constant 0 : index
    %c0_321 = arith.constant 0 : index
    %661 = vector.load %arg17[%660, %c0_320, %c0_321] : memref<8x8x32xf32, #tpu.memory_space<vmem>>, vector<1x8x32xf32>
    %662 = vector.shape_cast %661 : vector<1x8x32xf32> to vector<8x32xf32>
    %663 = arith.mulf %650, %641 : vector<8x32xf32>
    %664 = arith.addf %662, %663 : vector<8x32xf32>
    %665 = math.tanh %664 : vector<8x32xf32>
    %cst_322 = arith.constant 1.000000e+00 : f32
    %666 = vector.broadcast %cst_322 : f32 to vector<8x32xf32>
    %667 = arith.subf %666, %659 : vector<8x32xf32>
    %668 = arith.mulf %667, %665 : vector<8x32xf32>
    %669 = arith.mulf %659, %633 : vector<8x32xf32>
    %670 = arith.addf %668, %669 : vector<8x32xf32>
    %671 = arith.index_cast %c7_i32_310 : i32 to index
    %c0_323 = arith.constant 0 : index
    %c0_324 = arith.constant 0 : index
    %672 = vector.load %arg18[%671, %c0_323, %c0_324] : memref<8x8x32xf32, #tpu.memory_space<vmem>>, vector<1x8x32xf32>
    %673 = vector.shape_cast %672 : vector<1x8x32xf32> to vector<8x32xf32>
    %674 = vector.shape_cast %670 : vector<8x32xf32> to vector<1x8x32xf32>
    tpu.vector_store %arg18[%671, %c0_323, %c0_324], %674 {strides = array<i32>} : memref<8x8x32xf32, #tpu.memory_space<vmem>>, vector<1x8x32xf32>,
    %c8_i32_325 = arith.constant 8 : i32
    %c1_326 = arith.constant 1 : index
    %c0_327 = arith.constant 0 : index
    %c0_328 = arith.constant 0 : index
    %675 = vector.load %arg14[%c1_326, %c0_327, %c0_328] : memref<2x8x32xf32, #tpu.memory_space<vmem>>, vector<1x8x32xf32>
    %676 = vector.shape_cast %675 : vector<1x8x32xf32> to vector<8x32xf32>
    %677 = vector.shape_cast %670 : vector<8x32xf32> to vector<1x8x32xf32>
    tpu.vector_store %arg14[%c1_326, %c0_327, %c0_328], %677 {strides = array<i32>} : memref<2x8x32xf32, #tpu.memory_space<vmem>>, vector<1x8x32xf32>,
    %c0_329 = arith.constant 0 : index
    %c0_330 = arith.constant 0 : index
    %678 = vector.load %arg11[%c0_329, %c0_330] : memref<1x32xf32, #tpu.memory_space<vmem>>, vector<1x32xf32>
    %c0_331 = arith.constant 0 : index
    %c0_332 = arith.constant 0 : index
    %c0_333 = arith.constant 0 : index
    %679 = vector.load %arg18[%c0_331, %c0_332, %c0_333] : memref<8x8x32xf32, #tpu.memory_space<vmem>>, vector<8x8x32xf32>
    %680 = vector.shape_cast %678 : vector<1x32xf32> to vector<1x1x32xf32>
    %681 = vector.broadcast %680 : vector<1x1x32xf32> to vector<8x8x32xf32>
    %682 = arith.mulf %679, %681 : vector<8x8x32xf32>
    %cst_334 = arith.constant dense<0.000000e+00> : vector<8x8xf32>
    %683 = vector.multi_reduction <add>, %682, %cst_334 [2] : vector<8x8x32xf32> to vector<8x8xf32>
    %c0_335 = arith.constant 0 : index
    %c0_336 = arith.constant 0 : index
    %684 = vector.load %arg12[%c0_335, %c0_336] : memref<1x1xf32, #tpu.memory_space<vmem>>, vector<1x1xf32>
    %685 = vector.broadcast %684 : vector<1x1xf32> to vector<8x8xf32>
    %686 = arith.addf %683, %685 : vector<8x8xf32>
    %687 = tpu.transpose %686, [1, 0] : vector<8x8xf32> -> vector<8x8xf32>
    %c0_337 = arith.constant 0 : index
    %c0_338 = arith.constant 0 : index
    %688 = vector.load %arg13[%c0_337, %c0_338] : memref<8x8xf32, #tpu.memory_space<vmem>>, vector<8x8xf32>
    tpu.vector_store %arg13[%c0_337, %c0_338], %687 {strides = array<i32>} : memref<8x8xf32, #tpu.memory_space<vmem>>, vector<8x8xf32>,
    return
  }
  func.func @transform_0(%arg0: i32) -> (i32, i32, i32) {
    %c0_i32 = arith.constant 0 : i32
    %c0_i32_0 = arith.constant 0 : i32
    %c0_i32_1 = arith.constant 0 : i32
    %c0_i32_2 = arith.constant 0 : i32
    return %c0_i32, %c0_i32_0, %c0_i32_1 : i32, i32, i32
  }
  func.func @transform_1(%arg0: i32) -> (i32, i32, i32) {
    %c0_i32 = arith.constant 0 : i32
    %c0_i32_0 = arith.constant 0 : i32
    %c0_i32_1 = arith.constant 0 : i32
    %c0_i32_2 = arith.constant 0 : i32
    return %c0_i32, %c0_i32_0, %c0_i32_1 : i32, i32, i32
  }
  func.func @transform_2(%arg0: i32) -> (i32, i32, i32) {
    %c0_i32 = arith.constant 0 : i32
    %c0_i32_0 = arith.constant 0 : i32
    %c0_i32_1 = arith.constant 0 : i32
    %c0_i32_2 = arith.constant 0 : i32
    return %c0_i32, %c0_i32_0, %c0_i32_1 : i32, i32, i32
  }
  func.func @transform_3(%arg0: i32) -> (i32, i32, i32) {
    %c0_i32 = arith.constant 0 : i32
    %c0_i32_0 = arith.constant 0 : i32
    %c0_i32_1 = arith.constant 0 : i32
    %c0_i32_2 = arith.constant 0 : i32
    return %c0_i32, %c0_i32_0, %c0_i32_1 : i32, i32, i32
  }
  func.func @transform_4(%arg0: i32) -> (i32, i32, i32) {
    %c0_i32 = arith.constant 0 : i32
    %c0_i32_0 = arith.constant 0 : i32
    %c0_i32_1 = arith.constant 0 : i32
    %c0_i32_2 = arith.constant 0 : i32
    return %c0_i32, %c0_i32_0, %c0_i32_1 : i32, i32, i32
  }
  func.func @transform_5(%arg0: i32) -> (i32, i32) {
    %c0_i32 = arith.constant 0 : i32
    %c0_i32_0 = arith.constant 0 : i32
    %c0_i32_1 = arith.constant 0 : i32
    return %c0_i32, %c0_i32_0 : i32, i32
  }
  func.func @transform_6(%arg0: i32) -> (i32, i32, i32) {
    %c0_i32 = arith.constant 0 : i32
    %c0_i32_0 = arith.constant 0 : i32
    %c0_i32_1 = arith.constant 0 : i32
    %c0_i32_2 = arith.constant 0 : i32
    return %c0_i32, %c0_i32_0, %c0_i32_1 : i32, i32, i32
  }
  func.func @transform_7(%arg0: i32) -> (i32, i32, i32) {
    %c0_i32 = arith.constant 0 : i32
    %c0_i32_0 = arith.constant 0 : i32
    %c0_i32_1 = arith.constant 0 : i32
    %c0_i32_2 = arith.constant 0 : i32
    return %c0_i32, %c0_i32_0, %c0_i32_1 : i32, i32, i32
  }
  func.func @transform_8(%arg0: i32) -> (i32, i32, i32) {
    %c0_i32 = arith.constant 0 : i32
    %c0_i32_0 = arith.constant 0 : i32
    %c0_i32_1 = arith.constant 0 : i32
    %c0_i32_2 = arith.constant 0 : i32
    return %c0_i32, %c0_i32_0, %c0_i32_1 : i32, i32, i32
  }
  func.func @transform_9(%arg0: i32) -> (i32, i32) {
    %c0_i32 = arith.constant 0 : i32
    %c0_i32_0 = arith.constant 0 : i32
    %c0_i32_1 = arith.constant 0 : i32
    return %c0_i32, %c0_i32_0 : i32, i32
  }
  func.func @transform_10(%arg0: i32) -> (i32, i32) {
    %c0_i32 = arith.constant 0 : i32
    %c0_i32_0 = arith.constant 0 : i32
    %c0_i32_1 = arith.constant 0 : i32
    return %c0_i32, %c0_i32_0 : i32, i32
  }
  func.func @transform_11(%arg0: i32) -> (i32, i32) {
    %c0_i32 = arith.constant 0 : i32
    %c0_i32_0 = arith.constant 0 : i32
    %c0_i32_1 = arith.constant 0 : i32
    return %c0_i32, %c0_i32_0 : i32, i32
  }
  func.func @transform_12(%arg0: i32) -> (i32, i32) {
    %c0_i32 = arith.constant 0 : i32
    %c0_i32_0 = arith.constant 0 : i32
    %c0_i32_1 = arith.constant 0 : i32
    return %c0_i32, %c0_i32_0 : i32, i32
  }
  func.func @transform_13(%arg0: i32) -> (i32, i32, i32) {
    %c0_i32 = arith.constant 0 : i32
    %c0_i32_0 = arith.constant 0 : i32
    %c0_i32_1 = arith.constant 0 : i32
    %c0_i32_2 = arith.constant 0 : i32
    return %c0_i32, %c0_i32_0, %c0_i32_1 : i32, i32, i32
  }
}

</mosaic_0001>

<bundles_post_ra>
// kernel: gru_layer_forward.1
= control target key start
LH: loop header
LB: loop body
LE: loop exit
PB: predicated region body
PF: predicated region fallthrough
CT: control target
= control target key end

     0   :  { %s7374_s0 = inlined_call_operand.vmem [shape: f32[8,8,4], index: 0, kind: input, shape index: {}]   ;;  %s7375_s1 = inlined_call_operand.vmem [shape: f32[2,8,32], index: 1, kind: input, shape index: {}]   ;;  %s7376_s2 = inlined_call_operand.vmem [shape: f32[3,4,32], index: 2, kind: input, shape index: {}]   ;;  %s7377_s3 = inlined_call_operand.vmem [shape: f32[3,32,32], index: 3, kind: input, shape index: {}]   ;;  %s7378_s4 = inlined_call_operand.vmem [shape: f32[3,1,32], index: 4, kind: input, shape index: {}]   ;;  %s7379_s5 = inlined_call_operand.vmem [shape: f32[1,32], index: 5, kind: input, shape index: {}]   ;;  %s7380_s6 = inlined_call_operand.hbm [shape: f32[3,32,32], index: 6, kind: input, shape index: {}]   ;;  %s7381_s7 = inlined_call_operand.hbm [shape: f32[3,32,32], index: 7, kind: input, shape index: {}]   ;;  %s7382_s8 = inlined_call_operand.vmem [shape: f32[3,1,32], index: 8, kind: input, shape index: {}]   ;;  %s7383_s9 = inlined_call_operand.vmem [shape: f32[1,32], index: 9, kind: input, shape index: {}]   ;;  %s7384_s10 = inlined_call_operand.vmem [shape: f32[1,32], index: 10, kind: input, shape index: {}]   ;;  %s7385_s11 = inlined_call_operand.<no memory space> [shape: f32[1,1], index: 11, kind: input, shape index: {}]   ;;  %s7386_s12 = inlined_call_operand.vmem [shape: f32[8,8], index: 12, kind: output, shape index: {0}]   ;;  %s7387_s13 = inlined_call_operand.vmem [shape: f32[2,8,32], index: 13, kind: output, shape index: {1}]  }
   0x1   :  { %v19_v0 = vstv %s7385_s11 }
   0x2   :  { %20 = vst [vmem:[#allocation6] sm:$0x1] %v19_v0 }
   0x3   :  { %21 = vsyncpa [#allocation8], 0 }
   0x4   :  { %22 = vsyncpa [#allocation10], 0  ;;  %s6561_s27 = smov [#allocation7]   ;;  %s6513_s14 = scalar_lea.hbm %s7380_s6, 1536 }
   0x5   :  { %s40_s28 = sshll.u32 %s6561_s27, 4  ;;  %p6514_p0 = scmp.ne.s32.totalorder %s7380_s6, %s6513_s14  ;;  %s41_s28 = int_to_ptr.vmem [resolvable:$true] %s40_s28 }
   0x6   :  { %p6517_p1 = scmp.lt.u32.totalorder %s6513_s14, %s7380_s6 }
   0x8   :  { %p6519_p2 = pnand %p6517_p1, %p6514_p0 }
   0xa   :  { %6522 = shalt.err (!%p6519_p2)
}
   0xb   :  { %s6523_s11 = scalar_lea.vmem %s41_s28, 1536  ;;  %p6528_p4 = scmp.lt.s32.totalorder %s41_s28, %s41_s28 }
   0xc   :  { %p6524_p3 = scmp.ne.s32.totalorder %s41_s28, %s6523_s11  ;;  %p6529_p5 = scmp.lt.s32.totalorder %s6523_s11, %s6523_s11 }
   0xe   :  { %p6530_p6 = por %p6529_p5, %p6528_p4 }
  0x10   :  { %p6531_p7 = pnand %p6530_p6, %p6524_p3 }
  0x12   :  { %6534 = shalt.err (!%p6531_p7)
}
  0x13   :  { %s6562_s19 = smov 128   ;;  %s6563_s20 = smov 8  }
  0x14   :  { %46 = dma.hbm_to_vmem [thread:$0]  %s7380_s6, 1536, %s41_s28, [#allocation8], %s6562_s19, %s6562_s19, %s6563_s20  }
  0x15   :  { %s6564_s23 = smov [#allocation9]   ;;  %s6535_s27 = scalar_lea.hbm %s7381_s7, 1536 }
  0x16   :  { %s52_s24 = sshll.u32 %s6564_s23, 4  ;;  %p6536_p8 = scmp.ne.s32.totalorder %s7381_s7, %s6535_s27  ;;  %s53_s24 = int_to_ptr.vmem [resolvable:$true] %s52_s24 }
  0x17   :  { %p6539_p9 = scmp.lt.u32.totalorder %s6535_s27, %s7381_s7 }
  0x19   :  { %p6541_p10 = pnand %p6539_p9, %p6536_p8 }
  0x1b   :  { %6544 = shalt.err (!%p6541_p10)
}
  0x1c   :  { %s6545_s16 = scalar_lea.vmem %s53_s24, 1536  ;;  %p6550_p12 = scmp.lt.s32.totalorder %s53_s24, %s53_s24 }
  0x1d   :  { %p6546_p11 = scmp.ne.s32.totalorder %s53_s24, %s6545_s16  ;;  %p6551_p13 = scmp.lt.s32.totalorder %s6545_s16, %s6545_s16 }
  0x1f   :  { %p6552_p0 = por %p6551_p13, %p6550_p12 }
  0x21   :  { %p6553_p1 = pnand %p6552_p0, %p6546_p11 }
  0x23   :  { %6556 = shalt.err (!%p6553_p1)
}
  0x24   :  { %58 = dma.hbm_to_vmem [thread:$0]  %s7381_s7, 1536, %s53_s24, [#allocation10], %s6562_s19, %s6562_s19, %s6563_s20  }
  0x25   :  { %6557 = dma.done.wait [#allocation8], 1536  }
  0x26   :  { %6558 = vsyncadd [#allocation8], 4294965760 }
  0x27   :  { %6559 = dma.done.wait [#allocation10], 1536  }
  0x28   :  { %6560 = vsyncadd [#allocation10], 4294965760  ;;  %vm114_vm0 = vcmask 1043456   ;;  %vm89_vm1 = vcmask 31744   ;;  %v4952_v1 = vld [vmem:[%s7376_s2 + $0x4] sm:$0xf] }
  0x29   :  { %v73_v2 = vld [vmem:[%s7374_s0] sm:$0xff]  ;;  %v6675_v3 = vld [vmem:[%s7374_s0 + $0x8] sm:$0xff]  ;;  %5416 = vmatprep.subr.msk.mxu1 %vm114_vm0, %v4952_v1  ;;  %v75_v8 = vld [vmem:[%s7374_s0 + $0x10] sm:$0xff]  ;;  %v6565_v9 = vmov 0.0|0.0   ;;  %vm6566_vm2 = vmmov 0   ;;  %v6567_v21 = vmov 0.0  }
  0x2a   :  { %5418 = vmatprep.mubr.msk.f32.mxu1 %vm89_vm1, %v73_v2  ;;  %v484_v4 = vld [vmem:[%s7377_s3] sm:$0xff]  ;;  %v485_v5 = vld [vmem:[%s7377_s3 + $0x8] sm:$0xff]  ;;  %5417 = vmatpush3.msk.msra.mxu1 %vm114_vm0, %v4952_v1  ;;  %v486_v10 = vld [vmem:[%s7377_s3 + $0x10] sm:$0xff]  ;;  %vm223_vm3 = vcmask 261120   ;;  %vm4883_vm4 = vcmask 1041409   ;;  %vm4885_vm5 = vcmask 1042434  }
  0x2b   :  { %v81_v6 = vld [vmem:[%s7376_s2] sm:$0xf]  ;;  %v6689_v7 = vpack.c.bf16 %v485_v5, %v484_v4  ;;  %5419 = vmatmul.mubr.msk.f32.vlgmr.msra.gmra.mrb[0].mxu1 %vm89_vm1, %v6675_v3  ;;  %6032 = vmatprep.subr.bf16.mxu1 %v6565_v9  ;;  %v487_v11 = vld [vmem:[%s7377_s3 + $0x18] sm:$0xff]  ;;  %v4964_v14 = vld [vmem:[%s7376_s2 + $0x8] sm:$0xf]  ;;  %vm4887_vm6 = vcmask 1043459  }
  0x2c   :  { %5402 = vmatprep.subr.msk.mxu0 %vm114_vm0, %v81_v6  ;;  %5421 = vmatprep.mubr.msk.f32.mxu1 %vm89_vm1, %v75_v8  ;;  %v76_v12 = vld [vmem:[%s7374_s0 + $0x18] sm:$0xff]  ;;  %v6709_v13 = vpack.c.bf16 %v487_v11, %v486_v10  ;;  %v77_v15 = vld [vmem:[%s7374_s0 + $0x20] sm:$0xff]  ;;  %v78_v16 = vld [vmem:[%s7374_s0 + $0x28] sm:$0xff]  ;;  %vm4889_vm7 = vcmask 1044484   ;;  %vm4891_vm8 = vcmask 1045509   ;;  %vm4893_vm9 = vcmask 1046534  }
  0x2d   :  { %6034 = vmatpush3.bf16.msra.mxu1 %v6689_v7  ;;  %5403 = vmatpush3.msk.msra.mxu0 %vm114_vm0, %v81_v6  ;;  %v79_v17 = vld [vmem:[%s7374_s0 + $0x30] sm:$0xff]  ;;  %v80_v18 = vld [vmem:[%s7374_s0 + $0x38] sm:$0xff]  ;;  %v4976_v19 = vld [vmem:[%s7377_s3 + $0x20] sm:$0xff]  ;;  %vm4895_vm10 = vcmask 1047559   ;;  %vm4930_vm11 = vcmask 64512  }
  0x2e   :  { %5404 = vmatprep.mubr.msk.f32.mxu0 %vm89_vm1, %v73_v2  ;;  %6035 = vmatprep.subr.bf16.mxu1 %v6565_v9  ;;  %v4977_v20 = vld [vmem:[%s7377_s3 + $0x28] sm:$0xff]  ;;  %v6757_v22 = vld [vmem:[%s7375_s1] sm:$0xff]  ;;  %v4978_v26 = vld [vmem:[%s7377_s3 + $0x30] sm:$0xff] }
  0x2f   :  { %5405 = vmatmul.mubr.msk.f32.vlgmr.msra.gmra.mrb[0].mxu0 %vm89_vm1, %v6675_v3  ;;  %5422 = vmatmul.mubr.msk.f32.gmra.mrb[2].mxu1 %vm89_vm1, %v76_v12  ;;  %v6759_v23 = vpack.c.bf16 %v4977_v20, %v4976_v19  ;;  %v4980_v24 = vld [vmem:[%s7377_s3 + $0x40] sm:$0xff]  ;;  %v4981_v25 = vld [vmem:[%s7377_s3 + $0x48] sm:$0xff]  ;;  %v4979_v27 = vld [vmem:[%s7377_s3 + $0x38] sm:$0xff] }
  0x30   :  { %5430 = vmatprep.subr.msk.mxu0 %vm114_vm0, %v4964_v14  ;;  %5424 = vmatprep.mubr.msk.f32.mxu1 %vm89_vm1, %v77_v15  ;;  %v6777_v28 = vpack.c.bf16 %v4981_v25, %v4980_v24  ;;  %v6780_v29 = vpack.c.bf16 %v4979_v27, %v4978_v26  ;;  %v4982_v30 = vld [vmem:[%s7377_s3 + $0x50] sm:$0xff]  ;;  %v4983_v31 = vld [vmem:[%s7377_s3 + $0x58] sm:$0xff]  ;;  %v4954_v33 = vld [vmem:[%s7378_s4 + $0x1] ss:$0 sm:$0xff] }
  0x31   :  { %6037 = vmatpush3.bf16.msra.mxu1 %v6709_v13  ;;  %5431 = vmatpush3.msk.msra.mxu0 %vm114_vm0, %v4964_v14  ;;  %v6797_v32 = vpack.c.bf16 %v4983_v31, %v4982_v30  ;;  %v4942_v37 = vld [vmem:[%s7378_s4] ss:$0 sm:$0xff] }
  0x32   :  { %5407 = vmatprep.mubr.msk.f32.mxu0 %vm89_vm1, %v75_v8  ;;  %6038 = vmatprep.subr.bf16.mxu1 %v6565_v9 }
  0x33   :  { %5408 = vmatmul.mubr.msk.f32.gmra.mrb[2].mxu0 %vm89_vm1, %v76_v12  ;;  %5425 = vmatmul.mubr.msk.f32.gmra.mrb[4].mxu1 %vm89_vm1, %v78_v16 }
  0x34   :  { %5410 = vmatprep.mubr.msk.f32.mxu0 %vm89_vm1, %v77_v15  ;;  %5427 = vmatprep.mubr.msk.f32.mxu1 %vm89_vm1, %v79_v17 }
  0x35   :  { %6044 = vmatprep.subr.bf16.mxu0 %v6565_v9 }
  0x37   :  { %5411 = vmatmul.mubr.msk.f32.gmra.mrb[4].mxu0 %vm89_vm1, %v78_v16  ;;  %5428 = vmatmul.mubr.msk.f32.gmra.mrb[6].mxu1 %vm89_vm1, %v80_v18 }
  0x38   :  { %5413 = vmatprep.mubr.msk.f32.mxu0 %vm89_vm1, %v79_v17  ;;  %5452 = vmatprep.mubr.msk.f32.mxu1 %vm6566_vm2, %v6567_v21 }
  0x3b   :  { %5414 = vmatmul.mubr.msk.f32.gmra.mrb[6].mxu0 %vm89_vm1, %v80_v18  ;;  %5453 = vmatmul.mubr.msk.f32.vlgmr.msra.gmra.mrb[8].mxu1 %vm223_vm3, %v6757_v22 }
  0x3c   :  { %5432 = vmatprep.mubr.msk.f32.mxu0 %vm89_vm1, %v73_v2  ;;  %6040 = vmatpush3.bf16.msra.mxu1 %v6759_v23 }
  0x3d   :  { %5463 = vmatprep.mubr.msk.f32.mxu1 %vm6566_vm2, %v6567_v21  ;;  %6041 = vmatprep.subr.bf16.mxu1 %v6565_v9 }
  0x3f   :  { %5433 = vmatmul.mubr.msk.f32.vlgmr.msra.gmra.mrb[8].mxu0 %vm89_vm1, %v6675_v3 }
  0x40   :  { %6046 = vmatpush3.bf16.msra.mxu0 %v6777_v28  ;;  %5435 = vmatprep.mubr.msk.f32.mxu0 %vm89_vm1, %v75_v8  ;;  %v4966_v8 = vld [vmem:[%s7378_s4 + $0x2] ss:$0 sm:$0xff] }
  0x41   :  { %6043 = vmatpush3.bf16.msra.mxu1 %v6780_v29  ;;  %6047 = vmatprep.subr.bf16.mxu0 %v6565_v9 }
  0x42   :  { %6050 = vmatprep.subr.bf16.mxu1 %v6565_v9 }
  0x43   :  { %5436 = vmatmul.mubr.msk.f32.gmra.mrb[10].mxu0 %vm89_vm1, %v76_v12 }
  0x44   :  { %5464 = vmatmul.mubr.msk.f32.vlgmr.msra.gmra.mrb[10].mxu1 %vm223_vm3, %v6757_v22  ;;  %5438 = vmatprep.mubr.msk.f32.mxu0 %vm89_vm1, %v77_v15 }
  0x45   :  { %6049 = vmatpush3.bf16.msra.mxu0 %v6797_v32  ;;  %6052 = vmatpush3.bf16.msra.mxu1 %v6689_v7 }
  0x46   :  { %6056 = vmatprep.subr.bf16.mxu0 %v6565_v9  ;;  %6053 = vmatprep.subr.bf16.mxu1 %v6565_v9 }
  0x47   :  { %5439 = vmatmul.mubr.msk.f32.gmra.mrb[12].mxu0 %vm89_vm1, %v78_v16  ;;  %5485 = vmatprep.mubr.msk.f32.mxu1 %vm6566_vm2, %v6567_v21 }
  0x48   :  { %5441 = vmatprep.mubr.msk.f32.mxu0 %vm89_vm1, %v79_v17 }
  0x49   :  { %6055 = vmatpush3.bf16.msra.mxu1 %v6709_v13 }
  0x4a   :  { %6062 = vmatprep.subr.bf16.mxu1 %v6565_v9 }
  0x4b   :  { %5442 = vmatmul.mubr.msk.f32.gmra.mrb[14].mxu0 %vm89_vm1, %v80_v18 }
  0x4c   :  { %5474 = vmatprep.mubr.msk.f32.mxu0 %vm6566_vm2, %v6567_v21 }
  0x4f   :  { %5475 = vmatmul.mubr.msk.f32.vlgmr.msra.gmra.mrb[16].mxu0 %vm223_vm3, %v6757_v22 }
  0x50   :  { %6058 = vmatpush3.bf16.msra.mxu0 %v6759_v23  ;;  %5496 = vmatprep.mubr.msk.f32.mxu0 %vm6566_vm2, %v6567_v21 }
  0x51   :  { %6059 = vmatprep.subr.bf16.mxu0 %v6565_v9 }
  0x54   :  { %6061 = vmatpush3.bf16.msra.mxu0 %v6780_v29 }
  0x55   :  { %6068 = vmatprep.subr.bf16.mxu0 %v6565_v9 }
  0xfe   :  { %v5420_v34 = vpop.f32.mrb[0].mxu1 }
  0xff   :  { %v317_v35 = vadd.f32 %v5420_v34, %v4954_v33  ;;  %v311_v36 = vpop.f32.mrb[1].mxu1 }
 0x100   :  { %v312_v38 = vadd.f32 %v4954_v33, %v311_v36 }
 0x101   :  { %351 = vst.msk [vmem:[#allocation3 + $0x8] sm:$0xff] %vm223_vm3, %v317_v35 }
 0x102   :  { %v5406_v39 = vpop.f32.mrb[0].mxu0  ;;  %350 = vst.msk [vmem:[#allocation3] sm:$0xff] %vm223_vm3, %v312_v38  ;;  %v5423_v40 = vpop.f32.mrb[2].mxu1 }
 0x103   :  { %v190_v41 = vadd.f32 %v5406_v39, %v4942_v37  ;;  %v184_v42 = vpop.f32.mrb[1].mxu0  ;;  %v327_v43 = vadd.f32 %v5423_v40, %v4954_v33  ;;  %v321_v44 = vpop.f32.mrb[3].mxu1 }
 0x104   :  { %v185_v45 = vadd.f32 %v4942_v37, %v184_v42  ;;  %v322_v46 = vadd.f32 %v4954_v33, %v321_v44 }
 0x105   :  { %225 = vst.msk [vmem:[#allocation2 + $0x8] sm:$0xff] %vm223_vm3, %v190_v41  ;;  %353 = vst.msk [vmem:[#allocation3 + $0x18] sm:$0xff] %vm223_vm3, %v327_v43  ;;  %v6861_v43 = vld [vmem:[%s7379_s5] ss:$0 sm:$0xff] }
 0x106   :  { %224 = vst.msk [vmem:[#allocation2] sm:$0xff] %vm223_vm3, %v185_v45  ;;  %v5409_v47 = vpop.f32.mrb[2].mxu0  ;;  %352 = vst.msk [vmem:[#allocation3 + $0x10] sm:$0xff] %vm223_vm3, %v322_v46  ;;  %v5426_v48 = vpop.f32.mrb[4].mxu1 }
 0x107   :  { %v200_v49 = vadd.f32 %v5409_v47, %v4942_v37  ;;  %v194_v50 = vpop.f32.mrb[3].mxu0  ;;  %v337_v51 = vadd.f32 %v5426_v48, %v4954_v33  ;;  %v331_v52 = vpop.f32.mrb[5].mxu1 }
 0x108   :  { %v195_v53 = vadd.f32 %v4942_v37, %v194_v50  ;;  %v332_v54 = vadd.f32 %v4954_v33, %v331_v52 }
 0x109   :  { %227 = vst.msk [vmem:[#allocation2 + $0x18] sm:$0xff] %vm223_vm3, %v200_v49  ;;  %355 = vst.msk [vmem:[#allocation3 + $0x28] sm:$0xff] %vm223_vm3, %v337_v51  ;;  %v727_v18 = vld [vmem:[#allocation3] sm:$0xff] }
 0x10a   :  { %226 = vst.msk [vmem:[#allocation2 + $0x10] sm:$0xff] %vm223_vm3, %v195_v53  ;;  %v5412_v55 = vpop.f32.mrb[4].mxu0  ;;  %354 = vst.msk [vmem:[#allocation3 + $0x20] sm:$0xff] %vm223_vm3, %v332_v54  ;;  %v5429_v56 = vpop.f32.mrb[6].mxu1 }
 0x10b   :  { %v210_v57 = vadd.f32 %v5412_v55, %v4942_v37  ;;  %v204_v58 = vpop.f32.mrb[5].mxu0  ;;  %v347_v59 = vadd.f32 %v5429_v56, %v4954_v33  ;;  %v341_v60 = vpop.f32.mrb[7].mxu1 }
 0x10c   :  { %v205_v61 = vadd.f32 %v4942_v37, %v204_v58  ;;  %v342_v62 = vadd.f32 %v4954_v33, %v341_v60 }
 0x10d   :  { %v719_v63 = vld [vmem:[#allocation2] sm:$0xff]  ;;  %229 = vst.msk [vmem:[#allocation2 + $0x28] sm:$0xff] %vm223_vm3, %v210_v57  ;;  %357 = vst.msk [vmem:[#allocation3 + $0x38] sm:$0xff] %vm223_vm3, %v347_v59  ;;  %v958_v57 = vld [vmem:[#allocation2 + $0x8] sm:$0xff] }
 0x10e   :  { %228 = vst.msk [vmem:[#allocation2 + $0x20] sm:$0xff] %vm223_vm3, %v205_v61  ;;  %v5415_v0 = vpop.f32.mrb[6].mxu0  ;;  %356 = vst.msk [vmem:[#allocation3 + $0x30] sm:$0xff] %vm223_vm3, %v342_v62  ;;  %v575_v1 = vpop.f32.mrb[8].mxu1 }
 0x10f   :  { %v220_v2 = vadd.f32 %v5415_v0, %v4942_v37  ;;  %v214_v3 = vpop.f32.mrb[7].mxu0  ;;  %v720_v4 = vadd.f32 %v719_v63, %v575_v1  ;;  %v5454_v5 = vpop.f32.mrb[9].mxu1  ;;  %v967_v63 = vld [vmem:[#allocation3 + $0x8] sm:$0xff] }
 0x110   :  { %v215_v6 = vadd.f32 %v4942_v37, %v214_v3 }
 0x111   :  { %231 = vst.msk [vmem:[#allocation2 + $0x38] sm:$0xff] %vm223_vm3, %v220_v2  ;;  %v4988_v10 = vmul.f32 -1.442695, %v720_v4 }
 0x112   :  { %230 = vst.msk [vmem:[#allocation2 + $0x30] sm:$0xff] %vm223_vm3, %v215_v6  ;;  %v5434_v11 = vpop.f32.mrb[8].mxu0 }
 0x113   :  { %v443_v12 = vadd.f32 %v5434_v11, %v4966_v8  ;;  %v437_v14 = vpop.f32.mrb[9].mxu0  ;;  %6353 = vpow2.f32 %v4988_v10 }
 0x114   :  { %v438_v15 = vadd.f32 %v4966_v8, %v437_v14 }
 0x115   :  { %477 = vst.msk [vmem:[#allocation4 + $0x8] sm:$0xff] %vm223_vm3, %v443_v12 }
 0x116   :  { %476 = vst.msk [vmem:[#allocation4] sm:$0xff] %vm223_vm3, %v438_v15  ;;  %v5437_v16 = vpop.f32.mrb[10].mxu0 }
 0x117   :  { %v645_v17 = vpop.f32.mrb[10].mxu1  ;;  %v453_v19 = vadd.f32 %v5437_v16, %v4966_v8  ;;  %v447_v20 = vpop.f32.mrb[11].mxu0 }
 0x118   :  { %v728_v24 = vadd.f32 %v727_v18, %v645_v17  ;;  %v5465_v25 = vpop.f32.mrb[11].mxu1  ;;  %v448_v26 = vadd.f32 %v4966_v8, %v447_v20 }
 0x119   :  { %479 = vst.msk [vmem:[#allocation4 + $0x18] sm:$0xff] %vm223_vm3, %v453_v19 }
 0x11a   :  { %v4989_v27 = vmul.f32 -1.442695, %v728_v24  ;;  %478 = vst.msk [vmem:[#allocation4 + $0x10] sm:$0xff] %vm223_vm3, %v448_v26  ;;  %v5440_v30 = vpop.f32.mrb[12].mxu0  ;;  %v1200_v26 = vld [vmem:[#allocation2 + $0x10] sm:$0xff] }
 0x11b   :  { %v463_v31 = vadd.f32 %v5440_v30, %v4966_v8  ;;  %v457_v33 = vpop.f32.mrb[13].mxu0 }
 0x11c   :  { %6355 = vpow2.f32 %v4989_v27  ;;  %v458_v34 = vadd.f32 %v4966_v8, %v457_v33  ;;  %v976_v14 = vld [vmem:[#allocation4 + $0x8] sm:$0xff] }
 0x11d   :  { %481 = vst.msk [vmem:[#allocation4 + $0x28] sm:$0xff] %vm223_vm3, %v463_v31  ;;  %v6354_v35 = vpop.eup %6353  ;;  %v735_v49 = vld [vmem:[#allocation4] sm:$0xff] }
 0x11e   :  { %480 = vst.msk [vmem:[#allocation4 + $0x20] sm:$0xff] %vm223_vm3, %v458_v34  ;;  %v5443_v36 = vpop.f32.mrb[14].mxu0  ;;  %v724_v37 = vadd.f32 1.0, %v6354_v35  ;;  %v1209_v35 = vld [vmem:[#allocation3 + $0x10] sm:$0xff] }
 0x11f   :  { %v473_v38 = vadd.f32 %v5443_v36, %v4966_v8  ;;  %v467_v39 = vpop.f32.mrb[15].mxu0 }
 0x120   :  { %v468_v40 = vadd.f32 %v4966_v8, %v467_v39  ;;  %6357 = vrcp.f32 %v724_v37 }
 0x121   :  { %483 = vst.msk [vmem:[#allocation4 + $0x38] sm:$0xff] %vm223_vm3, %v473_v38 }
 0x122   :  { %482 = vst.msk [vmem:[#allocation4 + $0x30] sm:$0xff] %vm223_vm3, %v468_v40  ;;  %v715_v41 = vpop.f32.mrb[16].mxu0 }
 0x123   :  { %v5476_v42 = vpop.f32.mrb[17].mxu0  ;;  %v716_v46 = vadd.f32 %v6861_v43, %v715_v41 }
 0x126   :  { %v6356_v44 = vpop.eup %6355 }
 0x127   :  { %v732_v45 = vadd.f32 1.0, %v6356_v44 }
 0x129   :  { %6359 = vrcp.f32 %v732_v45 }
 0x12a   :  { %v6358_v47 = vpop.eup %6357 }
 0x12b   :  { %v736_v48 = vmul.f32 %v6358_v47, %v716_v46 }
 0x12d   :  { %v737_v50 = vadd.f32 %v736_v48, %v735_v49  ;;  %v1218_v48 = vld [vmem:[#allocation4 + $0x10] sm:$0xff] }
 0x12f   :  { %6361 = vtanh.f32 %v737_v50 }
 0x133   :  { %v6360_v51 = vpop.eup %6359 }
 0x134   :  { %v739_v52 = vsub.f32 1.0, %v6360_v51  ;;  %v741_v55 = vmul.f32 %v6360_v51, %v6757_v22 }
 0x139   :  { %v6362_v53 = vpop.eup %6361 }
 0x13a   :  { %v740_v54 = vmul.f32 %v6362_v53, %v739_v52 }
 0x13c   :  { %v742_v56 = vadd.f32 %v741_v55, %v740_v54 }
 0x13e   :  { %743 = vst.msk [vmem:[#allocation5] sm:$0xff] %vm223_vm3, %v742_v56  ;;  %5486 = vmatmul.mubr.msk.f32.vlgmr.msra.gmra.mrb[12].mxu1 %vm223_vm3, %v742_v56  ;;  %5497 = vmatmul.mubr.msk.f32.vlgmr.msra.gmra.mrb[18].mxu0 %vm223_vm3, %v742_v56 }
 0x13f   :  { %6064 = vmatpush3.bf16.msra.mxu1 %v6777_v28  ;;  %5507 = vmatprep.mubr.msk.f32.mxu1 %vm6566_vm2, %v6567_v21 }
 0x140   :  { %6065 = vmatprep.subr.bf16.mxu1 %v6565_v9  ;;  %6070 = vmatpush3.bf16.msra.mxu0 %v6689_v7 }
 0x141   :  { %6071 = vmatprep.subr.bf16.mxu0 %v6565_v9  ;;  %5518 = vmatprep.mubr.msk.f32.mxu0 %vm6566_vm2, %v6567_v21 }
 0x143   :  { %6067 = vmatpush3.bf16.msra.mxu1 %v6797_v32 }
 0x144   :  { %6074 = vmatprep.subr.bf16.mxu1 %v6565_v9  ;;  %6073 = vmatpush3.bf16.msra.mxu0 %v6709_v13 }
 0x145   :  { %6080 = vmatprep.subr.bf16.mxu0 %v6565_v9 }
 0x146   :  { %5508 = vmatmul.mubr.msk.f32.vlgmr.msra.gmra.mrb[14].mxu1 %vm223_vm3, %v742_v56 }
 0x147   :  { %6076 = vmatpush3.bf16.msra.mxu1 %v6759_v23  ;;  %5529 = vmatprep.mubr.msk.f32.mxu1 %vm6566_vm2, %v6567_v21 }
 0x148   :  { %6077 = vmatprep.subr.bf16.mxu1 %v6565_v9 }
 0x14b   :  { %6079 = vmatpush3.bf16.msra.mxu1 %v6780_v29 }
 0x14c   :  { %6086 = vmatprep.subr.bf16.mxu1 %v6565_v9 }
 0x211   :  { %v813_v22 = vpop.f32.mrb[12].mxu1  ;;  %v883_v58 = vpop.f32.mrb[18].mxu0 }
 0x212   :  { %v959_v59 = vadd.f32 %v958_v57, %v813_v22  ;;  %v5487_v60 = vpop.f32.mrb[13].mxu1  ;;  %v5498_v61 = vpop.f32.mrb[19].mxu0  ;;  %v968_v0 = vadd.f32 %v967_v63, %v883_v58  ;;  %v1442_v22 = vld [vmem:[#allocation2 + $0x18] sm:$0xff] }
 0x214   :  { %v4993_v62 = vmul.f32 -1.442695, %v959_v59  ;;  %v4994_v1 = vmul.f32 -1.442695, %v968_v0 }
 0x216   :  { %6363 = vpow2.f32 %v4993_v62  ;;  %v1451_v62 = vld [vmem:[#allocation3 + $0x18] sm:$0xff] }
 0x217   :  { %6365 = vpow2.f32 %v4994_v1 }
 0x219   :  { %v953_v2 = vpop.f32.mrb[14].mxu1 }
 0x21a   :  { %v5509_v3 = vpop.f32.mrb[15].mxu1  ;;  %v954_v10 = vadd.f32 %v6861_v43, %v953_v2 }
 0x220   :  { %v6364_v4 = vpop.eup %6363 }
 0x221   :  { %v963_v5 = vadd.f32 1.0, %v6364_v4  ;;  %v6366_v6 = vpop.eup %6365 }
 0x222   :  { %v972_v8 = vadd.f32 1.0, %v6366_v6 }
 0x223   :  { %6367 = vrcp.f32 %v963_v5 }
 0x224   :  { %6369 = vrcp.f32 %v972_v8 }
 0x22d   :  { %v6368_v11 = vpop.eup %6367 }
 0x22e   :  { %v977_v12 = vmul.f32 %v6368_v11, %v954_v10  ;;  %v6370_v16 = vpop.eup %6369 }
 0x22f   :  { %v980_v17 = vsub.f32 1.0, %v6370_v16  ;;  %v982_v20 = vmul.f32 %v6370_v16, %v742_v56 }
 0x230   :  { %v978_v15 = vadd.f32 %v977_v12, %v976_v14  ;;  %v1460_v12 = vld [vmem:[#allocation4 + $0x18] sm:$0xff] }
 0x232   :  { %6371 = vtanh.f32 %v978_v15 }
 0x23c   :  { %v6372_v18 = vpop.eup %6371 }
 0x23d   :  { %v981_v19 = vmul.f32 %v6372_v18, %v980_v17 }
 0x23f   :  { %v983_v24 = vadd.f32 %v982_v20, %v981_v19 }
 0x241   :  { %985 = vst.msk [vmem:[#allocation5 + $0x8] sm:$0xff] %vm223_vm3, %v983_v24  ;;  %5519 = vmatmul.mubr.msk.f32.vlgmr.msra.gmra.mrb[20].mxu0 %vm223_vm3, %v983_v24  ;;  %5530 = vmatmul.mubr.msk.f32.vlgmr.msra.gmra.mrb[16].mxu1 %vm223_vm3, %v983_v24 }
 0x242   :  { %6082 = vmatpush3.bf16.msra.mxu0 %v6777_v28  ;;  %5540 = vmatprep.mubr.msk.f32.mxu0 %vm6566_vm2, %v6567_v21 }
 0x243   :  { %6083 = vmatprep.subr.bf16.mxu0 %v6565_v9  ;;  %6088 = vmatpush3.bf16.msra.mxu1 %v6689_v7 }
 0x244   :  { %6089 = vmatprep.subr.bf16.mxu1 %v6565_v9  ;;  %5551 = vmatprep.mubr.msk.f32.mxu1 %vm6566_vm2, %v6567_v21 }
 0x246   :  { %6085 = vmatpush3.bf16.msra.mxu0 %v6797_v32 }
 0x247   :  { %6092 = vmatprep.subr.bf16.mxu0 %v6565_v9  ;;  %6091 = vmatpush3.bf16.msra.mxu1 %v6709_v13 }
 0x248   :  { %6098 = vmatprep.subr.bf16.mxu1 %v6565_v9 }
 0x249   :  { %5541 = vmatmul.mubr.msk.f32.vlgmr.msra.gmra.mrb[22].mxu0 %vm223_vm3, %v983_v24 }
 0x24a   :  { %6094 = vmatpush3.bf16.msra.mxu0 %v6759_v23  ;;  %5562 = vmatprep.mubr.msk.f32.mxu0 %vm6566_vm2, %v6567_v21 }
 0x24b   :  { %6095 = vmatprep.subr.bf16.mxu0 %v6565_v9 }
 0x24e   :  { %6097 = vmatpush3.bf16.msra.mxu0 %v6780_v29 }
 0x24f   :  { %6104 = vmatprep.subr.bf16.mxu0 %v6565_v9 }
 0x314   :  { %v1055_v25 = vpop.f32.mrb[20].mxu0  ;;  %v1125_v27 = vpop.f32.mrb[16].mxu1 }
 0x315   :  { %v1201_v30 = vadd.f32 %v1200_v26, %v1055_v25  ;;  %v5520_v31 = vpop.f32.mrb[21].mxu0  ;;  %v5531_v33 = vpop.f32.mrb[17].mxu1  ;;  %v1210_v36 = vadd.f32 %v1209_v35, %v1125_v27  ;;  %v1684_v25 = vld [vmem:[#allocation2 + $0x20] sm:$0xff] }
 0x317   :  { %v4998_v34 = vmul.f32 -1.442695, %v1201_v30  ;;  %v4999_v37 = vmul.f32 -1.442695, %v1210_v36 }
 0x319   :  { %6373 = vpow2.f32 %v4998_v34  ;;  %v1693_v34 = vld [vmem:[#allocation3 + $0x20] sm:$0xff] }
 0x31a   :  { %6375 = vpow2.f32 %v4999_v37 }
 0x31c   :  { %v1195_v38 = vpop.f32.mrb[22].mxu0 }
 0x31d   :  { %v5542_v39 = vpop.f32.mrb[23].mxu0  ;;  %v1196_v45 = vadd.f32 %v6861_v43, %v1195_v38 }
 0x323   :  { %v6374_v40 = vpop.eup %6373 }
 0x324   :  { %v1205_v41 = vadd.f32 1.0, %v6374_v40  ;;  %v6376_v42 = vpop.eup %6375 }
 0x325   :  { %v1214_v44 = vadd.f32 1.0, %v6376_v42 }
 0x326   :  { %6377 = vrcp.f32 %v1205_v41 }
 0x327   :  { %6379 = vrcp.f32 %v1214_v44 }
 0x330   :  { %v6378_v46 = vpop.eup %6377 }
 0x331   :  { %v1219_v47 = vmul.f32 %v6378_v46, %v1196_v45  ;;  %v6380_v50 = vpop.eup %6379 }
 0x332   :  { %v1222_v51 = vsub.f32 1.0, %v6380_v50  ;;  %v1224_v54 = vmul.f32 %v6380_v50, %v983_v24 }
 0x333   :  { %v1220_v49 = vadd.f32 %v1219_v47, %v1218_v48  ;;  %v1702_v47 = vld [vmem:[#allocation4 + $0x20] sm:$0xff] }
 0x335   :  { %6381 = vtanh.f32 %v1220_v49 }
 0x33f   :  { %v6382_v52 = vpop.eup %6381 }
 0x340   :  { %v1223_v53 = vmul.f32 %v6382_v52, %v1222_v51 }
 0x342   :  { %v1225_v55 = vadd.f32 %v1224_v54, %v1223_v53 }
 0x344   :  { %1227 = vst.msk [vmem:[#allocation5 + $0x10] sm:$0xff] %vm223_vm3, %v1225_v55  ;;  %5552 = vmatmul.mubr.msk.f32.vlgmr.msra.gmra.mrb[18].mxu1 %vm223_vm3, %v1225_v55  ;;  %5563 = vmatmul.mubr.msk.f32.vlgmr.msra.gmra.mrb[24].mxu0 %vm223_vm3, %v1225_v55 }
 0x345   :  { %6100 = vmatpush3.bf16.msra.mxu1 %v6777_v28  ;;  %5573 = vmatprep.mubr.msk.f32.mxu1 %vm6566_vm2, %v6567_v21 }
 0x346   :  { %6101 = vmatprep.subr.bf16.mxu1 %v6565_v9  ;;  %6106 = vmatpush3.bf16.msra.mxu0 %v6689_v7 }
 0x347   :  { %6107 = vmatprep.subr.bf16.mxu0 %v6565_v9  ;;  %5584 = vmatprep.mubr.msk.f32.mxu0 %vm6566_vm2, %v6567_v21 }
 0x349   :  { %6103 = vmatpush3.bf16.msra.mxu1 %v6797_v32 }
 0x34a   :  { %6110 = vmatprep.subr.bf16.mxu1 %v6565_v9  ;;  %6109 = vmatpush3.bf16.msra.mxu0 %v6709_v13 }
 0x34b   :  { %6116 = vmatprep.subr.bf16.mxu0 %v6565_v9 }
 0x34c   :  { %5574 = vmatmul.mubr.msk.f32.vlgmr.msra.gmra.mrb[20].mxu1 %vm223_vm3, %v1225_v55 }
 0x34d   :  { %6112 = vmatpush3.bf16.msra.mxu1 %v6759_v23  ;;  %5595 = vmatprep.mubr.msk.f32.mxu1 %vm6566_vm2, %v6567_v21 }
 0x34e   :  { %6113 = vmatprep.subr.bf16.mxu1 %v6565_v9 }
 0x351   :  { %6115 = vmatpush3.bf16.msra.mxu1 %v6780_v29 }
 0x352   :  { %6122 = vmatprep.subr.bf16.mxu1 %v6565_v9 }
 0x417   :  { %v1297_v56 = vpop.f32.mrb[18].mxu1  ;;  %v1367_v57 = vpop.f32.mrb[24].mxu0 }
 0x418   :  { %v1443_v58 = vadd.f32 %v1442_v22, %v1297_v56  ;;  %v5553_v59 = vpop.f32.mrb[19].mxu1  ;;  %v5564_v60 = vpop.f32.mrb[25].mxu0  ;;  %v1452_v63 = vadd.f32 %v1451_v62, %v1367_v57  ;;  %v1926_v56 = vld [vmem:[#allocation2 + $0x28] sm:$0xff] }
 0x41a   :  { %v5003_v61 = vmul.f32 -1.442695, %v1443_v58  ;;  %v5004_v0 = vmul.f32 -1.442695, %v1452_v63 }
 0x41c   :  { %6383 = vpow2.f32 %v5003_v61  ;;  %v1935_v61 = vld [vmem:[#allocation3 + $0x28] sm:$0xff] }
 0x41d   :  { %6385 = vpow2.f32 %v5004_v0 }
 0x41f   :  { %v1437_v1 = vpop.f32.mrb[20].mxu1 }
 0x420   :  { %v5575_v2 = vpop.f32.mrb[21].mxu1  ;;  %v1438_v8 = vadd.f32 %v6861_v43, %v1437_v1 }
 0x426   :  { %v6384_v3 = vpop.eup %6383 }
 0x427   :  { %v1447_v4 = vadd.f32 1.0, %v6384_v3  ;;  %v6386_v5 = vpop.eup %6385 }
 0x428   :  { %v1456_v6 = vadd.f32 1.0, %v6386_v5 }
 0x429   :  { %6387 = vrcp.f32 %v1447_v4 }
 0x42a   :  { %6389 = vrcp.f32 %v1456_v6 }
 0x433   :  { %v6388_v10 = vpop.eup %6387 }
 0x434   :  { %v1461_v11 = vmul.f32 %v6388_v10, %v1438_v8  ;;  %v6390_v15 = vpop.eup %6389 }
 0x435   :  { %v1464_v16 = vsub.f32 1.0, %v6390_v15  ;;  %v1466_v19 = vmul.f32 %v6390_v15, %v1225_v55 }
 0x436   :  { %v1462_v14 = vadd.f32 %v1461_v11, %v1460_v12  ;;  %v1944_v11 = vld [vmem:[#allocation4 + $0x28] sm:$0xff] }
 0x438   :  { %6391 = vtanh.f32 %v1462_v14 }
 0x442   :  { %v6392_v17 = vpop.eup %6391 }
 0x443   :  { %v1465_v18 = vmul.f32 %v6392_v17, %v1464_v16 }
 0x445   :  { %v1467_v20 = vadd.f32 %v1466_v19, %v1465_v18 }
 0x447   :  { %1469 = vst.msk [vmem:[#allocation5 + $0x18] sm:$0xff] %vm223_vm3, %v1467_v20  ;;  %5585 = vmatmul.mubr.msk.f32.vlgmr.msra.gmra.mrb[26].mxu0 %vm223_vm3, %v1467_v20  ;;  %5596 = vmatmul.mubr.msk.f32.vlgmr.msra.gmra.mrb[22].mxu1 %vm223_vm3, %v1467_v20 }
 0x448   :  { %6118 = vmatpush3.bf16.msra.mxu0 %v6777_v28  ;;  %5606 = vmatprep.mubr.msk.f32.mxu0 %vm6566_vm2, %v6567_v21 }
 0x449   :  { %6119 = vmatprep.subr.bf16.mxu0 %v6565_v9  ;;  %6124 = vmatpush3.bf16.msra.mxu1 %v6689_v7 }
 0x44a   :  { %6125 = vmatprep.subr.bf16.mxu1 %v6565_v9  ;;  %5617 = vmatprep.mubr.msk.f32.mxu1 %vm6566_vm2, %v6567_v21 }
 0x44c   :  { %6121 = vmatpush3.bf16.msra.mxu0 %v6797_v32 }
 0x44d   :  { %6128 = vmatprep.subr.bf16.mxu0 %v6565_v9  ;;  %6127 = vmatpush3.bf16.msra.mxu1 %v6709_v13 }
 0x44e   :  { %6134 = vmatprep.subr.bf16.mxu1 %v6565_v9 }
 0x44f   :  { %5607 = vmatmul.mubr.msk.f32.vlgmr.msra.gmra.mrb[28].mxu0 %vm223_vm3, %v1467_v20 }
 0x450   :  { %6130 = vmatpush3.bf16.msra.mxu0 %v6759_v23  ;;  %5628 = vmatprep.mubr.msk.f32.mxu0 %vm6566_vm2, %v6567_v21 }
 0x451   :  { %6131 = vmatprep.subr.bf16.mxu0 %v6565_v9 }
 0x454   :  { %6133 = vmatpush3.bf16.msra.mxu0 %v6780_v29 }
 0x455   :  { %6140 = vmatprep.subr.bf16.mxu0 %v6565_v9 }
 0x51a   :  { %v1539_v24 = vpop.f32.mrb[26].mxu0  ;;  %v1609_v26 = vpop.f32.mrb[22].mxu1 }
 0x51b   :  { %v1685_v27 = vadd.f32 %v1684_v25, %v1539_v24  ;;  %v5586_v30 = vpop.f32.mrb[27].mxu0  ;;  %v5597_v31 = vpop.f32.mrb[23].mxu1  ;;  %v1694_v35 = vadd.f32 %v1693_v34, %v1609_v26  ;;  %v2168_v26 = vld [vmem:[#allocation2 + $0x30] sm:$0xff] }
 0x51c   :  { %v2177_v34 = vld [vmem:[#allocation3 + $0x30] sm:$0xff] }
 0x51d   :  { %v5008_v33 = vmul.f32 -1.442695, %v1685_v27  ;;  %v5009_v36 = vmul.f32 -1.442695, %v1694_v35 }
 0x51f   :  { %6393 = vpow2.f32 %v5008_v33 }
 0x520   :  { %6395 = vpow2.f32 %v5009_v36 }
 0x522   :  { %v1679_v37 = vpop.f32.mrb[28].mxu0 }
 0x523   :  { %v5608_v38 = vpop.f32.mrb[29].mxu0  ;;  %v1680_v44 = vadd.f32 %v6861_v43, %v1679_v37 }
 0x529   :  { %v6394_v39 = vpop.eup %6393 }
 0x52a   :  { %v1689_v40 = vadd.f32 1.0, %v6394_v39  ;;  %v6396_v41 = vpop.eup %6395 }
 0x52b   :  { %v1698_v42 = vadd.f32 1.0, %v6396_v41 }
 0x52c   :  { %6397 = vrcp.f32 %v1689_v40 }
 0x52d   :  { %6399 = vrcp.f32 %v1698_v42 }
 0x536   :  { %v6398_v45 = vpop.eup %6397 }
 0x537   :  { %v1703_v46 = vmul.f32 %v6398_v45, %v1680_v44  ;;  %v6400_v49 = vpop.eup %6399  ;;  %v2186_v45 = vld [vmem:[#allocation4 + $0x30] sm:$0xff] }
 0x538   :  { %v1706_v50 = vsub.f32 1.0, %v6400_v49  ;;  %v1708_v53 = vmul.f32 %v6400_v49, %v1467_v20  ;;  %v2448_v20 = vld [vmem:[#allocation7 + $0x8] sm:$0xff] }
 0x539   :  { %v1704_v48 = vadd.f32 %v1703_v46, %v1702_v47 }
 0x53b   :  { %6401 = vtanh.f32 %v1704_v48 }
 0x545   :  { %v6402_v51 = vpop.eup %6401 }
 0x546   :  { %v1707_v52 = vmul.f32 %v6402_v51, %v1706_v50 }
 0x548   :  { %v1709_v54 = vadd.f32 %v1708_v53, %v1707_v52  ;;  %v2449_v52 = vld [vmem:[#allocation7 + $0x10] sm:$0xff]  ;;  %v2450_v53 = vld [vmem:[#allocation7 + $0x18] sm:$0xff] }
 0x54a   :  { %1711 = vst.msk [vmem:[#allocation5 + $0x20] sm:$0xff] %vm223_vm3, %v1709_v54  ;;  %5618 = vmatmul.mubr.msk.f32.vlgmr.msra.gmra.mrb[24].mxu1 %vm223_vm3, %v1709_v54  ;;  %5629 = vmatmul.mubr.msk.f32.vlgmr.msra.gmra.mrb[30].mxu0 %vm223_vm3, %v1709_v54 }
 0x54b   :  { %6136 = vmatpush3.bf16.msra.mxu1 %v6777_v28  ;;  %5639 = vmatprep.mubr.msk.f32.mxu1 %vm6566_vm2, %v6567_v21 }
 0x54c   :  { %6137 = vmatprep.subr.bf16.mxu1 %v6565_v9  ;;  %6142 = vmatpush3.bf16.msra.mxu0 %v6689_v7 }
 0x54d   :  { %6143 = vmatprep.subr.bf16.mxu0 %v6565_v9  ;;  %5650 = vmatprep.mubr.msk.f32.mxu0 %vm6566_vm2, %v6567_v21 }
 0x54f   :  { %6139 = vmatpush3.bf16.msra.mxu1 %v6797_v32 }
 0x550   :  { %6146 = vmatprep.subr.bf16.mxu1 %v6565_v9  ;;  %6145 = vmatpush3.bf16.msra.mxu0 %v6709_v13 }
 0x551   :  { %6152 = vmatprep.subr.bf16.mxu0 %v6565_v9 }
 0x552   :  { %5640 = vmatmul.mubr.msk.f32.vlgmr.msra.gmra.mrb[26].mxu1 %vm223_vm3, %v1709_v54 }
 0x553   :  { %6148 = vmatpush3.bf16.msra.mxu1 %v6759_v23  ;;  %5661 = vmatprep.mubr.msk.f32.mxu1 %vm6566_vm2, %v6567_v21 }
 0x554   :  { %6149 = vmatprep.subr.bf16.mxu1 %v6565_v9 }
 0x557   :  { %6151 = vmatpush3.bf16.msra.mxu1 %v6780_v29 }
 0x558   :  { %6158 = vmatprep.subr.bf16.mxu1 %v6565_v9 }
 0x61d   :  { %v1781_v55 = vpop.f32.mrb[24].mxu1  ;;  %v1851_v22 = vpop.f32.mrb[30].mxu0 }
 0x61e   :  { %v1927_v57 = vadd.f32 %v1926_v56, %v1781_v55  ;;  %v5619_v58 = vpop.f32.mrb[25].mxu1  ;;  %v5630_v59 = vpop.f32.mrb[31].mxu0  ;;  %v1936_v62 = vadd.f32 %v1935_v61, %v1851_v22  ;;  %v6180_v55 = vpack.c.bf16 %v2450_v53, %v2449_v52  ;;  %v2596_v56 = vld [vmem:[#allocation7 + $0x20] sm:$0xff]  ;;  %v2597_v22 = vld [vmem:[#allocation7 + $0x28] sm:$0xff] }
 0x61f   :  { %v6184_v58 = vpack.c.bf16 %v2597_v22, %v2596_v56  ;;  %v2598_v59 = vld [vmem:[#allocation7 + $0x30] sm:$0xff]  ;;  %v7019_v61 = vld [vmem:[#allocation5 + $0x8] sm:$0xff] }
 0x620   :  { %v5013_v60 = vmul.f32 -1.442695, %v1927_v57  ;;  %v5014_v63 = vmul.f32 -1.442695, %v1936_v62  ;;  %v7011_v57 = vld [vmem:[#allocation5] sm:$0xff]  ;;  %v7025_v62 = vld [vmem:[#allocation5 + $0x10] sm:$0xff] }
 0x622   :  { %6403 = vpow2.f32 %v5013_v60  ;;  %v2599_v60 = vld [vmem:[#allocation7 + $0x38] sm:$0xff] }
 0x623   :  { %6405 = vpow2.f32 %v5014_v63  ;;  %v7035_v63 = vld [vmem:[#allocation5 + $0x20] sm:$0xff] }
 0x625   :  { %v1921_v0 = vpop.f32.mrb[26].mxu1 }
 0x626   :  { %v5641_v1 = vpop.f32.mrb[27].mxu1  ;;  %v1922_v6 = vadd.f32 %v6861_v43, %v1921_v0 }
 0x62c   :  { %v6404_v2 = vpop.eup %6403 }
 0x62d   :  { %v1931_v3 = vadd.f32 1.0, %v6404_v2  ;;  %v6406_v4 = vpop.eup %6405  ;;  %v2847_v2 = vld [vmem:[#allocation9] sm:$0xff] }
 0x62e   :  { %v1940_v5 = vadd.f32 1.0, %v6406_v4  ;;  %v2722_v4 = vld [vmem:[#allocation7 + $0x40] sm:$0xff] }
 0x62f   :  { %6407 = vrcp.f32 %v1931_v3  ;;  %v2848_v3 = vld [vmem:[#allocation9 + $0x8] sm:$0xff] }
 0x630   :  { %6409 = vrcp.f32 %v1940_v5  ;;  %v7060_v5 = vpack.c.bf16 %v2848_v3, %v2847_v2 }
 0x639   :  { %v6408_v8 = vpop.eup %6407 }
 0x63a   :  { %v1945_v10 = vmul.f32 %v6408_v8, %v1922_v6  ;;  %v6410_v14 = vpop.eup %6409  ;;  %v2723_v6 = vld [vmem:[#allocation7 + $0x48] sm:$0xff]  ;;  %v2849_v8 = vld [vmem:[#allocation9 + $0x10] sm:$0xff] }
 0x63b   :  { %v1948_v15 = vsub.f32 1.0, %v6410_v14  ;;  %v1950_v18 = vmul.f32 %v6410_v14, %v1709_v54  ;;  %v2724_v14 = vld [vmem:[#allocation7 + $0x50] sm:$0xff] }
 0x63c   :  { %v1946_v12 = vadd.f32 %v1945_v10, %v1944_v11  ;;  %v2850_v10 = vld [vmem:[#allocation9 + $0x18] sm:$0xff]  ;;  %v6192_v11 = vpack.c.bf16 %v2723_v6, %v2722_v4 }
 0x63e   :  { %6411 = vtanh.f32 %v1946_v12  ;;  %v7063_v12 = vpack.c.bf16 %v2850_v10, %v2849_v8  ;;  %v2428_v8 = vld [vmem:[#allocation4 + $0x38] sm:$0xff] }
 0x648   :  { %v6412_v16 = vpop.eup %6411 }
 0x649   :  { %v1949_v17 = vmul.f32 %v6412_v16, %v1948_v15  ;;  %v2725_v15 = vld [vmem:[#allocation7 + $0x58] sm:$0xff] }
 0x64a   :  { %v6196_v16 = vpack.c.bf16 %v2725_v15, %v2724_v14 }
 0x64b   :  { %v1951_v19 = vadd.f32 %v1950_v18, %v1949_v17  ;;  %v2410_v18 = vld [vmem:[#allocation2 + $0x38] sm:$0xff] }
 0x64d   :  { %1953 = vst.msk [vmem:[#allocation5 + $0x28] sm:$0xff] %vm223_vm3, %v1951_v19  ;;  %5651 = vmatmul.mubr.msk.f32.vlgmr.msra.gmra.mrb[32].mxu0 %vm223_vm3, %v1951_v19  ;;  %5662 = vmatmul.mubr.msk.f32.vlgmr.msra.gmra.mrb[28].mxu1 %vm223_vm3, %v1951_v19 }
 0x64e   :  { %6154 = vmatpush3.bf16.msra.mxu0 %v6777_v28  ;;  %5672 = vmatprep.mubr.msk.f32.mxu0 %vm6566_vm2, %v6567_v21 }
 0x64f   :  { %6155 = vmatprep.subr.bf16.mxu0 %v6565_v9  ;;  %6160 = vmatpush3.bf16.msra.mxu1 %v6689_v7  ;;  %v2447_v7 = vld [vmem:[#allocation7] sm:$0xff] }
 0x650   :  { %6161 = vmatprep.subr.bf16.mxu1 %v6565_v9  ;;  %5683 = vmatprep.mubr.msk.f32.mxu1 %vm6566_vm2, %v6567_v21  ;;  %v6176_v24 = vpack.c.bf16 %v2448_v20, %v2447_v7 }
 0x652   :  { %6157 = vmatpush3.bf16.msra.mxu0 %v6797_v32 }
 0x653   :  { %6164 = vmatprep.subr.bf16.mxu0 %v6565_v9  ;;  %6163 = vmatpush3.bf16.msra.mxu1 %v6709_v13 }
 0x654   :  { %6170 = vmatprep.subr.bf16.mxu1 %v6565_v9  ;;  %v7040_v0 = vld [vmem:[#allocation5 + $0x28] sm:$0xff] }
 0x655   :  { %5673 = vmatmul.mubr.msk.f32.vlgmr.msra.gmra.mrb[34].mxu0 %vm223_vm3, %v1951_v19 }
 0x656   :  { %6166 = vmatpush3.bf16.msra.mxu0 %v6759_v23  ;;  %5694 = vmatprep.mubr.msk.f32.mxu0 %vm6566_vm2, %v6567_v21 }
 0x657   :  { %6167 = vmatprep.subr.bf16.mxu0 %v6565_v9 }
 0x65a   :  { %6169 = vmatpush3.bf16.msra.mxu0 %v6780_v29 }
 0x65b   :  { %6177 = vmatprep.subr.bf16.mxu0 %v6176_v24 }
 0x720   :  { %v2023_v25 = vpop.f32.mrb[32].mxu0  ;;  %v2093_v13 = vpop.f32.mrb[28].mxu1 }
 0x721   :  { %v2169_v27 = vadd.f32 %v2168_v26, %v2023_v25  ;;  %v5652_v30 = vpop.f32.mrb[33].mxu0  ;;  %v5663_v31 = vpop.f32.mrb[29].mxu1  ;;  %v2178_v23 = vadd.f32 %v2177_v34, %v2093_v13  ;;  %v2419_v26 = vld [vmem:[#allocation3 + $0x38] sm:$0xff] }
 0x723   :  { %v5018_v33 = vmul.f32 -1.442695, %v2169_v27  ;;  %v5019_v35 = vmul.f32 -1.442695, %v2178_v23  ;;  %v7072_v27 = vld [vmem:[%s7382_s8] ss:$0 sm:$0xff] }
 0x725   :  { %6413 = vpow2.f32 %v5018_v33 }
 0x726   :  { %6415 = vpow2.f32 %v5019_v35 }
 0x728   :  { %v2163_v36 = vpop.f32.mrb[34].mxu0 }
 0x729   :  { %v5674_v37 = vpop.f32.mrb[35].mxu0  ;;  %v2164_v41 = vadd.f32 %v6861_v43, %v2163_v36 }
 0x72f   :  { %v6414_v38 = vpop.eup %6413 }
 0x730   :  { %v2173_v29 = vadd.f32 1.0, %v6414_v38  ;;  %v6416_v39 = vpop.eup %6415 }
 0x731   :  { %v2182_v40 = vadd.f32 1.0, %v6416_v39 }
 0x732   :  { %6417 = vrcp.f32 %v2173_v29 }
 0x733   :  { %6419 = vrcp.f32 %v2182_v40  ;;  %v7083_v40 = vld [vmem:[%s7382_s8 + $0x1] ss:$0 sm:$0xff] }
 0x73c   :  { %v6418_v42 = vpop.eup %6417 }
 0x73d   :  { %v2187_v44 = vmul.f32 %v6418_v42, %v2164_v41  ;;  %v6420_v47 = vpop.eup %6419 }
 0x73e   :  { %v2190_v48 = vsub.f32 1.0, %v6420_v47  ;;  %v2192_v51 = vmul.f32 %v6420_v47, %v1951_v19 }
 0x73f   :  { %v2188_v46 = vadd.f32 %v2187_v44, %v2186_v45 }
 0x741   :  { %6421 = vtanh.f32 %v2188_v46 }
 0x74b   :  { %v6422_v49 = vpop.eup %6421 }
 0x74c   :  { %v2191_v50 = vmul.f32 %v6422_v49, %v2190_v48 }
 0x74e   :  { %v7002_v54 = vadd.f32 %v2192_v51, %v2191_v50 }
 0x750   :  { %2195 = vst.msk [vmem:[#allocation5 + $0x30] sm:$0xff] %vm223_vm3, %v7002_v54  ;;  %5684 = vmatmul.mubr.msk.f32.vlgmr.msra.gmra.mrb[30].mxu1 %vm223_vm3, %v7002_v54  ;;  %5695 = vmatmul.mubr.msk.f32.vlgmr.msra.gmra.mrb[36].mxu0 %vm223_vm3, %v7002_v54 }
 0x751   :  { %6172 = vmatpush3.bf16.msra.mxu1 %v6777_v28  ;;  %6179 = vmatpush3.bf16.msra.mxu0 %v6176_v24  ;;  %v6188_v28 = vpack.c.bf16 %v2599_v60, %v2598_v59 }
 0x752   :  { %5716 = vmatprep.mubr.msk.f32.mxu0 %vm223_vm3, %v7011_v57  ;;  %6173 = vmatprep.subr.bf16.mxu1 %v6565_v9 }
 0x753   :  { %6181 = vmatprep.subr.bf16.mxu0 %v6180_v55  ;;  %5705 = vmatprep.mubr.msk.f32.mxu1 %vm6566_vm2, %v6567_v21 }
 0x755   :  { %6175 = vmatpush3.bf16.msra.mxu1 %v6797_v32  ;;  %6183 = vmatpush3.bf16.msra.mxu0 %v6180_v55  ;;  %v7031_v32 = vld [vmem:[#allocation5 + $0x18] sm:$0xff] }
 0x756   :  { %6185 = vmatprep.subr.bf16.mxu1 %v6184_v58  ;;  %6193 = vmatprep.subr.bf16.mxu0 %v6192_v11 }
 0x757   :  { %v7046_v1 = vld [vmem:[#allocation5 + $0x30] sm:$0xff] }
 0x758   :  { %5706 = vmatmul.mubr.msk.f32.vlgmr.msra.gmra.mrb[32].mxu1 %vm223_vm3, %v7002_v54  ;;  %5717 = vmatmul.mubr.msk.f32.vlgmr.msra.gmra.mrb[38].mxu0 %vm223_vm3, %v7019_v61 }
 0x759   :  { %5719 = vmatprep.mubr.msk.f32.mxu0 %vm223_vm3, %v7025_v62  ;;  %6187 = vmatpush3.bf16.msra.mxu1 %v6184_v58 }
 0x75a   :  { %5736 = vmatprep.mubr.msk.f32.mxu1 %vm223_vm3, %v7011_v57  ;;  %6189 = vmatprep.subr.bf16.mxu1 %v6188_v28 }
 0x75b   :  { %6195 = vmatpush3.bf16.msra.mxu0 %v6192_v11 }
 0x75c   :  { %5720 = vmatmul.mubr.msk.f32.gmra.mrb[40].mxu0 %vm223_vm3, %v7031_v32  ;;  %6197 = vmatprep.subr.bf16.mxu0 %v6196_v16 }
 0x75d   :  { %5722 = vmatprep.mubr.msk.f32.mxu0 %vm223_vm3, %v7035_v63  ;;  %6191 = vmatpush3.bf16.msra.mxu1 %v6188_v28 }
 0x75e   :  { %6200 = vmatprep.subr.bf16.mxu1 %v6565_v9 }
 0x75f   :  { %6199 = vmatpush3.bf16.msra.mxu0 %v6196_v16 }
 0x760   :  { %5723 = vmatmul.mubr.msk.f32.gmra.mrb[42].mxu0 %vm223_vm3, %v7040_v0  ;;  %5737 = vmatmul.mubr.msk.f32.vlgmr.msra.gmra.mrb[34].mxu1 %vm223_vm3, %v7019_v61 }
 0x761   :  { %5725 = vmatprep.mubr.msk.f32.mxu0 %vm223_vm3, %v7046_v1  ;;  %5739 = vmatprep.mubr.msk.f32.mxu1 %vm223_vm3, %v7025_v62 }
 0x762   :  { %6202 = vmatpush3.bf16.msra.mxu1 %v7060_v5  ;;  %6212 = vmatprep.subr.bf16.mxu0 %v6565_v9 }
 0x763   :  { %6203 = vmatprep.subr.bf16.mxu1 %v6565_v9 }
 0x764   :  { %5740 = vmatmul.mubr.msk.f32.gmra.mrb[36].mxu1 %vm223_vm3, %v7031_v32 }
 0x765   :  { %5742 = vmatprep.mubr.msk.f32.mxu1 %vm223_vm3, %v7035_v63 }
 0x766   :  { %6205 = vmatpush3.bf16.msra.mxu1 %v7063_v12 }
 0x767   :  { %6206 = vmatprep.subr.bf16.mxu1 %v6565_v9 }
 0x768   :  { %5743 = vmatmul.mubr.msk.f32.gmra.mrb[38].mxu1 %vm223_vm3, %v7040_v0 }
 0x769   :  { %5745 = vmatprep.mubr.msk.f32.mxu1 %vm223_vm3, %v7046_v1 }
 0x823   :  { %v2265_v17 = vpop.f32.mrb[30].mxu1  ;;  %v2335_v19 = vpop.f32.mrb[36].mxu0 }
 0x824   :  { %v2411_v7 = vadd.f32 %v2410_v18, %v2265_v17  ;;  %v5685_v20 = vpop.f32.mrb[31].mxu1  ;;  %v5696_v24 = vpop.f32.mrb[37].mxu0  ;;  %v2420_v13 = vadd.f32 %v2419_v26, %v2335_v19  ;;  %v2853_v19 = vld [vmem:[#allocation9 + $0x28] sm:$0xff]  ;;  %v2854_v26 = vld [vmem:[#allocation9 + $0x30] sm:$0xff] }
 0x825   :  { %v2857_v20 = vld [vmem:[#allocation9 + $0x40] sm:$0xff]  ;;  %v2858_v24 = vld [vmem:[#allocation9 + $0x48] sm:$0xff] }
 0x826   :  { %v5023_v25 = vmul.f32 -1.442695, %v2411_v7  ;;  %v5024_v30 = vmul.f32 -1.442695, %v2420_v13  ;;  %v2855_v13 = vld [vmem:[#allocation9 + $0x38] sm:$0xff] }
 0x828   :  { %6423 = vpow2.f32 %v5023_v25 }
 0x829   :  { %6425 = vpow2.f32 %v5024_v30  ;;  %v7123_v30 = vpack.c.bf16 %v2858_v24, %v2857_v20 }
 0x82b   :  { %v2405_v31 = vpop.f32.mrb[32].mxu1  ;;  %v5718_v33 = vpop.f32.mrb[38].mxu0 }
 0x82c   :  { %v2554_v34 = vadd.f32 %v5718_v33, %v7072_v27  ;;  %v5707_v23 = vpop.f32.mrb[33].mxu1  ;;  %v2548_v35 = vpop.f32.mrb[39].mxu0  ;;  %v2406_v3 = vadd.f32 %v6861_v43, %v2405_v31  ;;  %v2852_v43 = vld [vmem:[#allocation9 + $0x20] sm:$0xff]  ;;  %v2860_v31 = vld [vmem:[#allocation9 + $0x58] sm:$0xff]  ;;  %v7132_v33 = vpack.c.bf16 %v2855_v13, %v2854_v26 }
 0x82d   :  { %v2549_v36 = vadd.f32 %v7072_v27, %v2548_v35  ;;  %v7121_v25 = vpack.c.bf16 %v2853_v19, %v2852_v43 }
 0x82e   :  { %2588 = vst.msk [vmem:[#allocation2 + $0x8] sm:$0xff] %vm223_vm3, %v2554_v34 }
 0x82f   :  { %2587 = vst.msk [vmem:[#allocation2] sm:$0xff] %vm223_vm3, %v2549_v36  ;;  %v5721_v37 = vpop.f32.mrb[40].mxu0  ;;  %v5045_v36 = vld [vmem:[%s7382_s8 + $0x2] ss:$0 sm:$0xff] }
 0x830   :  { %v2564_v38 = vadd.f32 %v5721_v37, %v7072_v27  ;;  %v2558_v29 = vpop.f32.mrb[41].mxu0 }
 0x831   :  { %v2559_v39 = vadd.f32 %v7072_v27, %v2558_v29 }
 0x832   :  { %v6424_v41 = vpop.eup %6423  ;;  %2590 = vst.msk [vmem:[#allocation2 + $0x18] sm:$0xff] %vm223_vm3, %v2564_v38 }
 0x833   :  { %v2415_v42 = vadd.f32 1.0, %v6424_v41  ;;  %2589 = vst.msk [vmem:[#allocation2 + $0x10] sm:$0xff] %vm223_vm3, %v2559_v39  ;;  %v5724_v44 = vpop.f32.mrb[42].mxu0  ;;  %v5738_v45 = vpop.f32.mrb[34].mxu1 }
 0x834   :  { %v2574_v46 = vadd.f32 %v5724_v44, %v7072_v27  ;;  %v2680_v47 = vadd.f32 %v5738_v45, %v7083_v40  ;;  %v2568_v48 = vpop.f32.mrb[43].mxu0  ;;  %v2674_v49 = vpop.f32.mrb[35].mxu1 }
 0x835   :  { %6427 = vrcp.f32 %v2415_v42  ;;  %v2569_v50 = vadd.f32 %v7072_v27, %v2568_v48  ;;  %v2675_v51 = vadd.f32 %v7083_v40, %v2674_v49  ;;  %v6426_v56 = vpop.eup %6425 }
 0x836   :  { %2592 = vst.msk [vmem:[#allocation2 + $0x28] sm:$0xff] %vm223_vm3, %v2574_v46  ;;  %2714 = vst.msk [vmem:[#allocation3 + $0x8] sm:$0xff] %vm223_vm3, %v2680_v47  ;;  %v2424_v59 = vadd.f32 1.0, %v6426_v56  ;;  %v3083_v29 = vld [vmem:[#allocation2] sm:$0xff] }
 0x837   :  { %2591 = vst.msk [vmem:[#allocation2 + $0x20] sm:$0xff] %vm223_vm3, %v2569_v50  ;;  %2713 = vst.msk [vmem:[#allocation3] sm:$0xff] %vm223_vm3, %v2675_v51  ;;  %v5741_v52 = vpop.f32.mrb[36].mxu1 }
 0x838   :  { %v2690_v53 = vadd.f32 %v5741_v52, %v7083_v40  ;;  %v2684_v55 = vpop.f32.mrb[37].mxu1  ;;  %6429 = vrcp.f32 %v2424_v59 }
 0x839   :  { %v2685_v22 = vadd.f32 %v7083_v40, %v2684_v55 }
 0x83a   :  { %2716 = vst.msk [vmem:[#allocation3 + $0x18] sm:$0xff] %vm223_vm3, %v2690_v53 }
 0x83b   :  { %2715 = vst.msk [vmem:[#allocation3 + $0x10] sm:$0xff] %vm223_vm3, %v2685_v22  ;;  %v5744_v58 = vpop.f32.mrb[38].mxu1 }
 0x83c   :  { %v2700_v60 = vadd.f32 %v5744_v58, %v7083_v40  ;;  %v2694_v28 = vpop.f32.mrb[39].mxu1 }
 0x83d   :  { %v2695_v2 = vadd.f32 %v7083_v40, %v2694_v28 }
 0x83e   :  { %2718 = vst.msk [vmem:[#allocation3 + $0x28] sm:$0xff] %vm223_vm3, %v2700_v60  ;;  %v3091_v50 = vld [vmem:[#allocation3] sm:$0xff] }
 0x83f   :  { %v6428_v4 = vpop.eup %6427  ;;  %2717 = vst.msk [vmem:[#allocation3 + $0x20] sm:$0xff] %vm223_vm3, %v2695_v2 }
 0x840   :  { %v2429_v6 = vmul.f32 %v6428_v4, %v2406_v3 }
 0x842   :  { %v2430_v10 = vadd.f32 %v2429_v6, %v2428_v8  ;;  %v6430_v11 = vpop.eup %6429 }
 0x843   :  { %v2432_v14 = vsub.f32 1.0, %v6430_v11  ;;  %v2434_v16 = vmul.f32 %v6430_v11, %v7002_v54  ;;  %v7119_v54 = vld [vmem:[%s7375_s1 + $0x8] sm:$0xff] }
 0x844   :  { %6431 = vtanh.f32 %v2430_v10  ;;  %v7194_v10 = vld [vmem:[%s7383_s9] ss:$0 sm:$0xff] }
 0x84e   :  { %v6432_v15 = vpop.eup %6431 }
 0x84f   :  { %v2433_v17 = vmul.f32 %v6432_v15, %v2432_v14 }
 0x851   :  { %v2435_v18 = vadd.f32 %v2434_v16, %v2433_v17 }
 0x853   :  { %2437 = vst.msk [vmem:[#allocation5 + $0x38] sm:$0xff] %vm223_vm3, %v2435_v18  ;;  %2438 = vst.msk [vmem:[%s7387_s13] sm:$0xff] %vm223_vm3, %v2435_v18 }
 0x85a   :  { %v2446_v7 = vld [vmem:[#allocation5 + $0x38] sm:$0xff] }
 0x85b   :  { %5726 = vmatmul.mubr.msk.f32.gmra.mrb[44].mxu0 %vm223_vm3, %v2446_v7  ;;  %5746 = vmatmul.mubr.msk.f32.gmra.mrb[40].mxu1 %vm223_vm3, %v2446_v7 }
 0x85c   :  { %5756 = vmatprep.mubr.msk.f32.mxu0 %vm223_vm3, %v7011_v57  ;;  %5776 = vmatprep.mubr.msk.f32.mxu1 %vm6566_vm2, %v6567_v21  ;;  %v2859_v57 = vld [vmem:[#allocation9 + $0x50] sm:$0xff] }
 0x85f   :  { %5757 = vmatmul.mubr.msk.f32.vlgmr.msra.gmra.mrb[46].mxu0 %vm223_vm3, %v7019_v61  ;;  %5777 = vmatmul.mubr.msk.f32.vlgmr.msra.gmra.mrb[42].mxu1 %vm223_vm3, %v7119_v54  ;;  %v7138_v61 = vpack.c.bf16 %v2860_v31, %v2859_v57 }
 0x860   :  { %6208 = vmatpush3.bf16.msra.mxu1 %v7121_v25  ;;  %5759 = vmatprep.mubr.msk.f32.mxu0 %vm223_vm3, %v7025_v62 }
 0x861   :  { %6209 = vmatprep.subr.bf16.mxu1 %v6565_v9  ;;  %5787 = vmatprep.mubr.msk.f32.mxu1 %vm6566_vm2, %v6567_v21 }
 0x862   :  { %6214 = vmatpush3.bf16.msra.mxu0 %v7123_v30 }
 0x863   :  { %5760 = vmatmul.mubr.msk.f32.gmra.mrb[48].mxu0 %vm223_vm3, %v7031_v32  ;;  %6215 = vmatprep.subr.bf16.mxu0 %v6565_v9 }
 0x864   :  { %6211 = vmatpush3.bf16.msra.mxu1 %v7132_v33  ;;  %5762 = vmatprep.mubr.msk.f32.mxu0 %vm223_vm3, %v7035_v63 }
 0x865   :  { %6218 = vmatprep.subr.bf16.mxu1 %v6565_v9 }
 0x866   :  { %6217 = vmatpush3.bf16.msra.mxu0 %v7138_v61 }
 0x867   :  { %5788 = vmatmul.mubr.msk.f32.vlgmr.msra.gmra.mrb[44].mxu1 %vm223_vm3, %v7119_v54  ;;  %5763 = vmatmul.mubr.msk.f32.gmra.mrb[50].mxu0 %vm223_vm3, %v7040_v0 }
 0x868   :  { %5765 = vmatprep.mubr.msk.f32.mxu0 %vm223_vm3, %v7046_v1  ;;  %6220 = vmatpush3.bf16.msra.mxu1 %v7060_v5 }
 0x869   :  { %6224 = vmatprep.subr.bf16.mxu0 %v6565_v9  ;;  %6221 = vmatprep.subr.bf16.mxu1 %v6565_v9 }
 0x86a   :  { %5809 = vmatprep.mubr.msk.f32.mxu1 %vm6566_vm2, %v6567_v21 }
 0x86b   :  { %5766 = vmatmul.mubr.msk.f32.gmra.mrb[52].mxu0 %vm223_vm3, %v2446_v7 }
 0x86c   :  { %5798 = vmatprep.mubr.msk.f32.mxu0 %vm6566_vm2, %v6567_v21  ;;  %6223 = vmatpush3.bf16.msra.mxu1 %v7063_v12 }
 0x86d   :  { %6230 = vmatprep.subr.bf16.mxu1 %v6565_v9 }
 0x86f   :  { %5799 = vmatmul.mubr.msk.f32.vlgmr.msra.gmra.mrb[54].mxu0 %vm223_vm3, %v7119_v54 }
 0x870   :  { %6226 = vmatpush3.bf16.msra.mxu0 %v7121_v25  ;;  %5820 = vmatprep.mubr.msk.f32.mxu0 %vm6566_vm2, %v6567_v21 }
 0x871   :  { %6227 = vmatprep.subr.bf16.mxu0 %v6565_v9 }
 0x874   :  { %6229 = vmatpush3.bf16.msra.mxu0 %v7132_v33 }
 0x875   :  { %6236 = vmatprep.subr.bf16.mxu0 %v6565_v9 }
 0x92e   :  { %v5727_v62 = vpop.f32.mrb[44].mxu0  ;;  %v5747_v32 = vpop.f32.mrb[40].mxu1 }
 0x92f   :  { %v2584_v63 = vadd.f32 %v5727_v62, %v7072_v27  ;;  %v2710_v0 = vadd.f32 %v5747_v32, %v7083_v40  ;;  %v2578_v1 = vpop.f32.mrb[45].mxu0  ;;  %v2704_v34 = vpop.f32.mrb[41].mxu1 }
 0x930   :  { %v2579_v23 = vadd.f32 %v7072_v27, %v2578_v1  ;;  %v2705_v35 = vadd.f32 %v7083_v40, %v2704_v34 }
 0x931   :  { %2594 = vst.msk [vmem:[#allocation2 + $0x38] sm:$0xff] %vm223_vm3, %v2584_v63  ;;  %2720 = vst.msk [vmem:[#allocation3 + $0x38] sm:$0xff] %vm223_vm3, %v2710_v0  ;;  %v3321_v63 = vld [vmem:[#allocation2 + $0x8] sm:$0xff] }
 0x932   :  { %2593 = vst.msk [vmem:[#allocation2 + $0x30] sm:$0xff] %vm223_vm3, %v2579_v23  ;;  %2719 = vst.msk [vmem:[#allocation3 + $0x30] sm:$0xff] %vm223_vm3, %v2705_v35  ;;  %v5758_v37 = vpop.f32.mrb[46].mxu0  ;;  %v2939_v38 = vpop.f32.mrb[42].mxu1 }
 0x933   :  { %v2806_v39 = vadd.f32 %v5758_v37, %v5045_v36  ;;  %v3084_v41 = vadd.f32 %v3083_v29, %v2939_v38  ;;  %v2800_v27 = vpop.f32.mrb[47].mxu0  ;;  %v5778_v42 = vpop.f32.mrb[43].mxu1 }
 0x934   :  { %v2801_v40 = vadd.f32 %v5045_v36, %v2800_v27 }
 0x935   :  { %2840 = vst.msk [vmem:[#allocation4 + $0x8] sm:$0xff] %vm223_vm3, %v2806_v39  ;;  %v5059_v44 = vmul.f32 -1.442695, %v3084_v41 }
 0x936   :  { %2839 = vst.msk [vmem:[#allocation4] sm:$0xff] %vm223_vm3, %v2801_v40  ;;  %v5761_v45 = vpop.f32.mrb[48].mxu0 }
 0x937   :  { %6433 = vpow2.f32 %v5059_v44  ;;  %v2816_v46 = vadd.f32 %v5761_v45, %v5045_v36  ;;  %v2810_v47 = vpop.f32.mrb[49].mxu0 }
 0x938   :  { %v2811_v48 = vadd.f32 %v5045_v36, %v2810_v47 }
 0x939   :  { %2842 = vst.msk [vmem:[#allocation4 + $0x18] sm:$0xff] %vm223_vm3, %v2816_v46 }
 0x93a   :  { %2841 = vst.msk [vmem:[#allocation4 + $0x10] sm:$0xff] %vm223_vm3, %v2811_v48  ;;  %v3009_v49 = vpop.f32.mrb[44].mxu1  ;;  %v5764_v51 = vpop.f32.mrb[50].mxu0 }
 0x93b   :  { %v3092_v52 = vadd.f32 %v3091_v50, %v3009_v49  ;;  %v2826_v53 = vadd.f32 %v5764_v51, %v5045_v36  ;;  %v2820_v55 = vpop.f32.mrb[51].mxu0  ;;  %v5789_v56 = vpop.f32.mrb[45].mxu1 }
 0x93c   :  { %v2821_v22 = vadd.f32 %v5045_v36, %v2820_v55  ;;  %v3337_v47 = vld [vmem:[#allocation4 + $0x8] sm:$0xff] }
 0x93d   :  { %v5060_v58 = vmul.f32 -1.442695, %v3092_v52  ;;  %2844 = vst.msk [vmem:[#allocation4 + $0x28] sm:$0xff] %vm223_vm3, %v2826_v53  ;;  %v3099_v18 = vld [vmem:[#allocation4] sm:$0xff] }
 0x93e   :  { %2843 = vst.msk [vmem:[#allocation4 + $0x20] sm:$0xff] %vm223_vm3, %v2821_v22  ;;  %v5767_v59 = vpop.f32.mrb[52].mxu0 }
 0x93f   :  { %6435 = vpow2.f32 %v5060_v58  ;;  %v2836_v60 = vadd.f32 %v5767_v59, %v5045_v36  ;;  %v2830_v28 = vpop.f32.mrb[53].mxu0 }
 0x940   :  { %v2831_v2 = vadd.f32 %v5045_v36, %v2830_v28  ;;  %v3329_v36 = vld [vmem:[#allocation3 + $0x8] sm:$0xff] }
 0x941   :  { %v6434_v3 = vpop.eup %6433  ;;  %2846 = vst.msk [vmem:[#allocation4 + $0x38] sm:$0xff] %vm223_vm3, %v2836_v60  ;;  %v3559_v60 = vld [vmem:[#allocation2 + $0x10] sm:$0xff] }
 0x942   :  { %v3088_v4 = vadd.f32 1.0, %v6434_v3  ;;  %2845 = vst.msk [vmem:[#allocation4 + $0x30] sm:$0xff] %vm223_vm3, %v2831_v2  ;;  %v3079_v6 = vpop.f32.mrb[54].mxu0 }
 0x943   :  { %v5800_v8 = vpop.f32.mrb[55].mxu0  ;;  %v3080_v15 = vadd.f32 %v7194_v10, %v3079_v6 }
 0x944   :  { %6437 = vrcp.f32 %v3088_v4  ;;  %v3567_v8 = vld [vmem:[#allocation3 + $0x10] sm:$0xff] }
 0x949   :  { %v6436_v11 = vpop.eup %6435 }
 0x94a   :  { %v3096_v14 = vadd.f32 1.0, %v6436_v11 }
 0x94c   :  { %6439 = vrcp.f32 %v3096_v14 }
 0x94e   :  { %v6438_v16 = vpop.eup %6437 }
 0x94f   :  { %v3100_v17 = vmul.f32 %v6438_v16, %v3080_v15 }
 0x951   :  { %v3101_v43 = vadd.f32 %v3100_v17, %v3099_v18 }
 0x953   :  { %6441 = vtanh.f32 %v3101_v43 }
 0x956   :  { %v6440_v19 = vpop.eup %6439 }
 0x957   :  { %v3103_v7 = vsub.f32 1.0, %v6440_v19  ;;  %v3105_v26 = vmul.f32 %v6440_v19, %v7119_v54  ;;  %v7213_v54 = vld [vmem:[%s7384_s10] ss:$0 sm:$0xff] }
 0x95d   :  { %v6442_v20 = vpop.eup %6441 }
 0x95e   :  { %v3104_v24 = vmul.f32 %v6442_v20, %v3103_v7 }
 0x960   :  { %v3106_v13 = vadd.f32 %v3105_v26, %v3104_v24  ;;  %v3575_v26 = vld [vmem:[#allocation4 + $0x10] sm:$0xff] }
 0x962   :  { %3107 = vst.msk [vmem:[#allocation5] sm:$0xff] %vm223_vm3, %v3106_v13  ;;  %5810 = vmatmul.mubr.msk.f32.vlgmr.msra.gmra.mrb[46].mxu1 %vm223_vm3, %v3106_v13  ;;  %5821 = vmatmul.mubr.msk.f32.vlgmr.msra.gmra.mrb[56].mxu0 %vm223_vm3, %v3106_v13 }
 0x963   :  { %6232 = vmatpush3.bf16.msra.mxu1 %v7123_v30  ;;  %5831 = vmatprep.mubr.msk.f32.mxu1 %vm6566_vm2, %v6567_v21 }
 0x964   :  { %6233 = vmatprep.subr.bf16.mxu1 %v6565_v9  ;;  %6238 = vmatpush3.bf16.msra.mxu0 %v7060_v5 }
 0x965   :  { %6239 = vmatprep.subr.bf16.mxu0 %v6565_v9  ;;  %5842 = vmatprep.mubr.msk.f32.mxu0 %vm6566_vm2, %v6567_v21 }
 0x967   :  { %6235 = vmatpush3.bf16.msra.mxu1 %v7138_v61 }
 0x968   :  { %6242 = vmatprep.subr.bf16.mxu1 %v6565_v9  ;;  %6241 = vmatpush3.bf16.msra.mxu0 %v7063_v12 }
 0x969   :  { %v4777_v57 = vld [vmem:[#allocation5] sm:$0xff]  ;;  %6248 = vmatprep.subr.bf16.mxu0 %v6565_v9 }
 0x96a   :  { %5832 = vmatmul.mubr.msk.f32.vlgmr.msra.gmra.mrb[48].mxu1 %vm223_vm3, %v3106_v13  ;;  %v4791_v31 = vmul.f32 %v7213_v54, %v4777_v57 }
 0x96b   :  { %6244 = vmatpush3.bf16.msra.mxu1 %v7121_v25  ;;  %5853 = vmatprep.mubr.msk.f32.mxu1 %vm6566_vm2, %v6567_v21 }
 0x96c   :  { %v4799_v62 = vsel %vm223_vm3, %v4791_v31, 0.0  ;;  %6245 = vmatprep.subr.bf16.mxu1 %v6565_v9 }
 0x96d   :  { %4800 = vadd.xlane.f32.xlu0 %v4799_v62 }
 0x96f   :  { %6247 = vmatpush3.bf16.msra.mxu1 %v7132_v33 }
 0x970   :  { %6254 = vmatprep.subr.bf16.mxu1 %v6565_v9 }
 0xa35   :  { %v3177_v32 = vpop.f32.mrb[46].mxu1  ;;  %v3247_v0 = vpop.f32.mrb[56].mxu0 }
 0xa36   :  { %v3322_v1 = vadd.f32 %v3321_v63, %v3177_v32  ;;  %v5811_v34 = vpop.f32.mrb[47].mxu1  ;;  %v5822_v23 = vpop.f32.mrb[57].mxu0  ;;  %v3330_v37 = vadd.f32 %v3329_v36, %v3247_v0  ;;  %v3797_v36 = vld [vmem:[#allocation2 + $0x18] sm:$0xff] }
 0xa38   :  { %v5064_v35 = vmul.f32 -1.442695, %v3322_v1  ;;  %v5065_v38 = vmul.f32 -1.442695, %v3330_v37 }
 0xa3a   :  { %6443 = vpow2.f32 %v5064_v35 }
 0xa3b   :  { %6445 = vpow2.f32 %v5065_v38 }
 0xa3d   :  { %v3317_v29 = vpop.f32.mrb[48].mxu1 }
 0xa3e   :  { %v5833_v39 = vpop.f32.mrb[49].mxu1  ;;  %v3318_v44 = vadd.f32 %v7194_v10, %v3317_v29 }
 0xa44   :  { %v6444_v41 = vpop.eup %6443 }
 0xa45   :  { %v3326_v27 = vadd.f32 1.0, %v6444_v41  ;;  %v6446_v42 = vpop.eup %6445 }
 0xa46   :  { %v3334_v40 = vadd.f32 1.0, %v6446_v42 }
 0xa47   :  { %6447 = vrcp.f32 %v3326_v27  ;;  %v3805_v27 = vld [vmem:[#allocation3 + $0x18] sm:$0xff] }
 0xa48   :  { %6449 = vrcp.f32 %v3334_v40 }
 0xa51   :  { %v6448_v45 = vpop.eup %6447 }
 0xa52   :  { %v3338_v46 = vmul.f32 %v6448_v45, %v3318_v44  ;;  %v6450_v49 = vpop.eup %6449 }
 0xa53   :  { %v3341_v50 = vsub.f32 1.0, %v6450_v49  ;;  %v3343_v53 = vmul.f32 %v6450_v49, %v3106_v13 }
 0xa54   :  { %v3339_v48 = vadd.f32 %v3338_v46, %v3337_v47 }
 0xa56   :  { %6451 = vtanh.f32 %v3339_v48 }
 0xa60   :  { %v6452_v51 = vpop.eup %6451 }
 0xa61   :  { %v3342_v52 = vmul.f32 %v6452_v51, %v3341_v50 }
 0xa63   :  { %v3344_v55 = vadd.f32 %v3343_v53, %v3342_v52  ;;  %v3813_v53 = vld [vmem:[#allocation4 + $0x18] sm:$0xff] }
 0xa65   :  { %3345 = vst.msk [vmem:[#allocation5 + $0x8] sm:$0xff] %vm223_vm3, %v3344_v55  ;;  %5843 = vmatmul.mubr.msk.f32.vlgmr.msra.gmra.mrb[58].mxu0 %vm223_vm3, %v3344_v55  ;;  %5854 = vmatmul.mubr.msk.f32.vlgmr.msra.gmra.mrb[50].mxu1 %vm223_vm3, %v3344_v55 }
 0xa66   :  { %6250 = vmatpush3.bf16.msra.mxu0 %v7123_v30  ;;  %5864 = vmatprep.mubr.msk.f32.mxu0 %vm6566_vm2, %v6567_v21 }
 0xa67   :  { %6251 = vmatprep.subr.bf16.mxu0 %v6565_v9  ;;  %6256 = vmatpush3.bf16.msra.mxu1 %v7060_v5 }
 0xa68   :  { %6257 = vmatprep.subr.bf16.mxu1 %v6565_v9  ;;  %5875 = vmatprep.mubr.msk.f32.mxu1 %vm6566_vm2, %v6567_v21 }
 0xa6a   :  { %6253 = vmatpush3.bf16.msra.mxu0 %v7138_v61 }
 0xa6b   :  { %6260 = vmatprep.subr.bf16.mxu0 %v6565_v9  ;;  %6259 = vmatpush3.bf16.msra.mxu1 %v7063_v12 }
 0xa6c   :  { %v4778_v56 = vld [vmem:[#allocation5 + $0x8] sm:$0xff]  ;;  %6266 = vmatprep.subr.bf16.mxu1 %v6565_v9 }
 0xa6d   :  { %5865 = vmatmul.mubr.msk.f32.vlgmr.msra.gmra.mrb[60].mxu0 %vm223_vm3, %v3344_v55  ;;  %v4792_v22 = vmul.f32 %v7213_v54, %v4778_v56 }
 0xa6e   :  { %6262 = vmatpush3.bf16.msra.mxu0 %v7121_v25  ;;  %5886 = vmatprep.mubr.msk.f32.mxu0 %vm6566_vm2, %v6567_v21 }
 0xa6f   :  { %v4802_v58 = vsel %vm223_vm3, %v4792_v22, 0.0  ;;  %6263 = vmatprep.subr.bf16.mxu0 %v6565_v9 }
 0xa70   :  { %4803 = vadd.xlane.f32.xlu0 %v4802_v58 }
 0xa72   :  { %6265 = vmatpush3.bf16.msra.mxu0 %v7132_v33 }
 0xa73   :  { %6272 = vmatprep.subr.bf16.mxu0 %v6565_v9 }
 0xb38   :  { %v3415_v59 = vpop.f32.mrb[58].mxu0  ;;  %v3485_v28 = vpop.f32.mrb[50].mxu1 }
 0xb39   :  { %v3560_v2 = vadd.f32 %v3559_v60, %v3415_v59  ;;  %v5844_v3 = vpop.f32.mrb[59].mxu0  ;;  %v5855_v4 = vpop.f32.mrb[51].mxu1  ;;  %v3568_v11 = vadd.f32 %v3567_v8, %v3485_v28  ;;  %v4035_v8 = vld [vmem:[#allocation2 + $0x20] sm:$0xff] }
 0xb3b   :  { %v5069_v6 = vmul.f32 -1.442695, %v3560_v2  ;;  %v5070_v14 = vmul.f32 -1.442695, %v3568_v11 }
 0xb3d   :  { %6453 = vpow2.f32 %v5069_v6 }
 0xb3e   :  { %6455 = vpow2.f32 %v5070_v14 }
 0xb40   :  { %v3555_v15 = vpop.f32.mrb[60].mxu0 }
 0xb41   :  { %v5866_v16 = vpop.f32.mrb[61].mxu0  ;;  %v3556_v7 = vadd.f32 %v7194_v10, %v3555_v15 }
 0xb47   :  { %v6454_v17 = vpop.eup %6453 }
 0xb48   :  { %v3564_v18 = vadd.f32 1.0, %v6454_v17  ;;  %v6456_v43 = vpop.eup %6455 }
 0xb49   :  { %v3572_v19 = vadd.f32 1.0, %v6456_v43 }
 0xb4a   :  { %6457 = vrcp.f32 %v3564_v18  ;;  %v4043_v18 = vld [vmem:[#allocation3 + $0x20] sm:$0xff] }
 0xb4b   :  { %6459 = vrcp.f32 %v3572_v19 }
 0xb54   :  { %v6458_v20 = vpop.eup %6457 }
 0xb55   :  { %v3576_v24 = vmul.f32 %v6458_v20, %v3556_v7  ;;  %v6460_v57 = vpop.eup %6459 }
 0xb56   :  { %v3579_v31 = vsub.f32 1.0, %v6460_v57  ;;  %v3581_v63 = vmul.f32 %v6460_v57, %v3344_v55 }
 0xb57   :  { %v3577_v13 = vadd.f32 %v3576_v24, %v3575_v26 }
 0xb59   :  { %6461 = vtanh.f32 %v3577_v13 }
 0xb63   :  { %v6462_v62 = vpop.eup %6461 }
 0xb64   :  { %v3580_v32 = vmul.f32 %v6462_v62, %v3579_v31 }
 0xb66   :  { %v3582_v0 = vadd.f32 %v3581_v63, %v3580_v32  ;;  %v4051_v63 = vld [vmem:[#allocation4 + $0x20] sm:$0xff] }
 0xb68   :  { %3583 = vst.msk [vmem:[#allocation5 + $0x10] sm:$0xff] %vm223_vm3, %v3582_v0  ;;  %5876 = vmatmul.mubr.msk.f32.vlgmr.msra.gmra.mrb[52].mxu1 %vm223_vm3, %v3582_v0  ;;  %5887 = vmatmul.mubr.msk.f32.vlgmr.msra.gmra.mrb[62].mxu0 %vm223_vm3, %v3582_v0 }
 0xb69   :  { %6268 = vmatpush3.bf16.msra.mxu1 %v7123_v30  ;;  %5897 = vmatprep.mubr.msk.f32.mxu1 %vm6566_vm2, %v6567_v21 }
 0xb6a   :  { %6269 = vmatprep.subr.bf16.mxu1 %v6565_v9  ;;  %6274 = vmatpush3.bf16.msra.mxu0 %v7060_v5 }
 0xb6b   :  { %6275 = vmatprep.subr.bf16.mxu0 %v6565_v9  ;;  %5908 = vmatprep.mubr.msk.f32.mxu0 %vm6566_vm2, %v6567_v21 }
 0xb6d   :  { %6271 = vmatpush3.bf16.msra.mxu1 %v7138_v61 }
 0xb6e   :  { %6278 = vmatprep.subr.bf16.mxu1 %v6565_v9  ;;  %6277 = vmatpush3.bf16.msra.mxu0 %v7063_v12 }
 0xb6f   :  { %v4779_v1 = vld [vmem:[#allocation5 + $0x10] sm:$0xff]  ;;  %6284 = vmatprep.subr.bf16.mxu0 %v6565_v9 }
 0xb70   :  { %5898 = vmatmul.mubr.msk.f32.vlgmr.msra.gmra.mrb[54].mxu1 %vm223_vm3, %v3582_v0  ;;  %v4793_v34 = vmul.f32 %v7213_v54, %v4779_v1 }
 0xb71   :  { %6280 = vmatpush3.bf16.msra.mxu1 %v7121_v25  ;;  %5919 = vmatprep.mubr.msk.f32.mxu1 %vm6566_vm2, %v6567_v21 }
 0xb72   :  { %v4805_v23 = vsel %vm223_vm3, %v4793_v34, 0.0  ;;  %6281 = vmatprep.subr.bf16.mxu1 %v6565_v9 }
 0xb73   :  { %4806 = vadd.xlane.f32.xlu1 %v4805_v23 }
 0xb75   :  { %6283 = vmatpush3.bf16.msra.mxu1 %v7132_v33 }
 0xb76   :  { %6290 = vmatprep.subr.bf16.mxu1 %v6565_v9 }
 0xc3b   :  { %v3653_v35 = vpop.f32.mrb[52].mxu1  ;;  %v3723_v37 = vpop.f32.mrb[62].mxu0 }
 0xc3c   :  { %v3798_v38 = vadd.f32 %v3797_v36, %v3653_v35  ;;  %v5877_v29 = vpop.f32.mrb[53].mxu1  ;;  %v5888_v39 = vpop.f32.mrb[63].mxu0  ;;  %v3806_v42 = vadd.f32 %v3805_v27, %v3723_v37  ;;  %v4273_v27 = vld [vmem:[#allocation2 + $0x28] sm:$0xff] }
 0xc3e   :  { %v5074_v41 = vmul.f32 -1.442695, %v3798_v38  ;;  %v5075_v40 = vmul.f32 -1.442695, %v3806_v42 }
 0xc40   :  { %6463 = vpow2.f32 %v5074_v41 }
 0xc41   :  { %6465 = vpow2.f32 %v5075_v40 }
 0xc43   :  { %v3793_v44 = vpop.f32.mrb[54].mxu1 }
 0xc44   :  { %v5899_v45 = vpop.f32.mrb[55].mxu1  ;;  %v3794_v50 = vadd.f32 %v7194_v10, %v3793_v44 }
 0xc4a   :  { %v6464_v46 = vpop.eup %6463 }
 0xc4b   :  { %v3802_v47 = vadd.f32 1.0, %v6464_v46  ;;  %v6466_v48 = vpop.eup %6465 }
 0xc4c   :  { %v3810_v49 = vadd.f32 1.0, %v6466_v48 }
 0xc4d   :  { %6467 = vrcp.f32 %v3802_v47  ;;  %v4281_v47 = vld [vmem:[#allocation3 + $0x28] sm:$0xff] }
 0xc4e   :  { %6469 = vrcp.f32 %v3810_v49 }
 0xc57   :  { %v6468_v51 = vpop.eup %6467 }
 0xc58   :  { %v3814_v52 = vmul.f32 %v6468_v51, %v3794_v50  ;;  %v6470_v56 = vpop.eup %6469 }
 0xc59   :  { %v3817_v22 = vsub.f32 1.0, %v6470_v56  ;;  %v3819_v60 = vmul.f32 %v6470_v56, %v3582_v0 }
 0xc5a   :  { %v3815_v55 = vadd.f32 %v3814_v52, %v3813_v53 }
 0xc5c   :  { %6471 = vtanh.f32 %v3815_v55 }
 0xc66   :  { %v6472_v58 = vpop.eup %6471 }
 0xc67   :  { %v3818_v59 = vmul.f32 %v6472_v58, %v3817_v22 }
 0xc69   :  { %v3820_v28 = vadd.f32 %v3819_v60, %v3818_v59  ;;  %v4289_v60 = vld [vmem:[#allocation4 + $0x28] sm:$0xff] }
 0xc6b   :  { %3821 = vst.msk [vmem:[#allocation5 + $0x18] sm:$0xff] %vm223_vm3, %v3820_v28  ;;  %5909 = vmatmul.mubr.msk.f32.vlgmr.msra.gmra.mrb[64].mxu0 %vm223_vm3, %v3820_v28  ;;  %5920 = vmatmul.mubr.msk.f32.vlgmr.msra.gmra.mrb[56].mxu1 %vm223_vm3, %v3820_v28 }
 0xc6c   :  { %6286 = vmatpush3.bf16.msra.mxu0 %v7123_v30  ;;  %5930 = vmatprep.mubr.msk.f32.mxu0 %vm6566_vm2, %v6567_v21 }
 0xc6d   :  { %6287 = vmatprep.subr.bf16.mxu0 %v6565_v9  ;;  %6292 = vmatpush3.bf16.msra.mxu1 %v7060_v5 }
 0xc6e   :  { %6293 = vmatprep.subr.bf16.mxu1 %v6565_v9  ;;  %5941 = vmatprep.mubr.msk.f32.mxu1 %vm6566_vm2, %v6567_v21 }
 0xc70   :  { %6289 = vmatpush3.bf16.msra.mxu0 %v7138_v61 }
 0xc71   :  { %6296 = vmatprep.subr.bf16.mxu0 %v6565_v9  ;;  %6295 = vmatpush3.bf16.msra.mxu1 %v7063_v12 }
 0xc72   :  { %v4780_v2 = vld [vmem:[#allocation5 + $0x18] sm:$0xff]  ;;  %6302 = vmatprep.subr.bf16.mxu1 %v6565_v9 }
 0xc73   :  { %5931 = vmatmul.mubr.msk.f32.vlgmr.msra.gmra.mrb[66].mxu0 %vm223_vm3, %v3820_v28  ;;  %v4794_v3 = vmul.f32 %v7213_v54, %v4780_v2 }
 0xc74   :  { %6298 = vmatpush3.bf16.msra.mxu0 %v7121_v25  ;;  %5952 = vmatprep.mubr.msk.f32.mxu0 %vm6566_vm2, %v6567_v21 }
 0xc75   :  { %v4808_v4 = vsel %vm223_vm3, %v4794_v3, 0.0  ;;  %6299 = vmatprep.subr.bf16.mxu0 %v6565_v9 }
 0xc76   :  { %4809 = vadd.xlane.f32.xlu1 %v4808_v4 }
 0xc78   :  { %6301 = vmatpush3.bf16.msra.mxu0 %v7132_v33 }
 0xc79   :  { %6308 = vmatprep.subr.bf16.mxu0 %v6565_v9 }
 0xd3e   :  { %v3891_v6 = vpop.f32.mrb[64].mxu0  ;;  %v3961_v11 = vpop.f32.mrb[56].mxu1 }
 0xd3f   :  { %v4036_v14 = vadd.f32 %v4035_v8, %v3891_v6  ;;  %v5910_v15 = vpop.f32.mrb[65].mxu0  ;;  %v5921_v16 = vpop.f32.mrb[57].mxu1  ;;  %v4044_v43 = vadd.f32 %v4043_v18, %v3961_v11 }
 0xd41   :  { %v5079_v17 = vmul.f32 -1.442695, %v4036_v14  ;;  %v5080_v19 = vmul.f32 -1.442695, %v4044_v43 }
 0xd43   :  { %6473 = vpow2.f32 %v5079_v17  ;;  %v4511_v17 = vld [vmem:[#allocation2 + $0x30] sm:$0xff] }
 0xd44   :  { %6475 = vpow2.f32 %v5080_v19 }
 0xd46   :  { %v4031_v7 = vpop.f32.mrb[66].mxu0 }
 0xd47   :  { %v5932_v20 = vpop.f32.mrb[67].mxu0  ;;  %v4032_v31 = vadd.f32 %v7194_v10, %v4031_v7 }
 0xd4d   :  { %v6474_v24 = vpop.eup %6473 }
 0xd4e   :  { %v4040_v26 = vadd.f32 1.0, %v6474_v24  ;;  %v6476_v13 = vpop.eup %6475 }
 0xd4f   :  { %v4048_v57 = vadd.f32 1.0, %v6476_v13 }
 0xd50   :  { %6477 = vrcp.f32 %v4040_v26 }
 0xd51   :  { %6479 = vrcp.f32 %v4048_v57 }
 0xd5a   :  { %v6478_v62 = vpop.eup %6477 }
 0xd5b   :  { %v4052_v32 = vmul.f32 %v6478_v62, %v4032_v31  ;;  %v6480_v1 = vpop.eup %6479 }
 0xd5c   :  { %v4055_v34 = vsub.f32 1.0, %v6480_v1  ;;  %v4057_v36 = vmul.f32 %v6480_v1, %v3820_v28 }
 0xd5d   :  { %v4053_v0 = vadd.f32 %v4052_v32, %v4051_v63 }
 0xd5f   :  { %6481 = vtanh.f32 %v4053_v0 }
 0xd69   :  { %v6482_v23 = vpop.eup %6481 }
 0xd6a   :  { %v4056_v35 = vmul.f32 %v6482_v23, %v4055_v34  ;;  %v4527_v34 = vld [vmem:[#allocation4 + $0x30] sm:$0xff] }
 0xd6c   :  { %v4058_v37 = vadd.f32 %v4057_v36, %v4056_v35 }
 0xd6e   :  { %4059 = vst.msk [vmem:[#allocation5 + $0x20] sm:$0xff] %vm223_vm3, %v4058_v37  ;;  %5942 = vmatmul.mubr.msk.f32.vlgmr.msra.gmra.mrb[58].mxu1 %vm223_vm3, %v4058_v37  ;;  %5953 = vmatmul.mubr.msk.f32.vlgmr.msra.gmra.mrb[68].mxu0 %vm223_vm3, %v4058_v37 }
 0xd6f   :  { %6304 = vmatpush3.bf16.msra.mxu1 %v7123_v30  ;;  %5963 = vmatprep.mubr.msk.f32.mxu1 %vm6566_vm2, %v6567_v21 }
 0xd70   :  { %6305 = vmatprep.subr.bf16.mxu1 %v6565_v9  ;;  %6310 = vmatpush3.bf16.msra.mxu0 %v7060_v5 }
 0xd71   :  { %6311 = vmatprep.subr.bf16.mxu0 %v6565_v9  ;;  %5974 = vmatprep.mubr.msk.f32.mxu0 %vm6566_vm2, %v6567_v21 }
 0xd73   :  { %6307 = vmatpush3.bf16.msra.mxu1 %v7138_v61 }
 0xd74   :  { %6314 = vmatprep.subr.bf16.mxu1 %v6565_v9  ;;  %6313 = vmatpush3.bf16.msra.mxu0 %v7063_v12 }
 0xd75   :  { %v4781_v38 = vld [vmem:[#allocation5 + $0x20] sm:$0xff]  ;;  %6320 = vmatprep.subr.bf16.mxu0 %v6565_v9 }
 0xd76   :  { %5964 = vmatmul.mubr.msk.f32.vlgmr.msra.gmra.mrb[60].mxu1 %vm223_vm3, %v4058_v37  ;;  %v4795_v29 = vmul.f32 %v7213_v54, %v4781_v38 }
 0xd77   :  { %6316 = vmatpush3.bf16.msra.mxu1 %v7121_v25  ;;  %5985 = vmatprep.mubr.msk.f32.mxu1 %vm6566_vm2, %v6567_v21 }
 0xd78   :  { %v4811_v39 = vsel %vm223_vm3, %v4795_v29, 0.0  ;;  %6317 = vmatprep.subr.bf16.mxu1 %v6565_v9 }
 0xd79   :  { %4812 = vadd.xlane.f32.xlu0 %v4811_v39 }
 0xd7b   :  { %6319 = vmatpush3.bf16.msra.mxu1 %v7132_v33 }
 0xd7c   :  { %6326 = vmatprep.subr.bf16.mxu1 %v6565_v9 }
 0xe41   :  { %v4129_v41 = vpop.f32.mrb[58].mxu1  ;;  %v4199_v42 = vpop.f32.mrb[68].mxu0 }
 0xe42   :  { %v4274_v40 = vadd.f32 %v4273_v27, %v4129_v41  ;;  %v5943_v44 = vpop.f32.mrb[59].mxu1  ;;  %v5954_v45 = vpop.f32.mrb[69].mxu0  ;;  %v4282_v48 = vadd.f32 %v4281_v47, %v4199_v42 }
 0xe43   :  { %v4749_v45 = vld [vmem:[#allocation2 + $0x38] sm:$0xff] }
 0xe44   :  { %v5084_v46 = vmul.f32 -1.442695, %v4274_v40  ;;  %v5085_v49 = vmul.f32 -1.442695, %v4282_v48  ;;  %v5098_v40 = vld [vmem:[#allocation6] ss:$0 sm:$0xff] }
 0xe46   :  { %6483 = vpow2.f32 %v5084_v46 }
 0xe47   :  { %6485 = vpow2.f32 %v5085_v49 }
 0xe49   :  { %v4269_v50 = vpop.f32.mrb[60].mxu1 }
 0xe4a   :  { %v5965_v51 = vpop.f32.mrb[61].mxu1  ;;  %v4270_v22 = vadd.f32 %v7194_v10, %v4269_v50 }
 0xe50   :  { %v6484_v52 = vpop.eup %6483 }
 0xe51   :  { %v4278_v53 = vadd.f32 1.0, %v6484_v52  ;;  %v6486_v55 = vpop.eup %6485 }
 0xe52   :  { %v4286_v56 = vadd.f32 1.0, %v6486_v55 }
 0xe53   :  { %6487 = vrcp.f32 %v4278_v53 }
 0xe54   :  { %6489 = vrcp.f32 %v4286_v56 }
 0xe5d   :  { %v6488_v58 = vpop.eup %6487 }
 0xe5e   :  { %v4290_v59 = vmul.f32 %v6488_v58, %v4270_v22  ;;  %v6490_v2 = vpop.eup %6489 }
 0xe5f   :  { %v4293_v3 = vsub.f32 1.0, %v6490_v2  ;;  %v4295_v8 = vmul.f32 %v6490_v2, %v4058_v37 }
 0xe60   :  { %v4291_v28 = vadd.f32 %v4290_v59, %v4289_v60  ;;  %v4765_v60 = vld [vmem:[#allocation4 + $0x38] sm:$0xff] }
 0xe62   :  { %6491 = vtanh.f32 %v4291_v28 }
 0xe6c   :  { %v6492_v4 = vpop.eup %6491 }
 0xe6d   :  { %v4294_v6 = vmul.f32 %v6492_v4, %v4293_v3 }
 0xe6f   :  { %v4296_v11 = vadd.f32 %v4295_v8, %v4294_v6 }
 0xe71   :  { %4297 = vst.msk [vmem:[#allocation5 + $0x28] sm:$0xff] %vm223_vm3, %v4296_v11  ;;  %5975 = vmatmul.mubr.msk.f32.vlgmr.msra.gmra.mrb[70].mxu0 %vm223_vm3, %v4296_v11  ;;  %5986 = vmatmul.mubr.msk.f32.vlgmr.msra.gmra.mrb[62].mxu1 %vm223_vm3, %v4296_v11 }
 0xe72   :  { %6322 = vmatpush3.bf16.msra.mxu0 %v7123_v30  ;;  %5996 = vmatprep.mubr.msk.f32.mxu0 %vm6566_vm2, %v6567_v21 }
 0xe73   :  { %6323 = vmatprep.subr.bf16.mxu0 %v6565_v9  ;;  %6328 = vmatpush3.bf16.msra.mxu1 %v7060_v5 }
 0xe74   :  { %6329 = vmatprep.subr.bf16.mxu1 %v6565_v9  ;;  %6007 = vmatprep.mubr.msk.f32.mxu1 %vm6566_vm2, %v6567_v21 }
 0xe76   :  { %6325 = vmatpush3.bf16.msra.mxu0 %v7138_v61 }
 0xe77   :  { %6332 = vmatprep.subr.bf16.mxu0 %v6565_v9  ;;  %6331 = vmatpush3.bf16.msra.mxu1 %v7063_v12  ;;  %v6568_v12 = vmov 0  }
 0xe78   :  { %v4782_v14 = vld [vmem:[#allocation5 + $0x28] sm:$0xff]  ;;  %6338 = vmatprep.subr.bf16.mxu1 %v6565_v9  ;;  %6352 = vset.pattern.permute.xlu0 %v6568_v12 }
 0xe79   :  { %5997 = vmatmul.mubr.msk.f32.vlgmr.msra.gmra.mrb[72].mxu0 %vm223_vm3, %v4296_v11  ;;  %v4796_v15 = vmul.f32 %v7213_v54, %v4782_v14 }
 0xe7a   :  { %6334 = vmatpush3.bf16.msra.mxu0 %v7121_v25  ;;  %6018 = vmatprep.mubr.msk.f32.mxu0 %vm6566_vm2, %v6567_v21  ;;  %v4519_v25 = vld [vmem:[#allocation3 + $0x30] sm:$0xff] }
 0xe7b   :  { %v4814_v5 = vsel %vm223_vm3, %v4796_v15, 0.0  ;;  %6335 = vmatprep.subr.bf16.mxu0 %v6565_v9 }
 0xe7c   :  { %4815 = vadd.xlane.f32.xlu1 %v4814_v5  ;;  %v4801_v5 = vpop.xlane.xlu0 %4800 }
 0xe7e   :  { %6337 = vmatpush3.bf16.msra.mxu0 %v7132_v33 }
 0xe80   :  { %v4804_v12 = vpop.xlane.xlu0 %4803 }
 0xf44   :  { %v4367_v16 = vpop.f32.mrb[70].mxu0  ;;  %v4437_v18 = vpop.f32.mrb[62].mxu1 }
 0xf45   :  { %v4512_v43 = vadd.f32 %v4511_v17, %v4367_v16  ;;  %v5976_v19 = vpop.f32.mrb[71].mxu0  ;;  %v5987_v7 = vpop.f32.mrb[63].mxu1  ;;  %v4520_v24 = vadd.f32 %v4519_v25, %v4437_v18  ;;  %v4849_v17 = vlaneseq }
 0xf46   :  { %v4813_v16 = vpop.xlane.xlu0 %4812 }
 0xf47   :  { %v5089_v20 = vmul.f32 -1.442695, %v4512_v43  ;;  %v5090_v26 = vmul.f32 -1.442695, %v4520_v24  ;;  %v4850_v43 = vand.u32 127, %v4849_v17  ;;  %v4852_v19 = vshrl.u32 %v4849_v17, 7 }
 0xf49   :  { %6493 = vpow2.f32 %v5089_v20  ;;  %v4853_v20 = vsub.s32 %v4850_v43, %v4852_v19 }
 0xf4a   :  { %6495 = vpow2.f32 %v5090_v26  ;;  %v4807_v26 = vpop.xlane.xlu1 %4806 }
 0xf4c   :  { %v4507_v13 = vpop.f32.mrb[72].mxu0 }
 0xf4d   :  { %v5998_v57 = vpop.f32.mrb[73].mxu0  ;;  %v4508_v63 = vadd.f32 %v7194_v10, %v4507_v13 }
 0xf53   :  { %v6494_v31 = vpop.eup %6493 }
 0xf54   :  { %v4516_v62 = vadd.f32 1.0, %v6494_v31  ;;  %v6496_v33 = vpop.eup %6495 }
 0xf55   :  { %v4524_v32 = vadd.f32 1.0, %v6496_v33 }
 0xf56   :  { %6497 = vrcp.f32 %v4516_v62 }
 0xf57   :  { %6499 = vrcp.f32 %v4524_v32 }
 0xf60   :  { %v6498_v0 = vpop.eup %6497 }
 0xf61   :  { %v4528_v1 = vmul.f32 %v6498_v0, %v4508_v63  ;;  %v6500_v35 = vpop.eup %6499 }
 0xf62   :  { %v4531_v36 = vsub.f32 1.0, %v6500_v35  ;;  %v4533_v29 = vmul.f32 %v6500_v35, %v4296_v11 }
 0xf63   :  { %v4529_v23 = vadd.f32 %v4528_v1, %v4527_v34 }
 0xf65   :  { %6501 = vtanh.f32 %v4529_v23 }
 0xf6f   :  { %v6502_v37 = vpop.eup %6501 }
 0xf70   :  { %v4532_v38 = vmul.f32 %v6502_v37, %v4531_v36 }
 0xf72   :  { %v4534_v39 = vadd.f32 %v4533_v29, %v4532_v38 }
 0xf74   :  { %4535 = vst.msk [vmem:[#allocation5 + $0x30] sm:$0xff] %vm223_vm3, %v4534_v39  ;;  %6008 = vmatmul.mubr.msk.f32.vlgmr.msra.gmra.mrb[64].mxu1 %vm223_vm3, %v4534_v39  ;;  %6019 = vmatmul.mubr.msk.f32.vlgmr.msra.gmra.mrb[74].mxu0 %vm223_vm3, %v4534_v39 }
 0xf75   :  { %6340 = vmatpush3.bf16.msra.mxu1 %v7123_v30  ;;  %6029 = vmatprep.mubr.msk.f32.mxu1 %vm6566_vm2, %v6567_v21 }
 0xf76   :  { %6341 = vmatprep.subr.bf16.mxu1 %v6565_v9  ;;  %v4757_v9 = vld [vmem:[#allocation3 + $0x38] sm:$0xff] }
 0xf79   :  { %6343 = vmatpush3.bf16.msra.mxu1 %v7138_v61 }
 0xf7b   :  { %v4783_v41 = vld [vmem:[#allocation5 + $0x30] sm:$0xff] }
 0xf7c   :  { %6030 = vmatmul.mubr.msk.f32.vlgmr.msra.gmra.mrb[66].mxu1 %vm223_vm3, %v4534_v39  ;;  %v4797_v27 = vmul.f32 %v7213_v54, %v4783_v41 }
 0xf7e   :  { %v4817_v42 = vsel %vm223_vm3, %v4797_v27, 0.0 }
 0xf7f   :  { %4818 = vadd.xlane.f32.xlu0 %v4817_v42 }
 0xf95   :  { %4830 = vperm.xlu0 %6352, %v5098_v40  }
0x100c   :  { %v4819_v18 = vpop.xlane.xlu0 %4818 }
0x1014   :  { %v4831_v7 = vpop.permute.xlu0 %4830 }
0x1015   :  { %v4833_v25 = vadd.f32 %v4831_v7, %v4801_v5  ;;  %v4834_v24 = vadd.f32 %v4831_v7, %v4804_v12  ;;  %v4835_v13 = vadd.f32 %v4831_v7, %v4807_v26  ;;  %v4837_v63 = vadd.f32 %v4831_v7, %v4813_v16 }
0x1016   :  { %v4839_v37 = vadd.f32 %v4831_v7, %v4819_v18 }
0x1017   :  { %v4854_v57 = vrot.slane %v4833_v25, %v4853_v20  ;;  %v4858_v31 = vrot.slane %v4834_v24, %v4853_v20  ;;  %v4862_v62 = vrot.slane %v4835_v13, %v4853_v20  ;;  %v4870_v36 = vrot.slane %v4837_v63, %v4853_v20 }
0x1018   :  { %v4878_v42 = vrot.slane %v4839_v37, %v4853_v20 }
0x1019   :  { %v4884_v32 = vsel %vm4883_vm4, %v4858_v31, %v4854_v57 }
0x101a   :  { %v4886_v0 = vsel %vm4885_vm5, %v4862_v62, %v4884_v32 }
0x1047   :  { %v4605_v44 = vpop.f32.mrb[64].mxu1  ;;  %v4675_v30 = vpop.f32.mrb[74].mxu0 }
0x1048   :  { %v4750_v46 = vadd.f32 %v4749_v45, %v4605_v44  ;;  %v6009_v47 = vpop.f32.mrb[65].mxu1  ;;  %v6020_v21 = vpop.f32.mrb[75].mxu0  ;;  %v4758_v49 = vadd.f32 %v4757_v9, %v4675_v30 }
0x104a   :  { %v5094_v48 = vmul.f32 -1.442695, %v4750_v46  ;;  %v5095_v61 = vmul.f32 -1.442695, %v4758_v49 }
0x104c   :  { %6503 = vpow2.f32 %v5094_v48 }
0x104d   :  { %6505 = vpow2.f32 %v5095_v61 }
0x104f   :  { %v4745_v50 = vpop.f32.mrb[66].mxu1 }
0x1050   :  { %v6031_v51 = vpop.f32.mrb[67].mxu1  ;;  %v4746_v22 = vadd.f32 %v7194_v10, %v4745_v50 }
0x1056   :  { %v6504_v52 = vpop.eup %6503 }
0x1057   :  { %v4754_v53 = vadd.f32 1.0, %v6504_v52  ;;  %v6506_v55 = vpop.eup %6505 }
0x1058   :  { %v4762_v56 = vadd.f32 1.0, %v6506_v55 }
0x1059   :  { %6507 = vrcp.f32 %v4754_v53 }
0x105a   :  { %6509 = vrcp.f32 %v4762_v56 }
0x1063   :  { %v6508_v58 = vpop.eup %6507 }
0x1064   :  { %v4766_v59 = vmul.f32 %v6508_v58, %v4746_v22  ;;  %v6510_v2 = vpop.eup %6509 }
0x1065   :  { %v4769_v3 = vsub.f32 1.0, %v6510_v2  ;;  %v4771_v6 = vmul.f32 %v6510_v2, %v4534_v39 }
0x1066   :  { %v4767_v28 = vadd.f32 %v4766_v59, %v4765_v60 }
0x1068   :  { %6511 = vtanh.f32 %v4767_v28 }
0x1072   :  { %v6512_v4 = vpop.eup %6511 }
0x1073   :  { %v4770_v8 = vmul.f32 %v6512_v4, %v4769_v3 }
0x1075   :  { %v4772_v11 = vadd.f32 %v4771_v6, %v4770_v8 }
0x1077   :  { %4773 = vst.msk [vmem:[#allocation5 + $0x38] sm:$0xff] %vm223_vm3, %v4772_v11  ;;  %5096 = vst.msk [vmem:[%s7387_s13 + $0x8] sm:$0xff] %vm223_vm3, %v4772_v11 }
0x107e   :  { %v4784_v10 = vld [vmem:[#allocation5 + $0x38] sm:$0xff] }
0x107f   :  { %v4798_v14 = vmul.f32 %v7213_v54, %v4784_v10  ;;  %v4810_v54 = vpop.xlane.xlu1 %4809 }
0x1080   :  { %v4836_v33 = vadd.f32 %v4831_v7, %v4810_v54 }
0x1081   :  { %v4820_v15 = vsel %vm223_vm3, %v4798_v14, 0.0 }
0x1082   :  { %4821 = vadd.xlane.f32.xlu1 %v4820_v15  ;;  %v4866_v1 = vrot.slane %v4836_v33, %v4853_v20 }
0x1083   :  { %v4816_v34 = vpop.xlane.xlu1 %4815 }
0x1084   :  { %v4838_v23 = vadd.f32 %v4831_v7, %v4816_v34  ;;  %v4888_v35 = vsel %vm4887_vm6, %v4866_v1, %v4886_v0 }
0x1085   :  { %v4890_v38 = vsel %vm4889_vm7, %v4870_v36, %v4888_v35 }
0x1086   :  { %v4874_v29 = vrot.slane %v4838_v23, %v4853_v20 }
0x1088   :  { %v4892_v27 = vsel %vm4891_vm8, %v4874_v29, %v4890_v38 }
0x1089   :  { %v4894_v44 = vsel %vm4893_vm9, %v4878_v42, %v4892_v27 }
0x110f   :  { %v4822_v39 = vpop.xlane.xlu1 %4821 }
0x1110   :  { %v4840_v41 = vadd.f32 %v4831_v7, %v4822_v39 }
0x1112   :  { %v4882_v40 = vrot.slane %v4840_v41, %v4853_v20 }
0x1114   :  { %v4896_v45 = vsel %vm4895_vm10, %v4882_v40, %v4894_v44 }
0x1115   :  { %4898 = vxpose.xlu1.b32.start.end [1/1] (short) (narrow) %v4896_v45, 8 }
0x1195   :  { %v4914_v30 = vpop.trf.xlu1 }
0x1196   :  { %4931 = vst.msk [vmem:[%s7386_s12] sm:$0xff] %vm4930_vm11, %v4914_v30 }
0x1197   :  { %4940 = vsyncpa [#allocation8], 1 }
0x1198   :  { %4941 = vsyncpa [#allocation10], 1 }

</bundles_post_ra>
